<compile_context>
chip_gen: v5e
topology: v5e:2x2
jax: 0.10.0
libtpu: 0.0.40
codegen_flags: <defaults>
</compile_context>

<pallas_src>
import functools

import jax
import jax.numpy as jnp
from jax import lax
from jax.experimental import pallas as pl
from jax.experimental.pallas import tpu as pltpu

_EPS = 1e-5
_LANES = 128
# Explicit scoped-VMEM cap: fits v7x's 64 MiB physical VMEM with headroom and
# is well under v5e/v6e's 128 MiB.  Tiles below are sized far under this.
_VMEM_LIMIT_BYTES = 48 * 1024 * 1024


# ----------------------------------------------------------------------------
# small helpers
# ----------------------------------------------------------------------------
def _ceil_to(x, m):
    return (x + m - 1) // m * m


def _pad_last(a, to):
    pad = to - a.shape[-1]
    if pad == 0:
        return a
    return jnp.pad(a, [(0, 0)] * (a.ndim - 1) + [(0, pad)])


def _pad_last2(a, to_k, to_n):
    pk, pn = to_k - a.shape[-2], to_n - a.shape[-1]
    if pk == 0 and pn == 0:
        return a
    return jnp.pad(a, [(0, 0)] * (a.ndim - 2) + [(0, pk), (0, pn)])


def _pick_m_tile(m, cap=1024):
    """Largest power-of-two tile (<= cap) that divides M."""
    for mt in (1024, 512, 256, 128, 64, 32, 16, 8):
        if mt <= cap and m % mt == 0:
            return mt
    return m


def _pick_row_tile(ho, wo, cap_rows=2048):
    """Largest divisor of Ho such that the M-tile (tr*Wo) stays <= cap_rows,
    preferring sublane-aligned (multiple-of-8) tiles."""
    cands = [tr for tr in range(1, ho + 1) if ho % tr == 0 and tr * wo <= cap_rows]
    if not cands:
        return 1
    aligned = [tr for tr in cands if (tr * wo) % 8 == 0]
    return max(aligned) if aligned else max(cands)


def _shuffle_for_conv3(x_nhwc, stride):
    """Zero-pad spatially by 1 and split into stride*stride parity planes so
    that every 3x3 tap becomes a stride-free slice inside the kernel.
    Returns (xs[N, s*s, Hs, Ws, C], Ho, Wo).  Cost: a single 1x relayout
    (vs. the 9x HBM blow-up of an XLA-side im2col)."""
    n, h, w, c = x_nhwc.shape
    s = stride
    ho = (h - 1) // s + 1
    wo = (w - 1) // s + 1
    hp = _ceil_to(max(s * (ho - 1) + 3, h + 2), s)
    wp = _ceil_to(max(s * (wo - 1) + 3, w + 2), s)
    xp = jnp.pad(x_nhwc, ((0, 0), (1, hp - h - 1), (1, wp - w - 1), (0, 0)))
    hs, ws = hp // s, wp // s
    xs = xp.reshape(n, hs, s, ws, s, c).transpose(0, 2, 4, 1, 3, 5)
    return xs.reshape(n, s * s, hs, ws, c), ho, wo


def _bn_scale_shift(ps, count, gamma, beta):
    """Fold per-tile [sum, sumsq] partials into BN scale/shift.
    Training-mode batch statistics, biased variance, var = E[y^2]-mu^2 (f32)."""
    tot = jnp.sum(ps, axis=0)                       # (2, C)
    mu = tot[0] / count
    var = jnp.maximum(tot[1] / count - mu * mu, 0.0)
    scale = gamma * lax.rsqrt(var + _EPS)
    shift = beta - mu * scale
    return scale.reshape(1, -1), shift.reshape(1, -1)


# ----------------------------------------------------------------------------
# Pallas kernels
# ----------------------------------------------------------------------------
def _matmul_stats_kernel(x_ref, w_ref, y_ref, ps_ref):
    """1x1 conv tile: bf16 matmul -> f32, plus per-tile BN partial sums."""
    y = jnp.dot(x_ref[...], w_ref[...], preferred_element_type=jnp.float32)
    y_ref[...] = y
    ps_ref[0:1, :] = jnp.sum(y, axis=0, keepdims=True)
    ps_ref[1:2, :] = jnp.sum(y * y, axis=0, keepdims=True)


def _conv3_stats_kernel(xs_ref, w_ref, y_ref, ps_ref, *, stride, tr, wo):
    """3x3 conv tile: 9 shifted bf16 matmuls accumulated in f32, plus per-tile
    BN partial sums.  xs_ref holds the whole (parity-split, padded) image for
    this batch element and stays resident across the row-tile grid axis."""
    s = stride
    r0 = pl.program_id(1) * tr
    co = w_ref.shape[2]
    acc = jnp.zeros((tr * wo, co), jnp.float32)
    k = 0
    for dy in range(3):
        for dx in range(3):
            plane = (dy % s) * s + (dx % s)
            i0, j0 = dy // s, dx // s
            xt = xs_ref[plane, pl.ds(r0 + i0, tr), pl.ds(j0, wo), :]
            acc = acc + jnp.dot(xt.reshape(tr * wo, xt.shape[-1]), w_ref[k],
                                preferred_element_type=jnp.float32)
            k += 1
    y_ref[...] = acc
    ps_ref[0:1, :] = jnp.sum(acc, axis=0, keepdims=True)
    ps_ref[1:2, :] = jnp.sum(acc * acc, axis=0, keepdims=True)


def _bn_apply_kernel(y_ref, sc_ref, sh_ref, o_ref, *, relu):
    out = y_ref[...] * sc_ref[...] + sh_ref[...]
    if relu:
        out = jnp.maximum(out, 0.0)
    o_ref[...] = out.astype(o_ref.dtype)


def _bn_apply_res_kernel(y_ref, sc_ref, sh_ref, r_ref, rsc_ref, rsh_ref, o_ref):
    out = (y_ref[...] * sc_ref[...] + sh_ref[...]
           + r_ref[...] * rsc_ref[...] + rsh_ref[...])
    o_ref[...] = jnp.maximum(out, 0.0).astype(o_ref.dtype)


# ----------------------------------------------------------------------------
# pallas_call wrappers (gridded, weights/scale/shift resident, all-parallel)
# ----------------------------------------------------------------------------
def _matmul_stats(x2d, w):
    M, K = x2d.shape
    Co = w.shape[1]
    Mt = _pick_m_tile(M)
    T = M // Mt
    return pl.pallas_call(
        _matmul_stats_kernel,
        out_shape=(jax.ShapeDtypeStruct((M, Co), jnp.float32),
                   jax.ShapeDtypeStruct((T, 2, Co), jnp.float32)),
        grid=(T,),
        in_specs=[pl.BlockSpec((Mt, K), lambda t: (t, 0)),
                  pl.BlockSpec((K, Co), lambda t: (0, 0))],      # resident
        out_specs=(pl.BlockSpec((Mt, Co), lambda t: (t, 0)),
                   pl.BlockSpec((None, 2, Co), lambda t: (t, 0, 0))),
        compiler_params=pltpu.CompilerParams(
            dimension_semantics=("parallel",),
            vmem_limit_bytes=_VMEM_LIMIT_BYTES),
        cost_estimate=pl.CostEstimate(
            flops=2 * M * K * Co, transcendentals=0,
            bytes_accessed=M * K * 2 + K * Co * 2 + M * Co * 4 + T * 2 * Co * 4),
    )(x2d, w)


def _conv3_stats(xs, w, ho, wo, stride):
    N, S2, Hs, Ws, C = xs.shape
    Co = w.shape[2]
    tr = _pick_row_tile(ho, wo)
    T = ho // tr
    Mt = tr * wo
    M = N * ho * wo
    kern = functools.partial(_conv3_stats_kernel, stride=stride, tr=tr, wo=wo)
    return pl.pallas_call(
        kern,
        out_shape=(jax.ShapeDtypeStruct((M, Co), jnp.float32),
                   jax.ShapeDtypeStruct((N * T, 2, Co), jnp.float32)),
        grid=(N, T),
        in_specs=[pl.BlockSpec((None, S2, Hs, Ws, C),
                               lambda n, t: (n, 0, 0, 0, 0)),     # per-image, resident over t
                  pl.BlockSpec((9, C, Co), lambda n, t: (0, 0, 0))],  # resident
        out_specs=(pl.BlockSpec((Mt, Co), lambda n, t: (n * T + t, 0)),
                   pl.BlockSpec((None, 2, Co), lambda n, t: (n * T + t, 0, 0))),
        compiler_params=pltpu.CompilerParams(
            dimension_semantics=("parallel", "parallel"),
            vmem_limit_bytes=_VMEM_LIMIT_BYTES),
        cost_estimate=pl.CostEstimate(
            flops=2 * M * 9 * C * Co, transcendentals=0,
            bytes_accessed=xs.size * 2 + w.size * 2 + M * Co * 4 + N * T * 2 * Co * 4),
    )(xs, w)


def _bn_apply(y, scale, shift, *, relu, out_dtype):
    M, Co = y.shape
    Mt = _pick_m_tile(M)
    T = M // Mt
    return pl.pallas_call(
        functools.partial(_bn_apply_kernel, relu=relu),
        out_shape=jax.ShapeDtypeStruct((M, Co), out_dtype),
        grid=(T,),
        in_specs=[pl.BlockSpec((Mt, Co), lambda t: (t, 0)),
                  pl.BlockSpec((1, Co), lambda t: (0, 0)),
                  pl.BlockSpec((1, Co), lambda t: (0, 0))],
        out_specs=pl.BlockSpec((Mt, Co), lambda t: (t, 0)),
        compiler_params=pltpu.CompilerParams(
            dimension_semantics=("parallel",),
            vmem_limit_bytes=_VMEM_LIMIT_BYTES),
        cost_estimate=pl.CostEstimate(
            flops=3 * M * Co, transcendentals=0,
            bytes_accessed=M * Co * 4 + M * Co * jnp.dtype(out_dtype).itemsize),
    )(y, scale, shift)


def _bn_apply_residual(y, scale, shift, y_res, scale_res, shift_res):
    M, Co = y.shape
    Mt = _pick_m_tile(M)
    T = M // Mt
    return pl.pallas_call(
        _bn_apply_res_kernel,
        out_shape=jax.ShapeDtypeStruct((M, Co), jnp.float32),
        grid=(T,),
        in_specs=[pl.BlockSpec((Mt, Co), lambda t: (t, 0)),
                  pl.BlockSpec((1, Co), lambda t: (0, 0)),
                  pl.BlockSpec((1, Co), lambda t: (0, 0)),
                  pl.BlockSpec((Mt, Co), lambda t: (t, 0)),
                  pl.BlockSpec((1, Co), lambda t: (0, 0)),
                  pl.BlockSpec((1, Co), lambda t: (0, 0))],
        out_specs=pl.BlockSpec((Mt, Co), lambda t: (t, 0)),
        compiler_params=pltpu.CompilerParams(
            dimension_semantics=("parallel",),
            vmem_limit_bytes=_VMEM_LIMIT_BYTES),
        cost_estimate=pl.CostEstimate(
            flops=6 * M * Co, transcendentals=0,
            bytes_accessed=2 * M * Co * 4 + M * Co * 4),
    )(y, scale, shift, y_res, scale_res, shift_res)


# ----------------------------------------------------------------------------
# SpecialBlock forward
# ----------------------------------------------------------------------------
def special_block(x_nchw, params, stride):
    """Forward of SpecialBlock. x: NCHW float32, returns NCHW float32."""
    s0, s1 = stride
    w_id, g0, b0, w1, g1, b1, w2, g2, b2 = params
    Cin = x_nchw.shape[1]
    Cout = w_id.shape[1]
    Cpi = _ceil_to(Cin, _LANES)
    Cpo = _ceil_to(Cout, _LANES)

    # one transpose in, one out; NHWC / bf16 inside the block
    x = jnp.transpose(x_nchw, (0, 2, 3, 1))
    x = _pad_last(x, Cpi).astype(jnp.bfloat16)
    N = x.shape[0]

    # lane-dense (128-padded) parameters; padded channels stay exactly zero
    # through conv/BN/ReLU and are sliced off at the end.
    wid_p = _pad_last2(w_id, Cpi, Cpo).astype(jnp.bfloat16)
    w1_p = _pad_last2(w1.reshape(9, Cin, Cout), Cpi, Cpo).astype(jnp.bfloat16)
    w2_p = _pad_last2(w2.reshape(9, Cout, Cout), Cpo, Cpo).astype(jnp.bfloat16)
    g0p = _pad_last(g0.reshape(-1).astype(jnp.float32), Cpo)
    b0p = _pad_last(b0.reshape(-1).astype(jnp.float32), Cpo)
    g1p = _pad_last(g1.reshape(-1).astype(jnp.float32), Cpo)
    b1p = _pad_last(b1.reshape(-1).astype(jnp.float32), Cpo)
    g2p = _pad_last(g2.reshape(-1).astype(jnp.float32), Cpo)
    b2p = _pad_last(b2.reshape(-1).astype(jnp.float32), Cpo)

    # identity path: 1x1 conv (stride s0) + BN (scale/shift applied fused later)
    x_sub = x[:, ::s0, ::s0, :]
    Hoi, Woi = x_sub.shape[1], x_sub.shape[2]
    Mi = N * Hoi * Woi
    y_id, ps_id = _matmul_stats(x_sub.reshape(Mi, Cpi), wid_p)
    sc0, sh0 = _bn_scale_shift(ps_id, Mi, g0p, b0p)

    # conv1: 3x3 stride s0 + BN + ReLU
    xs1, Ho1, Wo1 = _shuffle_for_conv3(x, s0)
    y1_raw, ps1 = _conv3_stats(xs1, w1_p, Ho1, Wo1, s0)
    sc1, sh1 = _bn_scale_shift(ps1, N * Ho1 * Wo1, g1p, b1p)
    y1 = _bn_apply(y1_raw, sc1, sh1, relu=True, out_dtype=jnp.bfloat16)
    y1 = y1.reshape(N, Ho1, Wo1, Cpo)

    # conv2: 3x3 stride s1 + BN, += BN(identity), ReLU (one fused kernel)
    xs2, Ho2, Wo2 = _shuffle_for_conv3(y1, s1)
    y2_raw, ps2 = _conv3_stats(xs2, w2_p, Ho2, Wo2, s1)
    sc2, sh2 = _bn_scale_shift(ps2, N * Ho2 * Wo2, g2p, b2p)
    assert y2_raw.shape[0] == y_id.shape[0], "residual/main spatial mismatch"
    out2d = _bn_apply_residual(y2_raw, sc2, sh2, y_id, sc0, sh0)

    out = out2d.reshape(N, Ho2, Wo2, Cpo)[..., :Cout]
    return jnp.transpose(out, (0, 3, 1, 2)).astype(x_nchw.dtype)


# ----------------------------------------------------------------------------
# Pure-JAX reference (sanity check of the Pallas path)
# ----------------------------------------------------------------------------
def _bn_ref(y_nhwc, gamma, beta):
    mu = jnp.mean(y_nhwc, axis=(0, 1, 2), keepdims=True)
    var = jnp.mean((y_nhwc - mu) ** 2, axis=(0, 1, 2), keepdims=True)
    return ((y_nhwc - mu) / jnp.sqrt(var + _EPS) * gamma.reshape(1, 1, 1, -1)
            + beta.reshape(1, 1, 1, -1))


def _conv_ref(x_nhwc, w_hwio, stride, pad):
    return lax.conv_general_dilated(
        x_nhwc, w_hwio, window_strides=(stride, stride),
        padding=[(pad, pad), (pad, pad)],
        dimension_numbers=("NHWC", "HWIO", "NHWC"))


def special_block_ref(x_nchw, params, stride):
    s0, s1 = stride
    w_id, g0, b0, w1, g1, b1, w2, g2, b2 = params
    x = jnp.transpose(x_nchw, (0, 2, 3, 1))
    ident = _bn_ref(_conv_ref(x, w_id.reshape(1, 1, *w_id.shape), s0, 0), g0, b0)
    y = jax.nn.relu(_bn_ref(_conv_ref(x, w1, s0, 1), g1, b1))
    y = _bn_ref(_conv_ref(y, w2, s1, 1), g2, b2)
    return jnp.transpose(jax.nn.relu(y + ident), (0, 3, 1, 2))


# ----------------------------------------------------------------------------
if __name__ == "__main__":
    N, Cin, Cout, H, W = 2, 4, 8, 16, 16
    stride = (2, 1)   # typical downsampling SpecialBlock

    key = jax.random.PRNGKey(0)
    kx, k_id, k1, k2 = jax.random.split(key, 4)

    x = jax.random.normal(kx, (N, Cin, H, W), jnp.float32)

    # Deterministic parameter init (shapes from __init__; bias=False convs,
    # fresh BatchNorm2d -> gamma=1, beta=0).  PyTorch OIHW conv weights are
    # kept here in matmul-friendly layouts: 1x1 conv as (Cin, Cout), 3x3 as HWIO.
    w_id = jax.random.normal(k_id, (Cin, Cout), jnp.float32) * 0.2
    w1 = jax.random.normal(k1, (3, 3, Cin, Cout), jnp.float32) * 0.1
    w2 = jax.random.normal(k2, (3, 3, Cout, Cout), jnp.float32) * 0.1
    g0 = jnp.ones((Cout,), jnp.float32); b0 = jnp.zeros((Cout,), jnp.float32)
    g1 = jnp.ones((Cout,), jnp.float32); b1 = jnp.zeros((Cout,), jnp.float32)
    g2 = jnp.ones((Cout,), jnp.float32); b2 = jnp.zeros((Cout,), jnp.float32)
    params = (w_id, g0, b0, w1, g1, b1, w2, g2, b2)

    out = jax.jit(special_block, static_argnums=2)(x, params, stride)
    out = jax.block_until_ready(out)

    ref = jax.block_until_ready(special_block_ref(x, params, stride))
    assert out.shape == (N, Cout, H // stride[0], W // stride[0]), out.shape
    assert jnp.allclose(out, ref, rtol=5e-2, atol=5e-2), \
        float(jnp.max(jnp.abs(out - ref)))

    print("KERNEL_OK")
</pallas_src>

<mosaic_0001>
module attributes {stable_mosaic.version = 11 : i64} {
  func.func @_bn_apply_kernel(%arg0: i32, %arg1: memref<128x128xf32, #tpu.memory_space<vmem>>, %arg2: memref<1x128xf32, #tpu.memory_space<vmem>>, %arg3: memref<1x128xf32, #tpu.memory_space<vmem>>, %arg4: memref<128x128xbf16, #tpu.memory_space<vmem>>) attributes {dimension_semantics = [#tpu.dimension_semantics<parallel>], iteration_bounds = array<i64: 1>, scalar_prefetch = 0 : i64, scratch_operands = 0 : i64, tpu.core_type = #tpu.core_type<tc>, window_params = [{transform_indices = @transform_0, window_bounds = array<i64: 128, 128>}, {pipeline_mode = #tpu.pipeline_mode<synchronous>, transform_indices = @transform_1, window_bounds = array<i64: 1, 128>}, {pipeline_mode = #tpu.pipeline_mode<synchronous>, transform_indices = @transform_2, window_bounds = array<i64: 1, 128>}, {transform_indices = @transform_3, window_bounds = array<i64: 128, 128>}]} {
    %c0 = arith.constant 0 : index
    %c0_0 = arith.constant 0 : index
    %0 = vector.load %arg1[%c0, %c0_0] : memref<128x128xf32, #tpu.memory_space<vmem>>, vector<128x128xf32>
    %c0_1 = arith.constant 0 : index
    %c0_2 = arith.constant 0 : index
    %1 = vector.load %arg2[%c0_1, %c0_2] : memref<1x128xf32, #tpu.memory_space<vmem>>, vector<1x128xf32>
    %2 = vector.broadcast %1 : vector<1x128xf32> to vector<128x128xf32>
    %3 = arith.mulf %0, %2 : vector<128x128xf32>
    %c0_3 = arith.constant 0 : index
    %c0_4 = arith.constant 0 : index
    %4 = vector.load %arg3[%c0_3, %c0_4] : memref<1x128xf32, #tpu.memory_space<vmem>>, vector<1x128xf32>
    %5 = vector.broadcast %4 : vector<1x128xf32> to vector<128x128xf32>
    %6 = arith.addf %3, %5 : vector<128x128xf32>
    %cst = arith.constant 0.000000e+00 : f32
    %7 = vector.broadcast %cst : f32 to vector<128x128xf32>
    %8 = arith.maximumf %6, %7 : vector<128x128xf32>
    %9 = arith.truncf %8 : vector<128x128xf32> to vector<128x128xbf16>
    %c0_5 = arith.constant 0 : index
    %c0_6 = arith.constant 0 : index
    %10 = vector.load %arg4[%c0_5, %c0_6] : memref<128x128xbf16, #tpu.memory_space<vmem>>, vector<128x128xbf16>
    tpu.vector_store %arg4[%c0_5, %c0_6], %9 {strides = array<i32>} : memref<128x128xbf16, #tpu.memory_space<vmem>>, vector<128x128xbf16>,
    return
  }
  func.func @transform_0(%arg0: i32) -> (i32, i32) {
    %c0_i32 = arith.constant 0 : i32
    %c0_i32_0 = arith.constant 0 : i32
    return %arg0, %c0_i32 : i32, i32
  }
  func.func @transform_1(%arg0: i32) -> (i32, i32) {
    %c0_i32 = arith.constant 0 : i32
    %c0_i32_0 = arith.constant 0 : i32
    %c0_i32_1 = arith.constant 0 : i32
    return %c0_i32, %c0_i32_0 : i32, i32
  }
  func.func @transform_2(%arg0: i32) -> (i32, i32) {
    %c0_i32 = arith.constant 0 : i32
    %c0_i32_0 = arith.constant 0 : i32
    %c0_i32_1 = arith.constant 0 : i32
    return %c0_i32, %c0_i32_0 : i32, i32
  }
  func.func @transform_3(%arg0: i32) -> (i32, i32) {
    %c0_i32 = arith.constant 0 : i32
    %c0_i32_0 = arith.constant 0 : i32
    return %arg0, %c0_i32 : i32, i32
  }
}

module attributes {stable_mosaic.version = 11 : i64} {
  func.func @_conv3_stats_kernel(%arg0: i32, %arg1: i32, %arg2: memref<1x4x9x9x128xbf16, #tpu.memory_space<vmem>>, %arg3: memref<9x128x128xbf16, #tpu.memory_space<vmem>>, %arg4: memref<64x128xf32, #tpu.memory_space<vmem>>, %arg5: memref<1x2x128xf32, #tpu.memory_space<vmem>>) attributes {dimension_semantics = [#tpu.dimension_semantics<parallel>, #tpu.dimension_semantics<parallel>], iteration_bounds = array<i64: 2, 1>, scalar_prefetch = 0 : i64, scratch_operands = 0 : i64, tpu.core_type = #tpu.core_type<tc>, window_params = [{transform_indices = @transform_0, window_bounds = array<i64: 1, 4, 9, 9, 128>}, {pipeline_mode = #tpu.pipeline_mode<synchronous>, transform_indices = @transform_1, window_bounds = array<i64: 9, 128, 128>}, {transform_indices = @transform_2, window_bounds = array<i64: 64, 128>}, {transform_indices = @transform_3, window_bounds = array<i64: 1, 2, 128>}]} {
    %c8_i32 = arith.constant 8 : i32
    %0 = arith.muli %arg1, %c8_i32 : i32
    %cst = arith.constant 0.000000e+00 : f32
    %1 = vector.broadcast %cst : f32 to vector<64x128xf32>
    %c0_i32 = arith.constant 0 : i32
    %2 = arith.addi %0, %c0_i32 : i32
    %c0 = arith.constant 0 : index
    %c0_0 = arith.constant 0 : index
    %3 = arith.index_cast %2 : i32 to index
    %c0_1 = arith.constant 0 : index
    %c0_2 = arith.constant 0 : index
    %4 = vector.load %arg2[%c0, %c0_0, %3, %c0_1, %c0_2] : memref<1x4x9x9x128xbf16, #tpu.memory_space<vmem>>, vector<1x1x8x8x128xbf16>
    %5 = vector.shape_cast %4 : vector<1x1x8x8x128xbf16> to vector<8x8x128xbf16>
    %6 = vector.shape_cast %5 : vector<8x8x128xbf16> to vector<64x128xbf16>
    %c0_3 = arith.constant 0 : index
    %c0_4 = arith.constant 0 : index
    %c0_5 = arith.constant 0 : index
    %7 = vector.load %arg3[%c0_3, %c0_4, %c0_5] : memref<9x128x128xbf16, #tpu.memory_space<vmem>>, vector<1x128x128xbf16>
    %8 = vector.shape_cast %7 : vector<1x128x128xbf16> to vector<128x128xbf16>
    %cst_6 = arith.constant dense<0.000000e+00> : vector<64x128xf32>
    %9 = tpu.matmul %6, %8, %cst_6 {dimension_numbers = #tpu.dot_dimension_numbers<[1], [0], [0], [1], [0, 0, 1, 1], [], []>} : vector<64x128xbf16>, vector<128x128xbf16>, vector<64x128xf32> -> vector<64x128xf32>
    %10 = arith.addf %1, %9 : vector<64x128xf32>
    %c0_i32_7 = arith.constant 0 : i32
    %11 = arith.addi %0, %c0_i32_7 : i32
    %c0_8 = arith.constant 0 : index
    %c1 = arith.constant 1 : index
    %12 = arith.index_cast %11 : i32 to index
    %c0_9 = arith.constant 0 : index
    %c0_10 = arith.constant 0 : index
    %13 = vector.load %arg2[%c0_8, %c1, %12, %c0_9, %c0_10] : memref<1x4x9x9x128xbf16, #tpu.memory_space<vmem>>, vector<1x1x8x8x128xbf16>
    %14 = vector.shape_cast %13 : vector<1x1x8x8x128xbf16> to vector<8x8x128xbf16>
    %15 = vector.shape_cast %14 : vector<8x8x128xbf16> to vector<64x128xbf16>
    %c1_11 = arith.constant 1 : index
    %c0_12 = arith.constant 0 : index
    %c0_13 = arith.constant 0 : index
    %16 = vector.load %arg3[%c1_11, %c0_12, %c0_13] : memref<9x128x128xbf16, #tpu.memory_space<vmem>>, vector<1x128x128xbf16>
    %17 = vector.shape_cast %16 : vector<1x128x128xbf16> to vector<128x128xbf16>
    %cst_14 = arith.constant dense<0.000000e+00> : vector<64x128xf32>
    %18 = tpu.matmul %15, %17, %cst_14 {dimension_numbers = #tpu.dot_dimension_numbers<[1], [0], [0], [1], [0, 0, 1, 1], [], []>} : vector<64x128xbf16>, vector<128x128xbf16>, vector<64x128xf32> -> vector<64x128xf32>
    %19 = arith.addf %10, %18 : vector<64x128xf32>
    %c0_i32_15 = arith.constant 0 : i32
    %20 = arith.addi %0, %c0_i32_15 : i32
    %c0_16 = arith.constant 0 : index
    %c0_17 = arith.constant 0 : index
    %21 = arith.index_cast %20 : i32 to index
    %c1_18 = arith.constant 1 : index
    %c0_19 = arith.constant 0 : index
    %22 = vector.load %arg2[%c0_16, %c0_17, %21, %c1_18, %c0_19] : memref<1x4x9x9x128xbf16, #tpu.memory_space<vmem>>, vector<1x1x8x8x128xbf16>
    %23 = vector.shape_cast %22 : vector<1x1x8x8x128xbf16> to vector<8x8x128xbf16>
    %24 = vector.shape_cast %23 : vector<8x8x128xbf16> to vector<64x128xbf16>
    %c2 = arith.constant 2 : index
    %c0_20 = arith.constant 0 : index
    %c0_21 = arith.constant 0 : index
    %25 = vector.load %arg3[%c2, %c0_20, %c0_21] : memref<9x128x128xbf16, #tpu.memory_space<vmem>>, vector<1x128x128xbf16>
    %26 = vector.shape_cast %25 : vector<1x128x128xbf16> to vector<128x128xbf16>
    %cst_22 = arith.constant dense<0.000000e+00> : vector<64x128xf32>
    %27 = tpu.matmul %24, %26, %cst_22 {dimension_numbers = #tpu.dot_dimension_numbers<[1], [0], [0], [1], [0, 0, 1, 1], [], []>} : vector<64x128xbf16>, vector<128x128xbf16>, vector<64x128xf32> -> vector<64x128xf32>
    %28 = arith.addf %19, %27 : vector<64x128xf32>
    %c0_i32_23 = arith.constant 0 : i32
    %29 = arith.addi %0, %c0_i32_23 : i32
    %c0_24 = arith.constant 0 : index
    %c2_25 = arith.constant 2 : index
    %30 = arith.index_cast %29 : i32 to index
    %c0_26 = arith.constant 0 : index
    %c0_27 = arith.constant 0 : index
    %31 = vector.load %arg2[%c0_24, %c2_25, %30, %c0_26, %c0_27] : memref<1x4x9x9x128xbf16, #tpu.memory_space<vmem>>, vector<1x1x8x8x128xbf16>
    %32 = vector.shape_cast %31 : vector<1x1x8x8x128xbf16> to vector<8x8x128xbf16>
    %33 = vector.shape_cast %32 : vector<8x8x128xbf16> to vector<64x128xbf16>
    %c3 = arith.constant 3 : index
    %c0_28 = arith.constant 0 : index
    %c0_29 = arith.constant 0 : index
    %34 = vector.load %arg3[%c3, %c0_28, %c0_29] : memref<9x128x128xbf16, #tpu.memory_space<vmem>>, vector<1x128x128xbf16>
    %35 = vector.shape_cast %34 : vector<1x128x128xbf16> to vector<128x128xbf16>
    %cst_30 = arith.constant dense<0.000000e+00> : vector<64x128xf32>
    %36 = tpu.matmul %33, %35, %cst_30 {dimension_numbers = #tpu.dot_dimension_numbers<[1], [0], [0], [1], [0, 0, 1, 1], [], []>} : vector<64x128xbf16>, vector<128x128xbf16>, vector<64x128xf32> -> vector<64x128xf32>
    %37 = arith.addf %28, %36 : vector<64x128xf32>
    %c0_i32_31 = arith.constant 0 : i32
    %38 = arith.addi %0, %c0_i32_31 : i32
    %c0_32 = arith.constant 0 : index
    %c3_33 = arith.constant 3 : index
    %39 = arith.index_cast %38 : i32 to index
    %c0_34 = arith.constant 0 : index
    %c0_35 = arith.constant 0 : index
    %40 = vector.load %arg2[%c0_32, %c3_33, %39, %c0_34, %c0_35] : memref<1x4x9x9x128xbf16, #tpu.memory_space<vmem>>, vector<1x1x8x8x128xbf16>
    %41 = vector.shape_cast %40 : vector<1x1x8x8x128xbf16> to vector<8x8x128xbf16>
    %42 = vector.shape_cast %41 : vector<8x8x128xbf16> to vector<64x128xbf16>
    %c4 = arith.constant 4 : index
    %c0_36 = arith.constant 0 : index
    %c0_37 = arith.constant 0 : index
    %43 = vector.load %arg3[%c4, %c0_36, %c0_37] : memref<9x128x128xbf16, #tpu.memory_space<vmem>>, vector<1x128x128xbf16>
    %44 = vector.shape_cast %43 : vector<1x128x128xbf16> to vector<128x128xbf16>
    %cst_38 = arith.constant dense<0.000000e+00> : vector<64x128xf32>
    %45 = tpu.matmul %42, %44, %cst_38 {dimension_numbers = #tpu.dot_dimension_numbers<[1], [0], [0], [1], [0, 0, 1, 1], [], []>} : vector<64x128xbf16>, vector<128x128xbf16>, vector<64x128xf32> -> vector<64x128xf32>
    %46 = arith.addf %37, %45 : vector<64x128xf32>
    %c0_i32_39 = arith.constant 0 : i32
    %47 = arith.addi %0, %c0_i32_39 : i32
    %c0_40 = arith.constant 0 : index
    %c2_41 = arith.constant 2 : index
    %48 = arith.index_cast %47 : i32 to index
    %c1_42 = arith.constant 1 : index
    %c0_43 = arith.constant 0 : index
    %49 = vector.load %arg2[%c0_40, %c2_41, %48, %c1_42, %c0_43] : memref<1x4x9x9x128xbf16, #tpu.memory_space<vmem>>, vector<1x1x8x8x128xbf16>
    %50 = vector.shape_cast %49 : vector<1x1x8x8x128xbf16> to vector<8x8x128xbf16>
    %51 = vector.shape_cast %50 : vector<8x8x128xbf16> to vector<64x128xbf16>
    %c5 = arith.constant 5 : index
    %c0_44 = arith.constant 0 : index
    %c0_45 = arith.constant 0 : index
    %52 = vector.load %arg3[%c5, %c0_44, %c0_45] : memref<9x128x128xbf16, #tpu.memory_space<vmem>>, vector<1x128x128xbf16>
    %53 = vector.shape_cast %52 : vector<1x128x128xbf16> to vector<128x128xbf16>
    %cst_46 = arith.constant dense<0.000000e+00> : vector<64x128xf32>
    %54 = tpu.matmul %51, %53, %cst_46 {dimension_numbers = #tpu.dot_dimension_numbers<[1], [0], [0], [1], [0, 0, 1, 1], [], []>} : vector<64x128xbf16>, vector<128x128xbf16>, vector<64x128xf32> -> vector<64x128xf32>
    %55 = arith.addf %46, %54 : vector<64x128xf32>
    %c1_i32 = arith.constant 1 : i32
    %56 = arith.addi %0, %c1_i32 : i32
    %c0_47 = arith.constant 0 : index
    %c0_48 = arith.constant 0 : index
    %57 = arith.index_cast %56 : i32 to index
    %c0_49 = arith.constant 0 : index
    %c0_50 = arith.constant 0 : index
    %58 = vector.load %arg2[%c0_47, %c0_48, %57, %c0_49, %c0_50] : memref<1x4x9x9x128xbf16, #tpu.memory_space<vmem>>, vector<1x1x8x8x128xbf16>
    %59 = vector.shape_cast %58 : vector<1x1x8x8x128xbf16> to vector<8x8x128xbf16>
    %60 = vector.shape_cast %59 : vector<8x8x128xbf16> to vector<64x128xbf16>
    %c6 = arith.constant 6 : index
    %c0_51 = arith.constant 0 : index
    %c0_52 = arith.constant 0 : index
    %61 = vector.load %arg3[%c6, %c0_51, %c0_52] : memref<9x128x128xbf16, #tpu.memory_space<vmem>>, vector<1x128x128xbf16>
    %62 = vector.shape_cast %61 : vector<1x128x128xbf16> to vector<128x128xbf16>
    %cst_53 = arith.constant dense<0.000000e+00> : vector<64x128xf32>
    %63 = tpu.matmul %60, %62, %cst_53 {dimension_numbers = #tpu.dot_dimension_numbers<[1], [0], [0], [1], [0, 0, 1, 1], [], []>} : vector<64x128xbf16>, vector<128x128xbf16>, vector<64x128xf32> -> vector<64x128xf32>
    %64 = arith.addf %55, %63 : vector<64x128xf32>
    %c1_i32_54 = arith.constant 1 : i32
    %65 = arith.addi %0, %c1_i32_54 : i32
    %c0_55 = arith.constant 0 : index
    %c1_56 = arith.constant 1 : index
    %66 = arith.index_cast %65 : i32 to index
    %c0_57 = arith.constant 0 : index
    %c0_58 = arith.constant 0 : index
    %67 = vector.load %arg2[%c0_55, %c1_56, %66, %c0_57, %c0_58] : memref<1x4x9x9x128xbf16, #tpu.memory_space<vmem>>, vector<1x1x8x8x128xbf16>
    %68 = vector.shape_cast %67 : vector<1x1x8x8x128xbf16> to vector<8x8x128xbf16>
    %69 = vector.shape_cast %68 : vector<8x8x128xbf16> to vector<64x128xbf16>
    %c7 = arith.constant 7 : index
    %c0_59 = arith.constant 0 : index
    %c0_60 = arith.constant 0 : index
    %70 = vector.load %arg3[%c7, %c0_59, %c0_60] : memref<9x128x128xbf16, #tpu.memory_space<vmem>>, vector<1x128x128xbf16>
    %71 = vector.shape_cast %70 : vector<1x128x128xbf16> to vector<128x128xbf16>
    %cst_61 = arith.constant dense<0.000000e+00> : vector<64x128xf32>
    %72 = tpu.matmul %69, %71, %cst_61 {dimension_numbers = #tpu.dot_dimension_numbers<[1], [0], [0], [1], [0, 0, 1, 1], [], []>} : vector<64x128xbf16>, vector<128x128xbf16>, vector<64x128xf32> -> vector<64x128xf32>
    %73 = arith.addf %64, %72 : vector<64x128xf32>
    %c1_i32_62 = arith.constant 1 : i32
    %74 = arith.addi %0, %c1_i32_62 : i32
    %c0_63 = arith.constant 0 : index
    %c0_64 = arith.constant 0 : index
    %75 = arith.index_cast %74 : i32 to index
    %c1_65 = arith.constant 1 : index
    %c0_66 = arith.constant 0 : index
    %76 = vector.load %arg2[%c0_63, %c0_64, %75, %c1_65, %c0_66] : memref<1x4x9x9x128xbf16, #tpu.memory_space<vmem>>, vector<1x1x8x8x128xbf16>
    %77 = vector.shape_cast %76 : vector<1x1x8x8x128xbf16> to vector<8x8x128xbf16>
    %78 = vector.shape_cast %77 : vector<8x8x128xbf16> to vector<64x128xbf16>
    %c8 = arith.constant 8 : index
    %c0_67 = arith.constant 0 : index
    %c0_68 = arith.constant 0 : index
    %79 = vector.load %arg3[%c8, %c0_67, %c0_68] : memref<9x128x128xbf16, #tpu.memory_space<vmem>>, vector<1x128x128xbf16>
    %80 = vector.shape_cast %79 : vector<1x128x128xbf16> to vector<128x128xbf16>
    %cst_69 = arith.constant dense<0.000000e+00> : vector<64x128xf32>
    %81 = tpu.matmul %78, %80, %cst_69 {dimension_numbers = #tpu.dot_dimension_numbers<[1], [0], [0], [1], [0, 0, 1, 1], [], []>} : vector<64x128xbf16>, vector<128x128xbf16>, vector<64x128xf32> -> vector<64x128xf32>
    %82 = arith.addf %73, %81 : vector<64x128xf32>
    %c0_70 = arith.constant 0 : index
    %c0_71 = arith.constant 0 : index
    %83 = vector.load %arg4[%c0_70, %c0_71] : memref<64x128xf32, #tpu.memory_space<vmem>>, vector<64x128xf32>
    tpu.vector_store %arg4[%c0_70, %c0_71], %82 {strides = array<i32>} : memref<64x128xf32, #tpu.memory_space<vmem>>, vector<64x128xf32>,
    %cst_72 = arith.constant dense<0.000000e+00> : vector<128xf32>
    %84 = vector.multi_reduction <add>, %82, %cst_72 [0] : vector<64x128xf32> to vector<128xf32>
    %85 = vector.shape_cast %84 : vector<128xf32> to vector<1x128xf32>
    %c0_73 = arith.constant 0 : index
    %c0_74 = arith.constant 0 : index
    %c0_75 = arith.constant 0 : index
    %86 = vector.load %arg5[%c0_73, %c0_74, %c0_75] : memref<1x2x128xf32, #tpu.memory_space<vmem>>, vector<1x1x128xf32>
    %87 = vector.shape_cast %86 : vector<1x1x128xf32> to vector<1x128xf32>
    %88 = vector.shape_cast %85 : vector<1x128xf32> to vector<1x1x128xf32>
    tpu.vector_store %arg5[%c0_73, %c0_74, %c0_75], %88 {strides = array<i32>} : memref<1x2x128xf32, #tpu.memory_space<vmem>>, vector<1x1x128xf32>,
    %89 = arith.mulf %82, %82 : vector<64x128xf32>
    %cst_76 = arith.constant dense<0.000000e+00> : vector<128xf32>
    %90 = vector.multi_reduction <add>, %89, %cst_76 [0] : vector<64x128xf32> to vector<128xf32>
    %91 = vector.shape_cast %90 : vector<128xf32> to vector<1x128xf32>
    %c0_77 = arith.constant 0 : index
    %c1_78 = arith.constant 1 : index
    %c0_79 = arith.constant 0 : index
    %92 = vector.load %arg5[%c0_77, %c1_78, %c0_79] : memref<1x2x128xf32, #tpu.memory_space<vmem>>, vector<1x1x128xf32>
    %93 = vector.shape_cast %92 : vector<1x1x128xf32> to vector<1x128xf32>
    %94 = vector.shape_cast %91 : vector<1x128xf32> to vector<1x1x128xf32>
    tpu.vector_store %arg5[%c0_77, %c1_78, %c0_79], %94 {strides = array<i32>} : memref<1x2x128xf32, #tpu.memory_space<vmem>>, vector<1x1x128xf32>,
    return
  }
  func.func @transform_0(%arg0: i32, %arg1: i32) -> (i32, i32, i32, i32, i32) {
    %c0_i32 = arith.constant 0 : i32
    %c0_i32_0 = arith.constant 0 : i32
    %c0_i32_1 = arith.constant 0 : i32
    %c0_i32_2 = arith.constant 0 : i32
    %c0_i32_3 = arith.constant 0 : i32
    return %arg0, %c0_i32, %c0_i32_0, %c0_i32_1, %c0_i32_2 : i32, i32, i32, i32, i32
  }
  func.func @transform_1(%arg0: i32, %arg1: i32) -> (i32, i32, i32) {
    %c0_i32 = arith.constant 0 : i32
    %c0_i32_0 = arith.constant 0 : i32
    %c0_i32_1 = arith.constant 0 : i32
    %c0_i32_2 = arith.constant 0 : i32
    return %c0_i32, %c0_i32_0, %c0_i32_1 : i32, i32, i32
  }
  func.func @transform_2(%arg0: i32, %arg1: i32) -> (i32, i32) {
    %c1_i32 = arith.constant 1 : i32
    %0 = arith.muli %arg0, %c1_i32 : i32
    %1 = arith.addi %0, %arg1 : i32
    %c0_i32 = arith.constant 0 : i32
    %c0_i32_0 = arith.constant 0 : i32
    return %1, %c0_i32 : i32, i32
  }
  func.func @transform_3(%arg0: i32, %arg1: i32) -> (i32, i32, i32) {
    %c1_i32 = arith.constant 1 : i32
    %0 = arith.muli %arg0, %c1_i32 : i32
    %1 = arith.addi %0, %arg1 : i32
    %c0_i32 = arith.constant 0 : i32
    %c0_i32_0 = arith.constant 0 : i32
    %c0_i32_1 = arith.constant 0 : i32
    return %1, %c0_i32, %c0_i32_0 : i32, i32, i32
  }
}

module attributes {stable_mosaic.version = 11 : i64} {
  func.func @_conv3_stats_kernel(%arg0: i32, %arg1: i32, %arg2: memref<1x1x10x10x128xbf16, #tpu.memory_space<vmem>>, %arg3: memref<9x128x128xbf16, #tpu.memory_space<vmem>>, %arg4: memref<64x128xf32, #tpu.memory_space<vmem>>, %arg5: memref<1x2x128xf32, #tpu.memory_space<vmem>>) attributes {dimension_semantics = [#tpu.dimension_semantics<parallel>, #tpu.dimension_semantics<parallel>], iteration_bounds = array<i64: 2, 1>, scalar_prefetch = 0 : i64, scratch_operands = 0 : i64, tpu.core_type = #tpu.core_type<tc>, window_params = [{transform_indices = @transform_0, window_bounds = array<i64: 1, 1, 10, 10, 128>}, {pipeline_mode = #tpu.pipeline_mode<synchronous>, transform_indices = @transform_1, window_bounds = array<i64: 9, 128, 128>}, {transform_indices = @transform_2, window_bounds = array<i64: 64, 128>}, {transform_indices = @transform_3, window_bounds = array<i64: 1, 2, 128>}]} {
    %c8_i32 = arith.constant 8 : i32
    %0 = arith.muli %arg1, %c8_i32 : i32
    %cst = arith.constant 0.000000e+00 : f32
    %1 = vector.broadcast %cst : f32 to vector<64x128xf32>
    %c0_i32 = arith.constant 0 : i32
    %2 = arith.addi %0, %c0_i32 : i32
    %c0 = arith.constant 0 : index
    %c0_0 = arith.constant 0 : index
    %3 = arith.index_cast %2 : i32 to index
    %c0_1 = arith.constant 0 : index
    %c0_2 = arith.constant 0 : index
    %4 = vector.load %arg2[%c0, %c0_0, %3, %c0_1, %c0_2] : memref<1x1x10x10x128xbf16, #tpu.memory_space<vmem>>, vector<1x1x8x8x128xbf16>
    %5 = vector.shape_cast %4 : vector<1x1x8x8x128xbf16> to vector<8x8x128xbf16>
    %6 = vector.shape_cast %5 : vector<8x8x128xbf16> to vector<64x128xbf16>
    %c0_3 = arith.constant 0 : index
    %c0_4 = arith.constant 0 : index
    %c0_5 = arith.constant 0 : index
    %7 = vector.load %arg3[%c0_3, %c0_4, %c0_5] : memref<9x128x128xbf16, #tpu.memory_space<vmem>>, vector<1x128x128xbf16>
    %8 = vector.shape_cast %7 : vector<1x128x128xbf16> to vector<128x128xbf16>
    %cst_6 = arith.constant dense<0.000000e+00> : vector<64x128xf32>
    %9 = tpu.matmul %6, %8, %cst_6 {dimension_numbers = #tpu.dot_dimension_numbers<[1], [0], [0], [1], [0, 0, 1, 1], [], []>} : vector<64x128xbf16>, vector<128x128xbf16>, vector<64x128xf32> -> vector<64x128xf32>
    %10 = arith.addf %1, %9 : vector<64x128xf32>
    %c0_i32_7 = arith.constant 0 : i32
    %11 = arith.addi %0, %c0_i32_7 : i32
    %c0_8 = arith.constant 0 : index
    %c0_9 = arith.constant 0 : index
    %12 = arith.index_cast %11 : i32 to index
    %c1 = arith.constant 1 : index
    %c0_10 = arith.constant 0 : index
    %13 = vector.load %arg2[%c0_8, %c0_9, %12, %c1, %c0_10] : memref<1x1x10x10x128xbf16, #tpu.memory_space<vmem>>, vector<1x1x8x8x128xbf16>
    %14 = vector.shape_cast %13 : vector<1x1x8x8x128xbf16> to vector<8x8x128xbf16>
    %15 = vector.shape_cast %14 : vector<8x8x128xbf16> to vector<64x128xbf16>
    %c1_11 = arith.constant 1 : index
    %c0_12 = arith.constant 0 : index
    %c0_13 = arith.constant 0 : index
    %16 = vector.load %arg3[%c1_11, %c0_12, %c0_13] : memref<9x128x128xbf16, #tpu.memory_space<vmem>>, vector<1x128x128xbf16>
    %17 = vector.shape_cast %16 : vector<1x128x128xbf16> to vector<128x128xbf16>
    %cst_14 = arith.constant dense<0.000000e+00> : vector<64x128xf32>
    %18 = tpu.matmul %15, %17, %cst_14 {dimension_numbers = #tpu.dot_dimension_numbers<[1], [0], [0], [1], [0, 0, 1, 1], [], []>} : vector<64x128xbf16>, vector<128x128xbf16>, vector<64x128xf32> -> vector<64x128xf32>
    %19 = arith.addf %10, %18 : vector<64x128xf32>
    %c0_i32_15 = arith.constant 0 : i32
    %20 = arith.addi %0, %c0_i32_15 : i32
    %c0_16 = arith.constant 0 : index
    %c0_17 = arith.constant 0 : index
    %21 = arith.index_cast %20 : i32 to index
    %c2 = arith.constant 2 : index
    %c0_18 = arith.constant 0 : index
    %22 = vector.load %arg2[%c0_16, %c0_17, %21, %c2, %c0_18] : memref<1x1x10x10x128xbf16, #tpu.memory_space<vmem>>, vector<1x1x8x8x128xbf16>
    %23 = vector.shape_cast %22 : vector<1x1x8x8x128xbf16> to vector<8x8x128xbf16>
    %24 = vector.shape_cast %23 : vector<8x8x128xbf16> to vector<64x128xbf16>
    %c2_19 = arith.constant 2 : index
    %c0_20 = arith.constant 0 : index
    %c0_21 = arith.constant 0 : index
    %25 = vector.load %arg3[%c2_19, %c0_20, %c0_21] : memref<9x128x128xbf16, #tpu.memory_space<vmem>>, vector<1x128x128xbf16>
    %26 = vector.shape_cast %25 : vector<1x128x128xbf16> to vector<128x128xbf16>
    %cst_22 = arith.constant dense<0.000000e+00> : vector<64x128xf32>
    %27 = tpu.matmul %24, %26, %cst_22 {dimension_numbers = #tpu.dot_dimension_numbers<[1], [0], [0], [1], [0, 0, 1, 1], [], []>} : vector<64x128xbf16>, vector<128x128xbf16>, vector<64x128xf32> -> vector<64x128xf32>
    %28 = arith.addf %19, %27 : vector<64x128xf32>
    %c1_i32 = arith.constant 1 : i32
    %29 = arith.addi %0, %c1_i32 : i32
    %c0_23 = arith.constant 0 : index
    %c0_24 = arith.constant 0 : index
    %30 = arith.index_cast %29 : i32 to index
    %c0_25 = arith.constant 0 : index
    %c0_26 = arith.constant 0 : index
    %31 = vector.load %arg2[%c0_23, %c0_24, %30, %c0_25, %c0_26] : memref<1x1x10x10x128xbf16, #tpu.memory_space<vmem>>, vector<1x1x8x8x128xbf16>
    %32 = vector.shape_cast %31 : vector<1x1x8x8x128xbf16> to vector<8x8x128xbf16>
    %33 = vector.shape_cast %32 : vector<8x8x128xbf16> to vector<64x128xbf16>
    %c3 = arith.constant 3 : index
    %c0_27 = arith.constant 0 : index
    %c0_28 = arith.constant 0 : index
    %34 = vector.load %arg3[%c3, %c0_27, %c0_28] : memref<9x128x128xbf16, #tpu.memory_space<vmem>>, vector<1x128x128xbf16>
    %35 = vector.shape_cast %34 : vector<1x128x128xbf16> to vector<128x128xbf16>
    %cst_29 = arith.constant dense<0.000000e+00> : vector<64x128xf32>
    %36 = tpu.matmul %33, %35, %cst_29 {dimension_numbers = #tpu.dot_dimension_numbers<[1], [0], [0], [1], [0, 0, 1, 1], [], []>} : vector<64x128xbf16>, vector<128x128xbf16>, vector<64x128xf32> -> vector<64x128xf32>
    %37 = arith.addf %28, %36 : vector<64x128xf32>
    %c1_i32_30 = arith.constant 1 : i32
    %38 = arith.addi %0, %c1_i32_30 : i32
    %c0_31 = arith.constant 0 : index
    %c0_32 = arith.constant 0 : index
    %39 = arith.index_cast %38 : i32 to index
    %c1_33 = arith.constant 1 : index
    %c0_34 = arith.constant 0 : index
    %40 = vector.load %arg2[%c0_31, %c0_32, %39, %c1_33, %c0_34] : memref<1x1x10x10x128xbf16, #tpu.memory_space<vmem>>, vector<1x1x8x8x128xbf16>
    %41 = vector.shape_cast %40 : vector<1x1x8x8x128xbf16> to vector<8x8x128xbf16>
    %42 = vector.shape_cast %41 : vector<8x8x128xbf16> to vector<64x128xbf16>
    %c4 = arith.constant 4 : index
    %c0_35 = arith.constant 0 : index
    %c0_36 = arith.constant 0 : index
    %43 = vector.load %arg3[%c4, %c0_35, %c0_36] : memref<9x128x128xbf16, #tpu.memory_space<vmem>>, vector<1x128x128xbf16>
    %44 = vector.shape_cast %43 : vector<1x128x128xbf16> to vector<128x128xbf16>
    %cst_37 = arith.constant dense<0.000000e+00> : vector<64x128xf32>
    %45 = tpu.matmul %42, %44, %cst_37 {dimension_numbers = #tpu.dot_dimension_numbers<[1], [0], [0], [1], [0, 0, 1, 1], [], []>} : vector<64x128xbf16>, vector<128x128xbf16>, vector<64x128xf32> -> vector<64x128xf32>
    %46 = arith.addf %37, %45 : vector<64x128xf32>
    %c1_i32_38 = arith.constant 1 : i32
    %47 = arith.addi %0, %c1_i32_38 : i32
    %c0_39 = arith.constant 0 : index
    %c0_40 = arith.constant 0 : index
    %48 = arith.index_cast %47 : i32 to index
    %c2_41 = arith.constant 2 : index
    %c0_42 = arith.constant 0 : index
    %49 = vector.load %arg2[%c0_39, %c0_40, %48, %c2_41, %c0_42] : memref<1x1x10x10x128xbf16, #tpu.memory_space<vmem>>, vector<1x1x8x8x128xbf16>
    %50 = vector.shape_cast %49 : vector<1x1x8x8x128xbf16> to vector<8x8x128xbf16>
    %51 = vector.shape_cast %50 : vector<8x8x128xbf16> to vector<64x128xbf16>
    %c5 = arith.constant 5 : index
    %c0_43 = arith.constant 0 : index
    %c0_44 = arith.constant 0 : index
    %52 = vector.load %arg3[%c5, %c0_43, %c0_44] : memref<9x128x128xbf16, #tpu.memory_space<vmem>>, vector<1x128x128xbf16>
    %53 = vector.shape_cast %52 : vector<1x128x128xbf16> to vector<128x128xbf16>
    %cst_45 = arith.constant dense<0.000000e+00> : vector<64x128xf32>
    %54 = tpu.matmul %51, %53, %cst_45 {dimension_numbers = #tpu.dot_dimension_numbers<[1], [0], [0], [1], [0, 0, 1, 1], [], []>} : vector<64x128xbf16>, vector<128x128xbf16>, vector<64x128xf32> -> vector<64x128xf32>
    %55 = arith.addf %46, %54 : vector<64x128xf32>
    %c2_i32 = arith.constant 2 : i32
    %56 = arith.addi %0, %c2_i32 : i32
    %c0_46 = arith.constant 0 : index
    %c0_47 = arith.constant 0 : index
    %57 = arith.index_cast %56 : i32 to index
    %c0_48 = arith.constant 0 : index
    %c0_49 = arith.constant 0 : index
    %58 = vector.load %arg2[%c0_46, %c0_47, %57, %c0_48, %c0_49] : memref<1x1x10x10x128xbf16, #tpu.memory_space<vmem>>, vector<1x1x8x8x128xbf16>
    %59 = vector.shape_cast %58 : vector<1x1x8x8x128xbf16> to vector<8x8x128xbf16>
    %60 = vector.shape_cast %59 : vector<8x8x128xbf16> to vector<64x128xbf16>
    %c6 = arith.constant 6 : index
    %c0_50 = arith.constant 0 : index
    %c0_51 = arith.constant 0 : index
    %61 = vector.load %arg3[%c6, %c0_50, %c0_51] : memref<9x128x128xbf16, #tpu.memory_space<vmem>>, vector<1x128x128xbf16>
    %62 = vector.shape_cast %61 : vector<1x128x128xbf16> to vector<128x128xbf16>
    %cst_52 = arith.constant dense<0.000000e+00> : vector<64x128xf32>
    %63 = tpu.matmul %60, %62, %cst_52 {dimension_numbers = #tpu.dot_dimension_numbers<[1], [0], [0], [1], [0, 0, 1, 1], [], []>} : vector<64x128xbf16>, vector<128x128xbf16>, vector<64x128xf32> -> vector<64x128xf32>
    %64 = arith.addf %55, %63 : vector<64x128xf32>
    %c2_i32_53 = arith.constant 2 : i32
    %65 = arith.addi %0, %c2_i32_53 : i32
    %c0_54 = arith.constant 0 : index
    %c0_55 = arith.constant 0 : index
    %66 = arith.index_cast %65 : i32 to index
    %c1_56 = arith.constant 1 : index
    %c0_57 = arith.constant 0 : index
    %67 = vector.load %arg2[%c0_54, %c0_55, %66, %c1_56, %c0_57] : memref<1x1x10x10x128xbf16, #tpu.memory_space<vmem>>, vector<1x1x8x8x128xbf16>
    %68 = vector.shape_cast %67 : vector<1x1x8x8x128xbf16> to vector<8x8x128xbf16>
    %69 = vector.shape_cast %68 : vector<8x8x128xbf16> to vector<64x128xbf16>
    %c7 = arith.constant 7 : index
    %c0_58 = arith.constant 0 : index
    %c0_59 = arith.constant 0 : index
    %70 = vector.load %arg3[%c7, %c0_58, %c0_59] : memref<9x128x128xbf16, #tpu.memory_space<vmem>>, vector<1x128x128xbf16>
    %71 = vector.shape_cast %70 : vector<1x128x128xbf16> to vector<128x128xbf16>
    %cst_60 = arith.constant dense<0.000000e+00> : vector<64x128xf32>
    %72 = tpu.matmul %69, %71, %cst_60 {dimension_numbers = #tpu.dot_dimension_numbers<[1], [0], [0], [1], [0, 0, 1, 1], [], []>} : vector<64x128xbf16>, vector<128x128xbf16>, vector<64x128xf32> -> vector<64x128xf32>
    %73 = arith.addf %64, %72 : vector<64x128xf32>
    %c2_i32_61 = arith.constant 2 : i32
    %74 = arith.addi %0, %c2_i32_61 : i32
    %c0_62 = arith.constant 0 : index
    %c0_63 = arith.constant 0 : index
    %75 = arith.index_cast %74 : i32 to index
    %c2_64 = arith.constant 2 : index
    %c0_65 = arith.constant 0 : index
    %76 = vector.load %arg2[%c0_62, %c0_63, %75, %c2_64, %c0_65] : memref<1x1x10x10x128xbf16, #tpu.memory_space<vmem>>, vector<1x1x8x8x128xbf16>
    %77 = vector.shape_cast %76 : vector<1x1x8x8x128xbf16> to vector<8x8x128xbf16>
    %78 = vector.shape_cast %77 : vector<8x8x128xbf16> to vector<64x128xbf16>
    %c8 = arith.constant 8 : index
    %c0_66 = arith.constant 0 : index
    %c0_67 = arith.constant 0 : index
    %79 = vector.load %arg3[%c8, %c0_66, %c0_67] : memref<9x128x128xbf16, #tpu.memory_space<vmem>>, vector<1x128x128xbf16>
    %80 = vector.shape_cast %79 : vector<1x128x128xbf16> to vector<128x128xbf16>
    %cst_68 = arith.constant dense<0.000000e+00> : vector<64x128xf32>
    %81 = tpu.matmul %78, %80, %cst_68 {dimension_numbers = #tpu.dot_dimension_numbers<[1], [0], [0], [1], [0, 0, 1, 1], [], []>} : vector<64x128xbf16>, vector<128x128xbf16>, vector<64x128xf32> -> vector<64x128xf32>
    %82 = arith.addf %73, %81 : vector<64x128xf32>
    %c0_69 = arith.constant 0 : index
    %c0_70 = arith.constant 0 : index
    %83 = vector.load %arg4[%c0_69, %c0_70] : memref<64x128xf32, #tpu.memory_space<vmem>>, vector<64x128xf32>
    tpu.vector_store %arg4[%c0_69, %c0_70], %82 {strides = array<i32>} : memref<64x128xf32, #tpu.memory_space<vmem>>, vector<64x128xf32>,
    %cst_71 = arith.constant dense<0.000000e+00> : vector<128xf32>
    %84 = vector.multi_reduction <add>, %82, %cst_71 [0] : vector<64x128xf32> to vector<128xf32>
    %85 = vector.shape_cast %84 : vector<128xf32> to vector<1x128xf32>
    %c0_72 = arith.constant 0 : index
    %c0_73 = arith.constant 0 : index
    %c0_74 = arith.constant 0 : index
    %86 = vector.load %arg5[%c0_72, %c0_73, %c0_74] : memref<1x2x128xf32, #tpu.memory_space<vmem>>, vector<1x1x128xf32>
    %87 = vector.shape_cast %86 : vector<1x1x128xf32> to vector<1x128xf32>
    %88 = vector.shape_cast %85 : vector<1x128xf32> to vector<1x1x128xf32>
    tpu.vector_store %arg5[%c0_72, %c0_73, %c0_74], %88 {strides = array<i32>} : memref<1x2x128xf32, #tpu.memory_space<vmem>>, vector<1x1x128xf32>,
    %89 = arith.mulf %82, %82 : vector<64x128xf32>
    %cst_75 = arith.constant dense<0.000000e+00> : vector<128xf32>
    %90 = vector.multi_reduction <add>, %89, %cst_75 [0] : vector<64x128xf32> to vector<128xf32>
    %91 = vector.shape_cast %90 : vector<128xf32> to vector<1x128xf32>
    %c0_76 = arith.constant 0 : index
    %c1_77 = arith.constant 1 : index
    %c0_78 = arith.constant 0 : index
    %92 = vector.load %arg5[%c0_76, %c1_77, %c0_78] : memref<1x2x128xf32, #tpu.memory_space<vmem>>, vector<1x1x128xf32>
    %93 = vector.shape_cast %92 : vector<1x1x128xf32> to vector<1x128xf32>
    %94 = vector.shape_cast %91 : vector<1x128xf32> to vector<1x1x128xf32>
    tpu.vector_store %arg5[%c0_76, %c1_77, %c0_78], %94 {strides = array<i32>} : memref<1x2x128xf32, #tpu.memory_space<vmem>>, vector<1x1x128xf32>,
    return
  }
  func.func @transform_0(%arg0: i32, %arg1: i32) -> (i32, i32, i32, i32, i32) {
    %c0_i32 = arith.constant 0 : i32
    %c0_i32_0 = arith.constant 0 : i32
    %c0_i32_1 = arith.constant 0 : i32
    %c0_i32_2 = arith.constant 0 : i32
    %c0_i32_3 = arith.constant 0 : i32
    return %arg0, %c0_i32, %c0_i32_0, %c0_i32_1, %c0_i32_2 : i32, i32, i32, i32, i32
  }
  func.func @transform_1(%arg0: i32, %arg1: i32) -> (i32, i32, i32) {
    %c0_i32 = arith.constant 0 : i32
    %c0_i32_0 = arith.constant 0 : i32
    %c0_i32_1 = arith.constant 0 : i32
    %c0_i32_2 = arith.constant 0 : i32
    return %c0_i32, %c0_i32_0, %c0_i32_1 : i32, i32, i32
  }
  func.func @transform_2(%arg0: i32, %arg1: i32) -> (i32, i32) {
    %c1_i32 = arith.constant 1 : i32
    %0 = arith.muli %arg0, %c1_i32 : i32
    %1 = arith.addi %0, %arg1 : i32
    %c0_i32 = arith.constant 0 : i32
    %c0_i32_0 = arith.constant 0 : i32
    return %1, %c0_i32 : i32, i32
  }
  func.func @transform_3(%arg0: i32, %arg1: i32) -> (i32, i32, i32) {
    %c1_i32 = arith.constant 1 : i32
    %0 = arith.muli %arg0, %c1_i32 : i32
    %1 = arith.addi %0, %arg1 : i32
    %c0_i32 = arith.constant 0 : i32
    %c0_i32_0 = arith.constant 0 : i32
    %c0_i32_1 = arith.constant 0 : i32
    return %1, %c0_i32, %c0_i32_0 : i32, i32, i32
  }
}

module attributes {stable_mosaic.version = 11 : i64} {
  func.func @_matmul_stats_kernel(%arg0: i32, %arg1: memref<128x128xbf16, #tpu.memory_space<vmem>>, %arg2: memref<128x128xbf16, #tpu.memory_space<vmem>>, %arg3: memref<128x128xf32, #tpu.memory_space<vmem>>, %arg4: memref<1x2x128xf32, #tpu.memory_space<vmem>>) attributes {dimension_semantics = [#tpu.dimension_semantics<parallel>], iteration_bounds = array<i64: 1>, scalar_prefetch = 0 : i64, scratch_operands = 0 : i64, tpu.core_type = #tpu.core_type<tc>, window_params = [{transform_indices = @transform_0, window_bounds = array<i64: 128, 128>}, {pipeline_mode = #tpu.pipeline_mode<synchronous>, transform_indices = @transform_1, window_bounds = array<i64: 128, 128>}, {transform_indices = @transform_2, window_bounds = array<i64: 128, 128>}, {transform_indices = @transform_3, window_bounds = array<i64: 1, 2, 128>}]} {
    %c0 = arith.constant 0 : index
    %c0_0 = arith.constant 0 : index
    %0 = vector.load %arg1[%c0, %c0_0] : memref<128x128xbf16, #tpu.memory_space<vmem>>, vector<128x128xbf16>
    %c0_1 = arith.constant 0 : index
    %c0_2 = arith.constant 0 : index
    %1 = vector.load %arg2[%c0_1, %c0_2] : memref<128x128xbf16, #tpu.memory_space<vmem>>, vector<128x128xbf16>
    %cst = arith.constant dense<0.000000e+00> : vector<128x128xf32>
    %2 = tpu.matmul %0, %1, %cst {dimension_numbers = #tpu.dot_dimension_numbers<[1], [0], [0], [1], [0, 0, 1, 1], [], []>} : vector<128x128xbf16>, vector<128x128xbf16>, vector<128x128xf32> -> vector<128x128xf32>
    %c0_3 = arith.constant 0 : index
    %c0_4 = arith.constant 0 : index
    %3 = vector.load %arg3[%c0_3, %c0_4] : memref<128x128xf32, #tpu.memory_space<vmem>>, vector<128x128xf32>
    tpu.vector_store %arg3[%c0_3, %c0_4], %2 {strides = array<i32>} : memref<128x128xf32, #tpu.memory_space<vmem>>, vector<128x128xf32>,
    %cst_5 = arith.constant dense<0.000000e+00> : vector<128xf32>
    %4 = vector.multi_reduction <add>, %2, %cst_5 [0] : vector<128x128xf32> to vector<128xf32>
    %5 = vector.shape_cast %4 : vector<128xf32> to vector<1x128xf32>
    %c0_6 = arith.constant 0 : index
    %c0_7 = arith.constant 0 : index
    %c0_8 = arith.constant 0 : index
    %6 = vector.load %arg4[%c0_6, %c0_7, %c0_8] : memref<1x2x128xf32, #tpu.memory_space<vmem>>, vector<1x1x128xf32>
    %7 = vector.shape_cast %6 : vector<1x1x128xf32> to vector<1x128xf32>
    %8 = vector.shape_cast %5 : vector<1x128xf32> to vector<1x1x128xf32>
    tpu.vector_store %arg4[%c0_6, %c0_7, %c0_8], %8 {strides = array<i32>} : memref<1x2x128xf32, #tpu.memory_space<vmem>>, vector<1x1x128xf32>,
    %9 = arith.mulf %2, %2 : vector<128x128xf32>
    %cst_9 = arith.constant dense<0.000000e+00> : vector<128xf32>
    %10 = vector.multi_reduction <add>, %9, %cst_9 [0] : vector<128x128xf32> to vector<128xf32>
    %11 = vector.shape_cast %10 : vector<128xf32> to vector<1x128xf32>
    %c0_10 = arith.constant 0 : index
    %c1 = arith.constant 1 : index
    %c0_11 = arith.constant 0 : index
    %12 = vector.load %arg4[%c0_10, %c1, %c0_11] : memref<1x2x128xf32, #tpu.memory_space<vmem>>, vector<1x1x128xf32>
    %13 = vector.shape_cast %12 : vector<1x1x128xf32> to vector<1x128xf32>
    %14 = vector.shape_cast %11 : vector<1x128xf32> to vector<1x1x128xf32>
    tpu.vector_store %arg4[%c0_10, %c1, %c0_11], %14 {strides = array<i32>} : memref<1x2x128xf32, #tpu.memory_space<vmem>>, vector<1x1x128xf32>,
    return
  }
  func.func @transform_0(%arg0: i32) -> (i32, i32) {
    %c0_i32 = arith.constant 0 : i32
    %c0_i32_0 = arith.constant 0 : i32
    return %arg0, %c0_i32 : i32, i32
  }
  func.func @transform_1(%arg0: i32) -> (i32, i32) {
    %c0_i32 = arith.constant 0 : i32
    %c0_i32_0 = arith.constant 0 : i32
    %c0_i32_1 = arith.constant 0 : i32
    return %c0_i32, %c0_i32_0 : i32, i32
  }
  func.func @transform_2(%arg0: i32) -> (i32, i32) {
    %c0_i32 = arith.constant 0 : i32
    %c0_i32_0 = arith.constant 0 : i32
    return %arg0, %c0_i32 : i32, i32
  }
  func.func @transform_3(%arg0: i32) -> (i32, i32, i32) {
    %c0_i32 = arith.constant 0 : i32
    %c0_i32_0 = arith.constant 0 : i32
    %c0_i32_1 = arith.constant 0 : i32
    return %arg0, %c0_i32, %c0_i32_0 : i32, i32, i32
  }
}

module attributes {stable_mosaic.version = 11 : i64} {
  func.func @_bn_apply_res_kernel(%arg0: i32, %arg1: memref<128x128xf32, #tpu.memory_space<vmem>>, %arg2: memref<1x128xf32, #tpu.memory_space<vmem>>, %arg3: memref<1x128xf32, #tpu.memory_space<vmem>>, %arg4: memref<128x128xf32, #tpu.memory_space<vmem>>, %arg5: memref<1x128xf32, #tpu.memory_space<vmem>>, %arg6: memref<1x128xf32, #tpu.memory_space<vmem>>, %arg7: memref<128x128xf32, #tpu.memory_space<vmem>>) attributes {dimension_semantics = [#tpu.dimension_semantics<parallel>], iteration_bounds = array<i64: 1>, scalar_prefetch = 0 : i64, scratch_operands = 0 : i64, tpu.core_type = #tpu.core_type<tc>, window_params = [{transform_indices = @transform_0, window_bounds = array<i64: 128, 128>}, {pipeline_mode = #tpu.pipeline_mode<synchronous>, transform_indices = @transform_1, window_bounds = array<i64: 1, 128>}, {pipeline_mode = #tpu.pipeline_mode<synchronous>, transform_indices = @transform_2, window_bounds = array<i64: 1, 128>}, {transform_indices = @transform_3, window_bounds = array<i64: 128, 128>}, {pipeline_mode = #tpu.pipeline_mode<synchronous>, transform_indices = @transform_4, window_bounds = array<i64: 1, 128>}, {pipeline_mode = #tpu.pipeline_mode<synchronous>, transform_indices = @transform_5, window_bounds = array<i64: 1, 128>}, {transform_indices = @transform_6, window_bounds = array<i64: 128, 128>}]} {
    %c0 = arith.constant 0 : index
    %c0_0 = arith.constant 0 : index
    %0 = vector.load %arg1[%c0, %c0_0] : memref<128x128xf32, #tpu.memory_space<vmem>>, vector<128x128xf32>
    %c0_1 = arith.constant 0 : index
    %c0_2 = arith.constant 0 : index
    %1 = vector.load %arg2[%c0_1, %c0_2] : memref<1x128xf32, #tpu.memory_space<vmem>>, vector<1x128xf32>
    %2 = vector.broadcast %1 : vector<1x128xf32> to vector<128x128xf32>
    %3 = arith.mulf %0, %2 : vector<128x128xf32>
    %c0_3 = arith.constant 0 : index
    %c0_4 = arith.constant 0 : index
    %4 = vector.load %arg3[%c0_3, %c0_4] : memref<1x128xf32, #tpu.memory_space<vmem>>, vector<1x128xf32>
    %5 = vector.broadcast %4 : vector<1x128xf32> to vector<128x128xf32>
    %6 = arith.addf %3, %5 : vector<128x128xf32>
    %c0_5 = arith.constant 0 : index
    %c0_6 = arith.constant 0 : index
    %7 = vector.load %arg4[%c0_5, %c0_6] : memref<128x128xf32, #tpu.memory_space<vmem>>, vector<128x128xf32>
    %c0_7 = arith.constant 0 : index
    %c0_8 = arith.constant 0 : index
    %8 = vector.load %arg5[%c0_7, %c0_8] : memref<1x128xf32, #tpu.memory_space<vmem>>, vector<1x128xf32>
    %9 = vector.broadcast %8 : vector<1x128xf32> to vector<128x128xf32>
    %10 = arith.mulf %7, %9 : vector<128x128xf32>
    %11 = arith.addf %6, %10 : vector<128x128xf32>
    %c0_9 = arith.constant 0 : index
    %c0_10 = arith.constant 0 : index
    %12 = vector.load %arg6[%c0_9, %c0_10] : memref<1x128xf32, #tpu.memory_space<vmem>>, vector<1x128xf32>
    %13 = vector.broadcast %12 : vector<1x128xf32> to vector<128x128xf32>
    %14 = arith.addf %11, %13 : vector<128x128xf32>
    %cst = arith.constant 0.000000e+00 : f32
    %15 = vector.broadcast %cst : f32 to vector<128x128xf32>
    %16 = arith.maximumf %14, %15 : vector<128x128xf32>
    %c0_11 = arith.constant 0 : index
    %c0_12 = arith.constant 0 : index
    %17 = vector.load %arg7[%c0_11, %c0_12] : memref<128x128xf32, #tpu.memory_space<vmem>>, vector<128x128xf32>
    tpu.vector_store %arg7[%c0_11, %c0_12], %16 {strides = array<i32>} : memref<128x128xf32, #tpu.memory_space<vmem>>, vector<128x128xf32>,
    return
  }
  func.func @transform_0(%arg0: i32) -> (i32, i32) {
    %c0_i32 = arith.constant 0 : i32
    %c0_i32_0 = arith.constant 0 : i32
    return %arg0, %c0_i32 : i32, i32
  }
  func.func @transform_1(%arg0: i32) -> (i32, i32) {
    %c0_i32 = arith.constant 0 : i32
    %c0_i32_0 = arith.constant 0 : i32
    %c0_i32_1 = arith.constant 0 : i32
    return %c0_i32, %c0_i32_0 : i32, i32
  }
  func.func @transform_2(%arg0: i32) -> (i32, i32) {
    %c0_i32 = arith.constant 0 : i32
    %c0_i32_0 = arith.constant 0 : i32
    %c0_i32_1 = arith.constant 0 : i32
    return %c0_i32, %c0_i32_0 : i32, i32
  }
  func.func @transform_3(%arg0: i32) -> (i32, i32) {
    %c0_i32 = arith.constant 0 : i32
    %c0_i32_0 = arith.constant 0 : i32
    return %arg0, %c0_i32 : i32, i32
  }
  func.func @transform_4(%arg0: i32) -> (i32, i32) {
    %c0_i32 = arith.constant 0 : i32
    %c0_i32_0 = arith.constant 0 : i32
    %c0_i32_1 = arith.constant 0 : i32
    return %c0_i32, %c0_i32_0 : i32, i32
  }
  func.func @transform_5(%arg0: i32) -> (i32, i32) {
    %c0_i32 = arith.constant 0 : i32
    %c0_i32_0 = arith.constant 0 : i32
    %c0_i32_1 = arith.constant 0 : i32
    return %c0_i32, %c0_i32_0 : i32, i32
  }
  func.func @transform_6(%arg0: i32) -> (i32, i32) {
    %c0_i32 = arith.constant 0 : i32
    %c0_i32_0 = arith.constant 0 : i32
    return %arg0, %c0_i32 : i32, i32
  }
}

</mosaic_0001>

<bundles_post_ra>
// kernel: special_block.7
= control target key start
LH: loop header
LB: loop body
LE: loop exit
PB: predicated region body
PF: predicated region fallthrough
CT: control target
= control target key end

     0   :  { %s287_s0 = inlined_call_operand.vmem [shape: f32[128,128], index: 0, kind: input, shape index: {}]   ;;  %s288_s1 = inlined_call_operand.vmem [shape: f32[1,128], index: 1, kind: input, shape index: {}]   ;;  %s289_s2 = inlined_call_operand.vmem [shape: f32[1,128], index: 2, kind: input, shape index: {}]   ;;  %s290_s3 = inlined_call_operand.vmem [shape: bf16[128,128], index: 3, kind: output, shape index: {}]  }
   0x1   :  { %v14_v0 = vld [vmem:[%s287_s0] sm:$0xff]  ;;  %v15_v1 = vld [vmem:[%s287_s0 + $0x8] sm:$0xff]  ;;  %v16_v4 = vld [vmem:[%s287_s0 + $0x10] sm:$0xff] }
   0x2   :  { %v169_v2 = vld [vmem:[%s288_s1] ss:$0 sm:$0xff]  ;;  %v17_v5 = vld [vmem:[%s287_s0 + $0x18] sm:$0xff]  ;;  %v19_v11 = vld [vmem:[%s287_s0 + $0x28] sm:$0xff] }
   0x3   :  { %v203_v3 = vld [vmem:[%s289_s2] ss:$0 sm:$0xff]  ;;  %v34_v7 = vmul.f32 %v169_v2, %v14_v0  ;;  %v35_v8 = vmul.f32 %v169_v2, %v15_v1  ;;  %v36_v9 = vmul.f32 %v169_v2, %v16_v4  ;;  %v37_v10 = vmul.f32 %v169_v2, %v17_v5  ;;  %v20_v12 = vld [vmem:[%s287_s0 + $0x30] sm:$0xff]  ;;  %v21_v13 = vld [vmem:[%s287_s0 + $0x38] sm:$0xff] }
   0x4   :  { %v18_v6 = vld [vmem:[%s287_s0 + $0x20] sm:$0xff]  ;;  %v39_v15 = vmul.f32 %v169_v2, %v19_v11  ;;  %v40_v16 = vmul.f32 %v169_v2, %v20_v12  ;;  %v41_v17 = vmul.f32 %v169_v2, %v21_v13  ;;  %v23_v27 = vld [vmem:[%s287_s0 + $0x48] sm:$0xff]  ;;  %v24_v32 = vld [vmem:[%s287_s0 + $0x50] sm:$0xff] }
   0x5   :  { %v38_v14 = vmul.f32 %v169_v2, %v18_v6  ;;  %v54_v18 = vadd.f32 %v203_v3, %v34_v7  ;;  %v55_v19 = vadd.f32 %v203_v3, %v35_v8  ;;  %v56_v20 = vadd.f32 %v203_v3, %v36_v9  ;;  %v22_v26 = vld [vmem:[%s287_s0 + $0x40] sm:$0xff]  ;;  %v25_v33 = vld [vmem:[%s287_s0 + $0x58] sm:$0xff]  ;;  %v27_v39 = vld [vmem:[%s287_s0 + $0x68] sm:$0xff] }
   0x6   :  { %v57_v21 = vadd.f32 %v203_v3, %v37_v10  ;;  %v59_v23 = vadd.f32 %v203_v3, %v39_v15  ;;  %v60_v24 = vadd.f32 %v203_v3, %v40_v16  ;;  %v61_v25 = vadd.f32 %v203_v3, %v41_v17  ;;  %v26_v38 = vld [vmem:[%s287_s0 + $0x60] sm:$0xff]  ;;  %v28_v44 = vld [vmem:[%s287_s0 + $0x70] sm:$0xff]  ;;  %v29_v45 = vld [vmem:[%s287_s0 + $0x78] sm:$0xff] }
   0x7   :  { %v58_v22 = vadd.f32 %v203_v3, %v38_v14  ;;  %v70_v28 = vmax.f32 %v54_v18, 0.0  ;;  %v71_v29 = vmax.f32 %v55_v19, 0.0  ;;  %v72_v30 = vmax.f32 %v56_v20, 0.0 }
   0x8   :  { %v73_v31 = vmax.f32 %v57_v21, 0.0  ;;  %v75_v35 = vmax.f32 %v59_v23, 0.0  ;;  %v76_v36 = vmax.f32 %v60_v24, 0.0  ;;  %v77_v37 = vmax.f32 %v61_v25, 0.0 }
   0x9   :  { %v74_v34 = vmax.f32 %v58_v22, 0.0  ;;  %v125_v40 = vpack.c.bf16 %v71_v29, %v70_v28  ;;  %v42_v42 = vmul.f32 %v169_v2, %v22_v26  ;;  %v43_v43 = vmul.f32 %v169_v2, %v23_v27 }
   0xa   :  { %v130_v41 = vpack.c.bf16 %v73_v31, %v72_v30  ;;  %v140_v47 = vpack.c.bf16 %v77_v37, %v76_v36  ;;  %v44_v48 = vmul.f32 %v169_v2, %v24_v32  ;;  %v45_v49 = vmul.f32 %v169_v2, %v25_v33 }
   0xb   :  { %v135_v46 = vpack.c.bf16 %v75_v35, %v74_v34  ;;  %126 = vst [vmem:[%s290_s3] sm:$0xff] %v125_v40   ;;  %v62_v50 = vadd.f32 %v203_v3, %v42_v42  ;;  %v63_v51 = vadd.f32 %v203_v3, %v43_v43  ;;  %v46_v52 = vmul.f32 %v169_v2, %v26_v38 }
   0xc   :  { %v47_v53 = vmul.f32 %v169_v2, %v27_v39  ;;  %162 = vst [vmem:[%s290_s3 + $0x8] sm:$0xff] %v130_v41   ;;  %v64_v54 = vadd.f32 %v203_v3, %v44_v48  ;;  %v65_v55 = vadd.f32 %v203_v3, %v45_v49  ;;  %v48_v56 = vmul.f32 %v169_v2, %v28_v44 }
   0xd   :  { %v49_v57 = vmul.f32 %v169_v2, %v29_v45  ;;  %163 = vst [vmem:[%s290_s3 + $0x10] sm:$0xff] %v135_v46   ;;  %v78_v58 = vmax.f32 %v62_v50, 0.0  ;;  %v79_v59 = vmax.f32 %v63_v51, 0.0  ;;  %v66_v60 = vadd.f32 %v203_v3, %v46_v52 }
   0xe   :  { %v67_v61 = vadd.f32 %v203_v3, %v47_v53  ;;  %164 = vst [vmem:[%s290_s3 + $0x18] sm:$0xff] %v140_v47   ;;  %v80_v62 = vmax.f32 %v64_v54, 0.0  ;;  %v81_v63 = vmax.f32 %v65_v55, 0.0  ;;  %v68_v0 = vadd.f32 %v203_v3, %v48_v56 }
   0xf   :  { %v69_v1 = vadd.f32 %v203_v3, %v49_v57  ;;  %v145_v2 = vpack.c.bf16 %v79_v59, %v78_v58  ;;  %v82_v4 = vmax.f32 %v66_v60, 0.0 }
  0x10   :  { %v83_v5 = vmax.f32 %v67_v61, 0.0  ;;  %v150_v6 = vpack.c.bf16 %v81_v63, %v80_v62  ;;  %v84_v7 = vmax.f32 %v68_v0, 0.0 }
  0x11   :  { %v85_v8 = vmax.f32 %v69_v1, 0.0  ;;  %165 = vst [vmem:[%s290_s3 + $0x20] sm:$0xff] %v145_v2  }
  0x12   :  { %v155_v9 = vpack.c.bf16 %v83_v5, %v82_v4  ;;  %166 = vst [vmem:[%s290_s3 + $0x28] sm:$0xff] %v150_v6  }
  0x13   :  { %v160_v10 = vpack.c.bf16 %v85_v8, %v84_v7 }
  0x14   :  { %167 = vst [vmem:[%s290_s3 + $0x30] sm:$0xff] %v155_v9  }
  0x15   :  { %168 = vst [vmem:[%s290_s3 + $0x38] sm:$0xff] %v160_v10  }

// kernel: special_block.6
= control target key start
LH: loop header
LB: loop body
LE: loop exit
PB: predicated region body
PF: predicated region fallthrough
CT: control target
= control target key end

     0   :  { %s2698_s12 = smov 0   ;;  %s2700_s13 = smov 0   ;;  %s3164_s0 = inlined_call_operand.vmem [shape: bf16[2,4,9,9,128], index: 0, kind: input, shape index: {}]   ;;  %s3165_s1 = inlined_call_operand.vmem [shape: bf16[9,128,128], index: 1, kind: input, shape index: {}]   ;;  %s3166_s2 = inlined_call_operand.vmem [shape: f32[128,128], index: 2, kind: output, shape index: {0}]   ;;  %s3167_s3 = inlined_call_operand.vmem [shape: f32[2,2,128], index: 3, kind: output, shape index: {1}]  }
   0x1   :  { %s2702_s14 = smov 0  }
   0x2 LB: > { %s26_s15 = sadd.s32 1, %s2672_s13  ;;  %p1926_p0 = scmp.ge.s32.totalorder %s2676_s14, 1  ;;  %s2676_s14 = sphi %s2702_s14, %s14_s14   ;;  %s2672_s13 = sphi %s2700_s13, %s3171_s13   ;;  %s2668_s12 = sphi %s2698_s12, %s3170_s12  }
   0x3   : > { %p28_p1 = scmp.ge.s32.totalorder %s26_s15, 2  ;;  %p156_p2 = scmp.lt.s32.totalorder %s2676_s14, 3 }
   0x5   : > { %s3173_s15 = smov (%p28_p1, %s26_s15), 0  ;;  %p157_p3 = pnand %p1926_p0, %p156_p2 }
   0x6   : > { %p186_p4 = scmp.lt.s32.totalorder (!%p157_p3), %s2668_s12, 1 }
   0x7   : > { %160 = sbr.rel (%p157_p3) target bundleno = 347 (0x15b), region = 28 }
   0xc   : > { %v2540_v0 = vld [vmem:[%s3165_s1 + $0x78] sm:$0xff]  ;;  %v2539_v2 = vld [vmem:[%s3165_s1 + $0x70] sm:$0xff]  ;;  %s2729_s22 = scalar_select %p186_p4, %s2668_s12, 1  ;;  %v2538_v6 = vld [vmem:[%s3165_s1 + $0x68] sm:$0xff]  ;;  %vm479_vm0 = vsmask.f32 3328 }
   0xd   : > { %v2548_v1 = vld [vmem:[%s3165_s1 + $0xb8] sm:$0xff]  ;;  %2613 = vmatpush.bf16.msra.mxu1 %v2540_v0  ;;  %333 = vmatpush.bf16.msra.mxu0 %v2540_v0  ;;  %v2547_v3 = vld [vmem:[%s3165_s1 + $0xb0] sm:$0xff]  ;;  %v2546_v7 = vld [vmem:[%s3165_s1 + $0xa8] sm:$0xff]  ;;  %vm480_vm1 = vsmask.f32 7440 }
   0xe   : > { %675 = vmatpush.bf16.msra.mxu2 %v2548_v1  ;;  %v2560_v4 = vld [vmem:[%s3165_s1 + $0xf8] sm:$0xff]  ;;  %s2629_s27 = smul.u32 288, %s2729_s22  ;;  %v2559_v5 = vld [vmem:[%s3165_s1 + $0xf0] sm:$0xff]  ;;  %v2558_v8 = vld [vmem:[%s3165_s1 + $0xe8] sm:$0xff]  ;;  %s1930_s19 = sshll.u32 %s2729_s22, 1 }
   0xf   : > { %812 = vmatpush.bf16.msra.mxu3 %v2560_v4  ;;  %v2537_v10 = vld [vmem:[%s3165_s1 + $0x60] sm:$0xff]  ;;  %v2536_v23 = vld [vmem:[%s3165_s1 + $0x58] sm:$0xff]  ;;  %v2535_v31 = vld [vmem:[%s3165_s1 + $0x50] sm:$0xff]  ;;  %s203_s23 = scalar_lea.vmem %s3167_s3, %s1930_s19 }
  0x10   : > { %s2747_s7 = scalar_lea.vmem %s3164_s0, %s2629_s27  ;;  %v2545_v12 = vld [vmem:[%s3165_s1 + $0xa0] sm:$0xff]  ;;  %v2544_v25 = vld [vmem:[%s3165_s1 + $0x98] sm:$0xff]  ;;  %v2543_v34 = vld [vmem:[%s3165_s1 + $0x90] sm:$0xff] }
  0x11   : > { %2614 = vmatpush.bf16.msra.mxu1 %v2539_v2  ;;  %334 = vmatpush.bf16.msra.mxu0 %v2539_v2  ;;  %v463_v9 = vld [vmem:[%s2747_s7] sm:$0xf]  ;;  %v465_v11 = vld [vmem:[%s2747_s7 + $0x8] sm:$0xf]  ;;  %v464_v16 = vld [vmem:[%s2747_s7 + $0x4] sm:$0x1] }
  0x12   : > { %676 = vmatpush.bf16.msra.mxu2 %v2547_v3  ;;  %v483_v13 = vshrl.u32 %v463_v9, 16  ;;  %v486_v14 = vshll.u32 %v463_v9, 16  ;;  %v497_v15 = vshrl.u32 %v465_v11, 16  ;;  %v466_v17 = vld [vmem:[%s2747_s7 + $0xc] sm:$0x1]  ;;  %v500_v18 = vshll.u32 %v465_v11, 16  ;;  %vm2785_vm2 = vmor %vm479_vm0, %vm480_vm1 }
  0x13   : > { %813 = vmatpush.bf16.msra.mxu3 %v2559_v5  ;;  %v2557_v19 = vld [vmem:[%s3165_s1 + $0xe0] sm:$0xff]  ;;  %v492_v27 = vshll.u32 %v464_v16, 16  ;;  %v506_v28 = vshll.u32 %v466_v17, 16  ;;  %v2556_v30 = vld [vmem:[%s3165_s1 + $0xd8] sm:$0xff]  ;;  %v467_v32 = vld [vmem:[%s2747_s7 + $0x10] sm:$0xf] }
  0x14   : > { %v485_v20 = vrot.slane %v483_v13, 4  ;;  %v488_v21 = vrot.slane %v486_v14, 5  ;;  %v499_v22 = vrot.slane %v497_v15, 4  ;;  %v502_v24 = vrot.slane %v500_v18, 5  ;;  %v469_v33 = vld [vmem:[%s2747_s7 + $0x18] sm:$0xf] }
  0x15   : > { %2615 = vmatpush.bf16.msra.mxu1 %v2538_v6  ;;  %335 = vmatpush.bf16.msra.mxu0 %v2538_v6  ;;  %v494_v36 = vrot.slane %v492_v27, 5  ;;  %v508_v38 = vrot.slane %v506_v28, 5  ;;  %v2555_v40 = vld [vmem:[%s3165_s1 + $0xd0] sm:$0xff]  ;;  %v511_v41 = vshrl.u32 %v467_v32, 16  ;;  %v514_v42 = vshll.u32 %v467_v32, 16  ;;  %v2534_v45 = vld [vmem:[%s3165_s1 + $0x48] sm:$0xff] }
  0x16   : > { %677 = vmatpush.bf16.msra.mxu2 %v2546_v7  ;;  %v489_v26 = vor.u32 %v488_v21, %v485_v20  ;;  %v503_v29 = vor.u32 %v502_v24, %v499_v22  ;;  %v525_v43 = vshrl.u32 %v469_v33, 16  ;;  %v528_v44 = vshll.u32 %v469_v33, 16  ;;  %v2542_v46 = vld [vmem:[%s3165_s1 + $0x88] sm:$0xff]  ;;  %v2533_v49 = vld [vmem:[%s3165_s1 + $0x40] sm:$0xff]  ;;  %v2531_v51 = vld [vmem:[%s2747_s7 + $0x6c] sm:$0xf0] }
  0x17   : > { %814 = vmatpush.bf16.msra.mxu3 %v2558_v8  ;;  %v1965_v50 = vld [vmem:[%s2747_s7 + $0x68] sm:$0xf]  ;;  %v468_v53 = vld [vmem:[%s2747_s7 + $0x14] sm:$0x1]  ;;  %v513_v54 = vrot.slane %v511_v41, 4  ;;  %v516_v55 = vrot.slane %v514_v42, 5 }
  0x18   : > { %v490_v35 = vrot.slane %v489_v26, 4  ;;  %v504_v37 = vrot.slane %v503_v29, 4  ;;  %v2554_v52 = vld [vmem:[%s3165_s1 + $0xc8] sm:$0xff]  ;;  %v527_v56 = vrot.slane %v525_v43, 4  ;;  %v530_v57 = vrot.slane %v528_v44, 5  ;;  %v2528_v63 = vld [vmem:[%s3165_s1 + $0x38] sm:$0xff] }
  0x19   : > { %2616 = vmatpush.bf16.msra.mxu1 %v2537_v10  ;;  %336 = vmatpush.bf16.msra.mxu0 %v2537_v10  ;;  %v1957_v58 = vld [vmem:[%s2747_s7 + $0x48] sm:$0xf]  ;;  %v2529_v59 = vld [vmem:[%s2747_s7 + $0x4c] sm:$0xf0]  ;;  %v470_v62 = vld [vmem:[%s2747_s7 + $0x1c] sm:$0x1]  ;;  %v1966_v1 = vor.u32 %v2531_v51, %v1965_v50  ;;  %v517_v6 = vor.u32 %v516_v55, %v513_v54 }
  0x1a   : > { %678 = vmatpush.bf16.msra.mxu2 %v2545_v12  ;;  %v495_v47 = vsel %vm2785_vm2, %v490_v35, %v494_v36  ;;  %v509_v48 = vsel %vm2785_vm2, %v504_v37, %v508_v38  ;;  %v2541_v0 = vld [vmem:[%s3165_s1 + $0x80] sm:$0xff]  ;;  %v2572_v2 = vld [vmem:[%s3165_s1 + $0x138] sm:$0xff]  ;;  %v520_v4 = vshll.u32 %v468_v53, 16  ;;  %v1958_v5 = vor.u32 %v2529_v59, %v1957_v58  ;;  %v2125_v11 = vld [vmem:[%s2747_s7 + $0x90] sm:$0xf] }
  0x1b   : > { %815 = vmatpush.bf16.msra.mxu3 %v2557_v19  ;;  %v611_v60 = vunpack.c.l.b16 %v495_v47  ;;  %v612_v61 = vunpack.c.l.b16 %v509_v48  ;;  %v2592_v3 = vld [vmem:[%s3165_s1 + $0x1b8] sm:$0xff]  ;;  %v531_v7 = vor.u32 %v530_v57, %v527_v56  ;;  %v534_v8 = vshll.u32 %v470_v62, 16  ;;  %v2553_v10 = vld [vmem:[%s3165_s1 + $0xc0] sm:$0xff]  ;;  %v2527_v13 = vld [vmem:[%s3165_s1 + $0x30] sm:$0xff] }
  0x1c   : > { %v2549_v12 = vld [vmem:[%s2747_s7 + $0x94] sm:$0xf0]  ;;  %v2571_v15 = vld [vmem:[%s3165_s1 + $0x130] sm:$0xff]  ;;  %v522_v16 = vrot.slane %v520_v4, 5  ;;  %v518_v19 = vrot.slane %v517_v6, 4  ;;  %v2526_v22 = vld [vmem:[%s3165_s1 + $0x28] sm:$0xff] }
  0x1d   : > { %2617 = vmatpush.bf16.msra.mxu1 %v2536_v23  ;;  %337 = vmatpush.bf16.msra.mxu0 %v2536_v23  ;;  %v619_v9 = vpack.c.b16 %v612_v61, %v611_v60  ;;  %v2604_v14 = vld [vmem:[%s3165_s1 + $0x1f8] sm:$0xff]  ;;  %v2591_v17 = vld [vmem:[%s3165_s1 + $0x1b0] sm:$0xff]  ;;  %v2126_v18 = vor.u32 %v2549_v12, %v2125_v11  ;;  %v532_v20 = vrot.slane %v531_v7, 4  ;;  %v536_v21 = vrot.slane %v534_v8, 5  ;;  %v471_v24 = vld [vmem:[%s2747_s7 + $0x20] sm:$0xf] }
  0x1e   : > { %679 = vmatpush.bf16.msra.mxu2 %v2544_v25  ;;  %v2603_v23 = vld [vmem:[%s3165_s1 + $0x1f0] sm:$0xff]  ;;  %v473_v25 = vld [vmem:[%s2747_s7 + $0x28] sm:$0xf]  ;;  %v523_v28 = vsel %vm2785_vm2, %v518_v19, %v522_v16  ;;  %v2569_v36 = vld [vmem:[%s3165_s1 + $0x120] sm:$0xff] }
  0x1f   : > { %816 = vmatpush.bf16.msra.mxu3 %v2556_v30  ;;  %v2570_v26 = vld [vmem:[%s3165_s1 + $0x128] sm:$0xff]  ;;  %v537_v29 = vsel %vm2785_vm2, %v532_v20, %v536_v21  ;;  %v539_v30 = vshrl.u32 %v471_v24, 16  ;;  %v553_v32 = vshrl.u32 %v473_v25, 16  ;;  %v556_v33 = vshll.u32 %v473_v25, 16  ;;  %v2589_v37 = vld [vmem:[%s3165_s1 + $0x1a0] sm:$0xff]  ;;  %v2523_v62 = vld [vmem:[%s3165_s1 + $0x10] sm:$0xff] }
  0x20   : > { %v2590_v27 = vld [vmem:[%s3165_s1 + $0x1a8] sm:$0xff]  ;;  %v1969_v38 = vld [vmem:[%s2747_s7 + $0x78] sm:$0xf]  ;;  %v613_v42 = vunpack.c.l.b16 %v523_v28  ;;  %v614_v43 = vunpack.c.l.b16 %v537_v29  ;;  %v2530_v44 = vld [vmem:[%s2747_s7 + $0x5c] sm:$0xf0] }
  0x21   : > { %2618 = vmatpush.bf16.msra.mxu1 %v2535_v31  ;;  %338 = vmatpush.bf16.msra.mxu0 %v2535_v31  ;;  %v542_v31 = vshll.u32 %v471_v24, 16  ;;  %v2602_v35 = vld [vmem:[%s3165_s1 + $0x1e8] sm:$0xff]  ;;  %v1961_v41 = vld [vmem:[%s2747_s7 + $0x58] sm:$0xf]  ;;  %v555_v47 = vrot.slane %v553_v32, 4  ;;  %v558_v48 = vrot.slane %v556_v33, 5 }
  0x22   : > { %680 = vmatpush.bf16.msra.mxu2 %v2543_v34  ;;  %v2525_v34 = vld [vmem:[%s3165_s1 + $0x20] sm:$0xff]  ;;  %v474_v51 = vld [vmem:[%s2747_s7 + $0x2c] sm:$0x1]  ;;  %v1962_v54 = vor.u32 %v2530_v44, %v1961_v41  ;;  %v620_v55 = vpack.c.b16 %v614_v43, %v613_v42  ;;  %v2550_v57 = vld [vmem:[%s2747_s7 + $0xa4] sm:$0xf0] }
  0x23   : > { %817 = vmatpush.bf16.msra.mxu3 %v2555_v40  ;;  %v2532_v40 = vld [vmem:[%s2747_s7 + $0x7c] sm:$0xf0]  ;;  %v472_v50 = vld [vmem:[%s2747_s7 + $0x24] sm:$0x1]  ;;  %v559_v60 = vor.u32 %v558_v48, %v555_v47  ;;  %v562_v61 = vshll.u32 %v474_v51, 16  ;;  %v2522_v6 = vld [vmem:[%s3165_s1 + $0x8] sm:$0xff] }
  0x24   : > { %v1970_v53 = vor.u32 %v2532_v40, %v1969_v38  ;;  %v2129_v56 = vld [vmem:[%s2747_s7 + $0xa0] sm:$0xf]  ;;  %v548_v59 = vshll.u32 %v472_v50, 16  ;;  %v2566_v7 = vld [vmem:[%s3165_s1 + $0x108] sm:$0xff]  ;;  %v2587_v11 = vld [vmem:[%s3165_s1 + $0x190] sm:$0xff] }
  0x25   : > { %2619 = vmatpush.bf16.msra.mxu1 %v2534_v45  ;;  %339 = vmatpush.bf16.msra.mxu0 %v2534_v45  ;;  %v541_v45 = vrot.slane %v539_v30, 4  ;;  %v560_v4 = vrot.slane %v559_v60, 4  ;;  %v2601_v8 = vld [vmem:[%s3165_s1 + $0x1e0] sm:$0xff]  ;;  %v2580_v20 = vld [vmem:[%s3165_s1 + $0x178] sm:$0xff]  ;;  %v2517_v24 = vld [vmem:[%s2747_s7 + $0x4] sm:$0xf0] }
  0x26   : > { %681 = vmatpush.bf16.msra.mxu2 %v2542_v46  ;;  %v544_v46 = vrot.slane %v542_v31, 5  ;;  %v2565_v21 = vld [vmem:[%s3165_s1 + $0x100] sm:$0xff]  ;;  %v2197_v25 = vld [vmem:[%s2747_s7 + $0xd8] sm:$0xf]  ;;  %v2579_v33 = vld [vmem:[%s3165_s1 + $0x170] sm:$0xff] }
  0x27   : > { %818 = vmatpush.bf16.msra.mxu3 %v2554_v52  ;;  %v2568_v52 = vld [vmem:[%s3165_s1 + $0x118] sm:$0xff]  ;;  %v2133_v40 = vld [vmem:[%s2747_s7 + $0xb0] sm:$0xf]  ;;  %v2578_v47 = vld [vmem:[%s3165_s1 + $0x168] sm:$0xff] }
  0x28   : > { %v545_v58 = vor.u32 %v544_v46, %v541_v45  ;;  %v2551_v41 = vld [vmem:[%s2747_s7 + $0xb4] sm:$0xf0]  ;;  %v2611_v42 = vld [vmem:[%s3165_s1 + $0x230] sm:$0xff]  ;;  %v2586_v48 = vld [vmem:[%s3165_s1 + $0x188] sm:$0xff] }
  0x29   : > { %2620 = vmatpush.bf16.msra.mxu1 %v2533_v49  ;;  %340 = vmatpush.bf16.msra.mxu0 %v2533_v49  ;;  %v2524_v49 = vld [vmem:[%s3165_s1 + $0x18] sm:$0xff]  ;;  %v2610_v50 = vld [vmem:[%s3165_s1 + $0x228] sm:$0xff] }
  0x2a   : > { %682 = vmatpush.bf16.msra.mxu2 %v2541_v0  ;;  %v2130_v0 = vor.u32 %v2550_v57, %v2129_v56  ;;  %v2599_v56 = vld [vmem:[%s3165_s1 + $0x1d0] sm:$0xff]  ;;  %v2577_v57 = vld [vmem:[%s3165_s1 + $0x160] sm:$0xff] }
  0x2b   : > { %819 = vmatpush.bf16.msra.mxu3 %v2553_v10  ;;  %v477_v10 = vld [vmem:[%s2747_s7 + $0x38] sm:$0xf] }
  0x2c   : > { %351 = vmatmul.bf16.vlgmr.msra.gmra.mxu1 %v1966_v1  ;;  %341 = vmatmul.bf16.vlgmr.msra.gmra.mxu0 %v1958_v5  ;;  %v2588_v1 = vld [vmem:[%s3165_s1 + $0x198] sm:$0xff]  ;;  %v564_v5 = vrot.slane %v562_v61, 5  ;;  %v584_v19 = vshll.u32 %v477_v10, 16 }
  0x2d   : > { %434 = vmatpush.bf16.msrb.mxu1 %v2528_v63  ;;  %949 = vmatpush.bf16.msrb.mxu0 %v2572_v2  ;;  %v2567_v63 = vld [vmem:[%s3165_s1 + $0x110] sm:$0xff]  ;;  %v546_v2 = vrot.slane %v545_v58, 4  ;;  %v2609_v58 = vld [vmem:[%s3165_s1 + $0x220] sm:$0xff] }
  0x2e   : > { %1333 = vmatpush.bf16.msrb.mxu2 %v2592_v3  ;;  %820 = vmatmul.bf16.vlgmr.msra.gmra.mxu3 %v2126_v18  ;;  %v550_v3 = vrot.slane %v548_v59, 5  ;;  %v581_v18 = vshrl.u32 %v477_v10, 16  ;;  %v586_v32 = vrot.slane %v584_v19, 5  ;;  %v2598_v59 = vld [vmem:[%s3165_s1 + $0x1c8] sm:$0xff] }
  0x2f   : > { %683 = vmatmul.bf16.vlgmr.msra.gmra.mxu2 %v619_v9  ;;  %1470 = vmatpush.bf16.msrb.mxu3 %v2604_v14  ;;  %v475_v9 = vld [vmem:[%s2747_s7 + $0x30] sm:$0xf]  ;;  %v2600_v14 = vld [vmem:[%s3165_s1 + $0x1d8] sm:$0xff]  ;;  %v2552_v10 = vld [vmem:[%s2747_s7 + $0xc4] sm:$0xf0] }
  0x30   : > { %v551_v12 = vsel %vm2785_vm2, %v546_v2, %v550_v3  ;;  %v567_v16 = vshrl.u32 %v475_v9, 16  ;;  %v583_v31 = vrot.slane %v581_v18, 4  ;;  %v2562_v2 = vld [vmem:[%s2747_s7 + $0xec] sm:$0xf0]  ;;  %v2013_v18 = vld [vmem:[%s2747_s7 + $0x20] sm:$0xf] }
  0x31   : > { %435 = vmatpush.bf16.msrb.mxu1 %v2527_v13  ;;  %950 = vmatpush.bf16.msrb.mxu0 %v2571_v15  ;;  %v565_v13 = vsel %vm2785_vm2, %v560_v4, %v564_v5  ;;  %v2521_v15 = vld [vmem:[%s3165_s1] sm:$0xff]  ;;  %v2575_v5 = vld [vmem:[%s3165_s1 + $0x150] sm:$0xff]  ;;  %v2519_v19 = vld [vmem:[%s2747_s7 + $0x24] sm:$0xf0] }
  0x32   : > { %1334 = vmatpush.bf16.msrb.mxu2 %v2591_v17  ;;  %v570_v17 = vshll.u32 %v475_v9, 16  ;;  %v616_v28 = vunpack.c.l.b16 %v565_v13  ;;  %v569_v29 = vrot.slane %v567_v16, 4  ;;  %v587_v45 = vor.u32 %v586_v32, %v583_v31  ;;  %v2137_v9 = vld [vmem:[%s2747_s7 + $0xc0] sm:$0xf]  ;;  %v2608_v13 = vld [vmem:[%s3165_s1 + $0x218] sm:$0xff]  ;;  %v2607_v16 = vld [vmem:[%s3165_s1 + $0x210] sm:$0xff] }
  0x33   : > { %1471 = vmatpush.bf16.msrb.mxu3 %v2603_v23  ;;  %v2612_v23 = vld [vmem:[%s3165_s1 + $0x238] sm:$0xff]  ;;  %v2243_v31 = vld [vmem:[%s2747_s7 + $0x90] sm:$0xf] }
  0x34   : > { %v572_v30 = vrot.slane %v570_v17, 5  ;;  %v2606_v17 = vld [vmem:[%s3165_s1 + $0x208] sm:$0xff]  ;;  %v2245_v32 = vld [vmem:[%s2747_s7 + $0x98] sm:$0xf] }
  0x35   : > { %436 = vmatpush.bf16.msrb.mxu1 %v2526_v22  ;;  %951 = vmatpush.bf16.msrb.mxu0 %v2570_v26  ;;  %v2005_v22 = vld [vmem:[%s2747_s7] sm:$0xf] }
  0x36   : > { %1335 = vmatpush.bf16.msrb.mxu2 %v2590_v27  ;;  %v2561_v26 = vld [vmem:[%s2747_s7 + $0xdc] sm:$0xf0]  ;;  %v615_v27 = vunpack.c.l.b16 %v551_v12  ;;  %v573_v43 = vor.u32 %v572_v30, %v569_v29  ;;  %v2574_v12 = vld [vmem:[%s3165_s1 + $0x148] sm:$0xff] }
  0x37   : > { %1472 = vmatpush.bf16.msrb.mxu3 %v2602_v35  ;;  %v478_v35 = vld [vmem:[%s2747_s7 + $0x3c] sm:$0x1]  ;;  %v2605_v30 = vld [vmem:[%s3165_s1 + $0x200] sm:$0xff] }
  0x38   : > { %v621_v38 = vpack.c.b16 %v616_v28, %v615_v27  ;;  %v590_v46 = vshll.u32 %v478_v35, 16  ;;  %v574_v51 = vrot.slane %v573_v43, 4  ;;  %v2405_v27 = vld [vmem:[%s2747_s7 + $0x50] sm:$0xf]  ;;  %v2593_v28 = vld [vmem:[%s2747_s7 + $0x54] sm:$0xf0] }
  0x39   : > { %437 = vmatpush.bf16.msrb.mxu1 %v2525_v34  ;;  %952 = vmatpush.bf16.msrb.mxu0 %v2569_v36  ;;  %v476_v34 = vld [vmem:[%s2747_s7 + $0x34] sm:$0x1]  ;;  %v2006_v36 = vor.u32 %v2517_v24, %v2005_v22  ;;  %v2333_v22 = vld [vmem:[%s2747_s7 + $0x8] sm:$0xf]  ;;  %v2014_v24 = vor.u32 %v2519_v19, %v2013_v18  ;;  %v2406_v29 = vor.u32 %v2593_v28, %v2405_v27  ;;  %v1003_v35 = vshrl.u32 %v2243_v31, 16 }
  0x3a   : > { %1336 = vmatpush.bf16.msrb.mxu2 %v2589_v37  ;;  %v2198_v37 = vor.u32 %v2561_v26, %v2197_v25  ;;  %v576_v44 = vshll.u32 %v476_v34, 16  ;;  %v2453_v34 = vld [vmem:[%s2747_s7 + $0x10] sm:$0xf]  ;;  %v2455_v18 = vld [vmem:[%s2747_s7 + $0x18] sm:$0xf] }
  0x3b   : > { %1473 = vmatpush.bf16.msrb.mxu3 %v2601_v8  ;;  %v1541_v43 = vshll.u32 %v2453_v34, 16  ;;  %v2457_v19 = vld [vmem:[%s2747_s7 + $0x20] sm:$0xf]  ;;  %v1552_v28 = vshrl.u32 %v2455_v18, 16 }
  0x3c   : > { %356 = vmatmul.bf16.gmra.mxu1 %v1970_v53  ;;  %346 = vmatmul.bf16.gmra.mxu0 %v1962_v54  ;;  %v588_v53 = vrot.slane %v587_v45, 4  ;;  %v592_v54 = vrot.slane %v590_v46, 5  ;;  %v2520_v45 = vld [vmem:[%s2747_s7 + $0x34] sm:$0xf0]  ;;  %v2209_v46 = vld [vmem:[%s2747_s7 + $0x108] sm:$0xf] }
  0x3d   : > { %438 = vmatpush.bf16.msrb.mxu1 %v2524_v49  ;;  %953 = vmatpush.bf16.msrb.mxu0 %v2568_v52  ;;  %v2134_v49 = vor.u32 %v2551_v41, %v2133_v40  ;;  %v578_v52 = vrot.slane %v576_v44, 5  ;;  %v2017_v44 = vld [vmem:[%s2747_s7 + $0x30] sm:$0xf] }
  0x3e   : > { %1337 = vmatpush.bf16.msrb.mxu2 %v2588_v1  ;;  %825 = vmatmul.bf16.gmra.mxu3 %v2130_v0  ;;  %v593_v61 = vsel %vm2785_vm2, %v588_v53, %v592_v54  ;;  %v2518_v0 = vld [vmem:[%s2747_s7 + $0x14] sm:$0xf0]  ;;  %v2201_v1 = vld [vmem:[%s2747_s7 + $0xe8] sm:$0xf] }
  0x3f   : > { %688 = vmatmul.bf16.gmra.mxu2 %v620_v55  ;;  %1474 = vmatpush.bf16.msrb.mxu3 %v2600_v14  ;;  %v2585_v55 = vld [vmem:[%s3165_s1 + $0x180] sm:$0xff]  ;;  %v579_v60 = vsel %vm2785_vm2, %v574_v51, %v578_v52  ;;  %v618_v4 = vunpack.c.l.b16 %v593_v61  ;;  %v1005_v51 = vrot.slane %v1003_v35, 4  ;;  %v2454_v61 = vld [vmem:[%s2747_s7 + $0x14] sm:$0x1] }
  0x40   : > { %v617_v3 = vunpack.c.l.b16 %v579_v60  ;;  %v2597_v14 = vld [vmem:[%s3165_s1 + $0x1c0] sm:$0xff]  ;;  %v2452_v60 = vld [vmem:[%s2747_s7 + $0xc] sm:$0x1] }
  0x41   : > { %439 = vmatpush.bf16.msrb.mxu1 %v2523_v62  ;;  %954 = vmatpush.bf16.msrb.mxu0 %v2567_v63  ;;  %v2576_v62 = vld [vmem:[%s3165_s1 + $0x158] sm:$0xff]  ;;  %v2009_v63 = vld [vmem:[%s2747_s7 + $0x10] sm:$0xf] }
  0x42   : > { %1338 = vmatpush.bf16.msrb.mxu2 %v2587_v11  ;;  %v622_v8 = vpack.c.b16 %v618_v4, %v617_v3  ;;  %v2138_v11 = vor.u32 %v2552_v10, %v2137_v9  ;;  %v1547_v10 = vshll.u32 %v2454_v61, 16 }
  0x43   : > { %1475 = vmatpush.bf16.msrb.mxu3 %v2599_v56 }
  0x45   : > { %440 = vmatpush.bf16.msrb.mxu1 %v2522_v6  ;;  %955 = vmatpush.bf16.msrb.mxu0 %v2566_v7  ;;  %v2010_v6 = vor.u32 %v2518_v0, %v2009_v63  ;;  %v2202_v7 = vor.u32 %v2562_v2, %v2201_v1 }
  0x46   : > { %1339 = vmatpush.bf16.msrb.mxu2 %v2586_v48  ;;  %v2337_v48 = vld [vmem:[%s2747_s7 + $0x18] sm:$0xf] }
  0x47   : > { %1476 = vmatpush.bf16.msrb.mxu3 %v2598_v59  ;;  %v1543_v59 = vrot.slane %v1541_v43, 5  ;;  %v1554_v43 = vrot.slane %v1552_v28, 4 }
  0x49   : > { %441 = vmatpush.bf16.msrb.mxu1 %v2521_v15  ;;  %956 = vmatpush.bf16.msrb.mxu0 %v2565_v21  ;;  %v2573_v15 = vld [vmem:[%s3165_s1 + $0x140] sm:$0xff] }
  0x4a   : > { %1340 = vmatpush.bf16.msrb.mxu2 %v2585_v55  ;;  %v2563_v21 = vld [vmem:[%s2747_s7 + $0xfc] sm:$0xf0] }
  0x4b   : > { %1477 = vmatpush.bf16.msrb.mxu3 %v2597_v14  ;;  %v2582_v55 = vld [vmem:[%s2747_s7 + $0x1c] sm:$0xf0]  ;;  %v2249_v14 = vld [vmem:[%s2747_s7 + $0xa8] sm:$0xf] }
  0x4c   : > { %442 = vmatmul.bf16.vlgmr.msrb.gmra.mxu1 %v2006_v36  ;;  %957 = vmatmul.bf16.vlgmr.msrb.gmra.mxu0 %v2198_v37  ;;  %v1006_v36 = vshll.u32 %v2243_v31, 16  ;;  %v1017_v37 = vshrl.u32 %v2245_v32, 16  ;;  %v2338_v2 = vor.u32 %v2582_v55, %v2337_v48  ;;  %v1048_v27 = vshll.u32 %v2249_v14, 16 }
  0x4d   : > { %1195 = vmatpush.bf16.msra.mxu1 %v2580_v20  ;;  %1716 = vmatpush.bf16.msra.mxu0 %v2612_v23  ;;  %v2205_v20 = vld [vmem:[%s2747_s7 + $0xf8] sm:$0xf]  ;;  %v1569_v31 = vshll.u32 %v2457_v19, 16 }
  0x4e   : > { %830 = vmatmul.bf16.gmra.mxu3 %v2134_v49  ;;  %2621 = vmatpush.bf16.msra.mxu2 %v2612_v23  ;;  %v2581_v23 = vld [vmem:[%s2747_s7 + $0xc] sm:$0xf0]  ;;  %v2206_v25 = vor.u32 %v2563_v21, %v2205_v20  ;;  %v2244_v49 = vld [vmem:[%s2747_s7 + $0x94] sm:$0x1]  ;;  %v1008_v52 = vrot.slane %v1006_v36, 5  ;;  %v1019_v53 = vrot.slane %v1017_v37, 4 }
  0x4f   : > { %693 = vmatmul.bf16.gmra.mxu2 %v621_v38  ;;  %v2334_v26 = vor.u32 %v2581_v23, %v2333_v22  ;;  %v1020_v38 = vshll.u32 %v2245_v32, 16  ;;  %v1012_v63 = vshll.u32 %v2244_v49, 16  ;;  %v1549_v23 = vrot.slane %v1547_v10, 5  ;;  %v2248_v36 = vld [vmem:[%s2747_s7 + $0xa4] sm:$0x1] }
  0x50   : > { %v1009_v3 = vor.u32 %v1008_v52, %v1005_v51  ;;  %v2456_v51 = vld [vmem:[%s2747_s7 + $0x1c] sm:$0x1]  ;;  %v2458_v52 = vld [vmem:[%s2747_s7 + $0x24] sm:$0x1] }
  0x51   : > { %1196 = vmatpush.bf16.msra.mxu1 %v2579_v33  ;;  %1717 = vmatpush.bf16.msra.mxu0 %v2611_v42  ;;  %v2451_v33 = vld [vmem:[%s2747_s7 + $0x8] sm:$0xf]  ;;  %v1022_v54 = vrot.slane %v1020_v38, 5 }
  0x52   : > { %2622 = vmatpush.bf16.msra.mxu2 %v2611_v42  ;;  %v1524_v40 = vshrl.u32 %v2451_v33, 16  ;;  %v1527_v41 = vshll.u32 %v2451_v33, 16  ;;  %v1538_v42 = vshrl.u32 %v2453_v34, 16 }
  0x53   : > { %v1023_v4 = vor.u32 %v1022_v54, %v1019_v53  ;;  %v2341_v53 = vld [vmem:[%s2747_s7 + $0x28] sm:$0xf]  ;;  %v2583_v54 = vld [vmem:[%s2747_s7 + $0x2c] sm:$0xf0] }
  0x54   : > { %v1526_v56 = vrot.slane %v1524_v40, 4 }
  0x55   : > { %1197 = vmatpush.bf16.msra.mxu1 %v2578_v47  ;;  %1718 = vmatpush.bf16.msra.mxu0 %v2610_v50  ;;  %v2564_v47 = vld [vmem:[%s2747_s7 + $0x10c] sm:$0xf0] }
  0x56   : > { %2623 = vmatpush.bf16.msra.mxu2 %v2610_v50  ;;  %v2246_v50 = vld [vmem:[%s2747_s7 + $0x9c] sm:$0x1]  ;;  %v2210_v1 = vor.u32 %v2564_v47, %v2209_v46  ;;  %v1571_v46 = vrot.slane %v1569_v31, 5 }
  0x57   : > { %v1026_v0 = vshll.u32 %v2246_v50, 16 }
  0x59   : > { %1198 = vmatpush.bf16.msra.mxu1 %v2577_v57  ;;  %1719 = vmatpush.bf16.msra.mxu0 %v2609_v58  ;;  %v1529_v57 = vrot.slane %v1527_v41, 5  ;;  %v1050_v41 = vrot.slane %v1048_v27, 5 }
  0x5a   : > { %2624 = vmatpush.bf16.msra.mxu2 %v2609_v58  ;;  %v1540_v58 = vrot.slane %v1538_v42, 4  ;;  %v2250_v42 = vld [vmem:[%s2747_s7 + $0xac] sm:$0x1] }
  0x5c   : > { %447 = vmatmul.bf16.gmra.mxu1 %v2010_v6  ;;  %962 = vmatmul.bf16.gmra.mxu0 %v2202_v7  ;;  %v2594_v6 = vld [vmem:[%s2747_s7 + $0x64] sm:$0xf0]  ;;  %v1530_v7 = vor.u32 %v1529_v57, %v1526_v56  ;;  %v1544_v9 = vor.u32 %v1543_v59, %v1540_v58  ;;  %v1040_v56 = vshll.u32 %v2248_v36, 16  ;;  %v1054_v58 = vshll.u32 %v2250_v42, 16  ;;  %v2252_v42 = vld [vmem:[%s2747_s7 + $0xb4] sm:$0x1] }
  0x5d   : > { %1199 = vmatpush.bf16.msra.mxu1 %v2576_v62  ;;  %1720 = vmatpush.bf16.msra.mxu0 %v2608_v13  ;;  %v2018_v62 = vor.u32 %v2520_v45, %v2017_v44 }
  0x5e   : > { %835 = vmatmul.bf16.gmra.mxu3 %v2138_v11  ;;  %2625 = vmatpush.bf16.msra.mxu2 %v2608_v13  ;;  %v1014_v11 = vrot.slane %v1012_v63, 5  ;;  %v2247_v13 = vld [vmem:[%s2747_s7 + $0xa0] sm:$0xf]  ;;  %v1531_v20 = vrot.slane %v1530_v7, 4  ;;  %v1545_v22 = vrot.slane %v1544_v9, 4  ;;  %v1056_v7 = vrot.slane %v1054_v58, 5 }
  0x5f   : > { %698 = vmatmul.bf16.gmra.mxu2 %v622_v8  ;;  %v1533_v8 = vshll.u32 %v2452_v60, 16  ;;  %v1561_v60 = vshll.u32 %v2456_v51, 16  ;;  %v2345_v51 = vld [vmem:[%s2747_s7 + $0x38] sm:$0xf]  ;;  %v2464_v58 = vld [vmem:[%s2747_s7 + $0x3c] sm:$0x1] }
  0x60   : > { %v1550_v35 = vsel %vm2785_vm2, %v1545_v22, %v1549_v23 }
  0x61   : > { %1200 = vmatpush.bf16.msra.mxu1 %v2575_v5  ;;  %1721 = vmatpush.bf16.msra.mxu0 %v2607_v16  ;;  %v2409_v5 = vld [vmem:[%s2747_s7 + $0x60] sm:$0xf]  ;;  %v1535_v21 = vrot.slane %v1533_v8, 5  ;;  %v1653_v50 = vunpack.c.l.b16 %v1550_v35  ;;  %v1563_v9 = vrot.slane %v1561_v60, 5 }
  0x62   : > { %2626 = vmatpush.bf16.msra.mxu2 %v2607_v16  ;;  %v1024_v16 = vrot.slane %v1023_v4, 4 }
  0x63   : > { %v1536_v34 = vsel %vm2785_vm2, %v1531_v20, %v1535_v21  ;;  %v2463_v21 = vld [vmem:[%s2747_s7 + $0x38] sm:$0xf] }
  0x64   : > { %v1652_v49 = vunpack.c.l.b16 %v1536_v34  ;;  %v1611_v34 = vshll.u32 %v2463_v21, 16 }
  0x65   : > { %1201 = vmatpush.bf16.msra.mxu1 %v2574_v12  ;;  %1722 = vmatpush.bf16.msra.mxu0 %v2606_v17  ;;  %v1028_v12 = vrot.slane %v1026_v0, 5 }
  0x66   : > { %2627 = vmatpush.bf16.msra.mxu2 %v2606_v17  ;;  %v2410_v17 = vor.u32 %v2594_v6, %v2409_v5  ;;  %v1660_v0 = vpack.c.b16 %v1653_v50, %v1652_v49  ;;  %v1042_v5 = vrot.slane %v1040_v56, 5  ;;  %v2584_v56 = vld [vmem:[%s2747_s7 + $0x3c] sm:$0xf0] }
  0x67   : > { %v1029_v33 = vsel %vm2785_vm2, %v1024_v16, %v1028_v12  ;;  %v2251_v12 = vld [vmem:[%s2747_s7 + $0xb0] sm:$0xf] }
  0x68   : > { %v1132_v48 = vunpack.c.l.b16 %v1029_v33  ;;  %v2461_v16 = vld [vmem:[%s2747_s7 + $0x30] sm:$0xf]  ;;  %v1062_v20 = vshll.u32 %v2251_v12, 16  ;;  %v1608_v33 = vshrl.u32 %v2463_v21, 16 }
  0x69   : > { %1202 = vmatpush.bf16.msra.mxu1 %v2573_v15  ;;  %1723 = vmatpush.bf16.msra.mxu0 %v2605_v30  ;;  %v1010_v15 = vrot.slane %v1009_v3, 4  ;;  %v2595_v3 = vld [vmem:[%s2747_s7 + $0x74] sm:$0xf0] }
  0x6a   : > { %2628 = vmatpush.bf16.msra.mxu2 %v2605_v30  ;;  %v1566_v30 = vshrl.u32 %v2457_v19, 16  ;;  %v1059_v19 = vshrl.u32 %v2251_v12, 16  ;;  %v1064_v36 = vrot.slane %v1062_v20, 5 }
  0x6b   : > { %v1015_v32 = vsel %vm2785_vm2, %v1010_v15, %v1014_v11  ;;  %v2459_v15 = vld [vmem:[%s2747_s7 + $0x28] sm:$0xf] }
  0x6c   : > { %452 = vmatmul.bf16.gmra.mxu1 %v2014_v24  ;;  %967 = vmatmul.bf16.gmra.mxu0 %v2206_v25  ;;  %v1031_v24 = vshrl.u32 %v2247_v13, 16  ;;  %v1034_v25 = vshll.u32 %v2247_v13, 16  ;;  %v1568_v45 = vrot.slane %v1566_v30, 4  ;;  %v1131_v47 = vunpack.c.l.b16 %v1015_v32 }
  0x6d   : > { %v1580_v27 = vshrl.u32 %v2459_v15, 16  ;;  %v1583_v28 = vshll.u32 %v2459_v15, 16  ;;  %v1597_v30 = vshll.u32 %v2461_v16, 16  ;;  %v1061_v35 = vrot.slane %v1059_v19, 4 }
  0x6e   : > { %1478 = vmatmul.bf16.vlgmr.msrb.gmra.mxu3 %v2406_v29  ;;  %v1555_v29 = vshll.u32 %v2455_v18, 16  ;;  %v1033_v37 = vrot.slane %v1031_v24, 4  ;;  %v1036_v38 = vrot.slane %v1034_v25, 5  ;;  %v1572_v61 = vor.u32 %v1571_v46, %v1568_v45  ;;  %v2460_v46 = vld [vmem:[%s2747_s7 + $0x2c] sm:$0x1] }
  0x6f   : > { %1341 = vmatmul.bf16.vlgmr.msrb.gmra.mxu2 %v2334_v26  ;;  %v1045_v26 = vshrl.u32 %v2249_v14, 16  ;;  %v1139_v63 = vpack.c.b16 %v1132_v48, %v1131_v47  ;;  %v2253_v14 = vld [vmem:[%s2747_s7 + $0xb8] sm:$0xf]  ;;  %v1582_v47 = vrot.slane %v1580_v27, 4  ;;  %v1585_v48 = vrot.slane %v1583_v28, 5 }
  0x70   : > { %v1557_v44 = vrot.slane %v1555_v29, 5  ;;  %v1037_v55 = vor.u32 %v1036_v38, %v1033_v37  ;;  %v1573_v10 = vrot.slane %v1572_v61, 4  ;;  %v1073_v24 = vshrl.u32 %v2253_v14, 16  ;;  %v2257_v27 = vld [vmem:[%s2747_s7 + $0xc8] sm:$0xf] }
  0x71   : > { %v1047_v40 = vrot.slane %v1045_v26, 4  ;;  %v1076_v25 = vshll.u32 %v2253_v14, 16  ;;  %v2465_v26 = vld [vmem:[%s2747_s7 + $0x40] sm:$0xf]  ;;  %v1594_v29 = vshrl.u32 %v2461_v16, 16  ;;  %v1599_v50 = vrot.slane %v1597_v30, 5 }
  0x72   : > { %v1558_v59 = vor.u32 %v1557_v44, %v1554_v43  ;;  %v1038_v4 = vrot.slane %v1037_v55, 4  ;;  %v1622_v37 = vshrl.u32 %v2465_v26, 16  ;;  %v1625_v38 = vshll.u32 %v2465_v26, 16  ;;  %v2254_v43 = vld [vmem:[%s2747_s7 + $0xbc] sm:$0x1] }
  0x73   : > { %v1051_v57 = vor.u32 %v1050_v41, %v1047_v40  ;;  %v1075_v44 = vrot.slane %v1073_v24, 4  ;;  %v1078_v45 = vrot.slane %v1076_v25, 5  ;;  %v1596_v49 = vrot.slane %v1594_v29, 4  ;;  %v2255_v24 = vld [vmem:[%s2747_s7 + $0xc0] sm:$0xf] }
  0x74   : > { %v1559_v8 = vrot.slane %v1558_v59, 4  ;;  %v1624_v59 = vrot.slane %v1622_v37, 4  ;;  %v1627_v60 = vrot.slane %v1625_v38, 5  ;;  %v1068_v61 = vshll.u32 %v2252_v42, 16 }
  0x75   : > { %v1052_v6 = vrot.slane %v1051_v57, 4  ;;  %v1065_v57 = vor.u32 %v1064_v36, %v1061_v35  ;;  %v1101_v35 = vshrl.u32 %v2257_v27, 16  ;;  %v1104_v36 = vshll.u32 %v2257_v27, 16 }
  0x76   : > { %v1564_v22 = vsel %vm2785_vm2, %v1559_v8, %v1563_v9  ;;  %v2596_v8 = vld [vmem:[%s2747_s7 + $0x84] sm:$0xf0]  ;;  %v1628_v12 = vor.u32 %v1627_v60, %v1624_v59  ;;  %v1070_v14 = vrot.slane %v1068_v61, 5 }
  0x77   : > { %v1057_v18 = vsel %vm2785_vm2, %v1052_v6, %v1056_v7  ;;  %v1654_v40 = vunpack.c.l.b16 %v1564_v22  ;;  %v2346_v6 = vor.u32 %v2584_v56, %v2345_v51  ;;  %v2417_v7 = vld [vmem:[%s2747_s7 + $0x80] sm:$0xf] }
  0x78   : > { %v1134_v32 = vunpack.c.l.b16 %v1057_v18  ;;  %v2418_v18 = vor.u32 %v2596_v8, %v2417_v7  ;;  %v1629_v25 = vrot.slane %v1628_v12, 4 }
  0x7c   : > { %457 = vmatmul.bf16.gmra.mxu1 %v2018_v62  ;;  %972 = vmatmul.bf16.gmra.mxu0 %v2210_v1  ;;  %v1575_v62 = vshll.u32 %v2458_v52, 16  ;;  %v2342_v1 = vor.u32 %v2583_v54, %v2341_v53  ;;  %v2462_v52 = vld [vmem:[%s2747_s7 + $0x34] sm:$0x1]  ;;  %v1610_v53 = vrot.slane %v1608_v33, 4  ;;  %v1613_v54 = vrot.slane %v1611_v34, 5 }
  0x7d   : > { %v1090_v34 = vshll.u32 %v2255_v24, 16 }
  0x7e   : > { %1483 = vmatmul.bf16.gmra.mxu3 %v2410_v17  ;;  %v1577_v11 = vrot.slane %v1575_v62, 5  ;;  %v1043_v17 = vsel %vm2785_vm2, %v1038_v4, %v1042_v5  ;;  %v1079_v62 = vor.u32 %v1078_v45, %v1075_v44  ;;  %v1600_v4 = vor.u32 %v1599_v50, %v1596_v49  ;;  %v2258_v50 = vld [vmem:[%s2747_s7 + $0xcc] sm:$0x1] }
  0x7f   : > { %1346 = vmatmul.bf16.gmra.mxu2 %v2338_v2  ;;  %v2413_v2 = vld [vmem:[%s2747_s7 + $0x70] sm:$0xf]  ;;  %v1133_v31 = vunpack.c.l.b16 %v1043_v17  ;;  %v1603_v5 = vshll.u32 %v2462_v52, 16  ;;  %v1614_v9 = vor.u32 %v1613_v54, %v1610_v53  ;;  %v1106_v49 = vrot.slane %v1104_v36, 5 }
  0x80   : > { %v2414_v13 = vor.u32 %v2595_v3, %v2413_v2  ;;  %v1578_v23 = vsel %vm2785_vm2, %v1573_v10, %v1577_v11  ;;  %v1586_v3 = vor.u32 %v1585_v48, %v1582_v47  ;;  %v1617_v10 = vshll.u32 %v2464_v58, 16 }
  0x81   : > { %v1655_v41 = vunpack.c.l.b16 %v1578_v23  ;;  %v1140_v55 = vpack.c.b16 %v1134_v32, %v1133_v31  ;;  %v1066_v11 = vrot.slane %v1065_v57, 4  ;;  %v1080_v15 = vrot.slane %v1079_v62, 4 }
  0x82   : > { %v1587_v19 = vrot.slane %v1586_v3, 4  ;;  %v1601_v20 = vrot.slane %v1600_v4, 4  ;;  %v1605_v21 = vrot.slane %v1603_v5, 5  ;;  %v1615_v22 = vrot.slane %v1614_v9, 4 }
  0x83   : > { %v1661_v2 = vpack.c.b16 %v1655_v41, %v1654_v40  ;;  %v1619_v23 = vrot.slane %v1617_v10, 5  ;;  %v1071_v28 = vsel %vm2785_vm2, %v1066_v11, %v1070_v14  ;;  %v1087_v32 = vshrl.u32 %v2255_v24, 16 }
  0x84   : > { %v1606_v31 = vsel %vm2785_vm2, %v1601_v20, %v1605_v21  ;;  %v1135_v38 = vunpack.c.l.b16 %v1071_v28  ;;  %v1092_v47 = vrot.slane %v1090_v34, 5  ;;  %v1103_v48 = vrot.slane %v1101_v35, 4 }
  0x85   : > { %v1620_v33 = vsel %vm2785_vm2, %v1615_v22, %v1619_v23  ;;  %v1657_v42 = vunpack.c.l.b16 %v1606_v31  ;;  %v1089_v44 = vrot.slane %v1087_v32, 4  ;;  %v1110_v59 = vshll.u32 %v2258_v50, 16 }
  0x86   : > { %v1107_v58 = vor.u32 %v1106_v49, %v1103_v48 }
  0x87   : > { %v1093_v57 = vor.u32 %v1092_v47, %v1089_v44 }
  0x88   : > { %v1108_v62 = vrot.slane %v1107_v58, 4 }
  0x89   : > { %v1094_v60 = vrot.slane %v1093_v57, 4 }
  0x8c   : > { %1203 = vmatmul.bf16.vlgmr.msra.gmra.mxu1 %v1139_v63  ;;  %1724 = vmatmul.bf16.vlgmr.msra.gmra.mxu0 %v1660_v0  ;;  %v1082_v63 = vshll.u32 %v2254_v43, 16  ;;  %v1589_v0 = vshll.u32 %v2460_v46, 16  ;;  %v1658_v43 = vunpack.c.l.b16 %v1620_v33  ;;  %v2256_v46 = vld [vmem:[%s2747_s7 + $0xc4] sm:$0x1] }
  0x8d   : > { %v1096_v53 = vshll.u32 %v2256_v46, 16 }
  0x8e   : > { %1488 = vmatmul.bf16.gmra.mxu3 %v2414_v13  ;;  %v1084_v16 = vrot.slane %v1082_v63, 5  ;;  %v1591_v17 = vrot.slane %v1589_v0, 5  ;;  %v1112_v63 = vrot.slane %v1110_v59, 5 }
  0x8f   : > { %1351 = vmatmul.bf16.gmra.mxu2 %v2342_v1  ;;  %v2466_v1 = vld [vmem:[%s2747_s7 + $0x44] sm:$0x1]  ;;  %v1098_v61 = vrot.slane %v1096_v53, 5  ;;  %s1928_s7 = sshll.u32 %s2668_s12, 3 }
  0x90   : > { %v1631_v13 = vshll.u32 %v2466_v1, 16  ;;  %v1085_v29 = vsel %vm2785_vm2, %v1080_v15, %v1084_v16  ;;  %v1592_v30 = vsel %vm2785_vm2, %v1587_v19, %v1591_v17  ;;  %v1113_v4 = vsel %vm2785_vm2, %v1108_v62, %v1112_v63  ;;  %p193_p5 = scmp.lt.s32.totalorder %s1928_s7, 15 }
  0x91   : > { %v1136_v40 = vunpack.c.l.b16 %v1085_v29  ;;  %v1656_v41 = vunpack.c.l.b16 %v1592_v30  ;;  %v1099_v3 = vsel %vm2785_vm2, %v1094_v60, %v1098_v61  ;;  %v1138_v7 = vunpack.c.l.b16 %v1113_v4 }
  0x92   : > { %v1633_v26 = vrot.slane %v1631_v13, 5  ;;  %s3175_s7 = smov (!%p193_p5, %s1928_s7), 15 }
  0x93   : > { %v1141_v51 = vpack.c.b16 %v1136_v40, %v1135_v38  ;;  %v1662_v52 = vpack.c.b16 %v1657_v42, %v1656_v41  ;;  %s1929_s16 = sshll.u32 %s3175_s7, 3 }
  0x94   : > { %v1634_v37 = vsel %vm2785_vm2, %v1629_v25, %v1633_v26  ;;  %s3126_s12 = scalar_lea.vmem %s3166_s2, %s1929_s16 }
  0x95   : > { %v1659_v45 = vunpack.c.l.b16 %v1634_v37 }
  0x97   : > { %v1663_v56 = vpack.c.b16 %v1659_v45, %v1658_v43 }
  0x9c   : > { %1208 = vmatmul.bf16.gmra.mxu1 %v1140_v55  ;;  %1729 = vmatmul.bf16.gmra.mxu0 %v1661_v2 }
  0x9e   : > { %1493 = vmatmul.bf16.gmra.mxu3 %v2418_v18 }
  0x9f   : > { %1356 = vmatmul.bf16.gmra.mxu2 %v2346_v6  ;;  %v1137_v6 = vunpack.c.l.b16 %v1099_v3 }
  0xa1   : > { %v1142_v8 = vpack.c.b16 %v1138_v7, %v1137_v6 }
  0xa9   : > { %v352_v54 = vpop.f32.mrf.mxu1  ;;  %v342_v55 = vpop.f32.mrf.mxu0 }
  0xac   : > { %1213 = vmatmul.bf16.gmra.mxu1 %v1141_v51  ;;  %1734 = vmatmul.bf16.gmra.mxu0 %v1662_v52 }
  0xaf   : > { %1739 = vmatmul.bf16.vlgmr.msra.gmra.mxu2 %v1663_v56 }
  0xb1   : > { %v354_v1 = vpop.f32.mrf.mxu1  ;;  %v344_v2 = vpop.f32.mrf.mxu0 }
  0xb2   : > { %v684_v0 = vpop.f32.mrf.mxu2  ;;  %v821_v5 = vpop.f32.mrf.mxu3 }
  0xb9   : > { %v357_v10 = vpop.f32.mrf.mxu1  ;;  %v347_v11 = vpop.f32.mrf.mxu0 }
  0xba   : > { %v686_v9 = vpop.f32.mrf.mxu2  ;;  %v823_v12 = vpop.f32.mrf.mxu3 }
  0xbc   : > { %1218 = vmatmul.bf16.gmra.mxu1 %v1142_v8 }
  0xc1   : > { %v359_v14 = vpop.f32.mrf.mxu1  ;;  %v349_v15 = vpop.f32.mrf.mxu0 }
  0xc2   : > { %v689_v13 = vpop.f32.mrf.mxu2  ;;  %v3092_v16 = vpop.f32.mrf.mxu3 }
  0xc9   : > { %v443_v18 = vpop.f32.mrf.mxu1  ;;  %v958_v19 = vpop.f32.mrf.mxu0 }
  0xca   : > { %v691_v17 = vpop.f32.mrf.mxu2  ;;  %v444_v20 = vadd.f32 %v443_v18, %v342_v55  ;;  %v3094_v21 = vpop.f32.mrf.mxu3 }
  0xcc   : > { %v704_v39 = vadd.f32 %v684_v0, %v444_v20 }
  0xce   : > { %v841_v62 = vadd.f32 %v821_v5, %v704_v39 }
  0xd0   : > { %v978_v0 = vadd.f32 %v958_v19, %v841_v62 }
  0xd1   : > { %v445_v23 = vpop.f32.mrf.mxu1  ;;  %v960_v24 = vpop.f32.mrf.mxu0 }
  0xd2   : > { %v694_v22 = vpop.f32.mrf.mxu2  ;;  %v446_v25 = vadd.f32 %v445_v23, %v344_v2  ;;  %v3096_v27 = vpop.f32.mrf.mxu3 }
  0xd4   : > { %v705_v26 = vadd.f32 %v686_v9, %v446_v25 }
  0xd6   : > { %v842_v7 = vadd.f32 %v823_v12, %v705_v26 }
  0xd8   : > { %v979_v5 = vadd.f32 %v960_v24, %v842_v7 }
  0xd9   : > { %v448_v29 = vpop.f32.mrf.mxu1  ;;  %v963_v30 = vpop.f32.mrf.mxu0 }
  0xda   : > { %v696_v28 = vpop.f32.mrf.mxu2  ;;  %v449_v31 = vadd.f32 %v448_v29, %v347_v11  ;;  %v3098_v34 = vpop.f32.mrf.mxu3 }
  0xdc   : > { %v706_v32 = vadd.f32 %v689_v13, %v449_v31 }
  0xe1   : > { %v450_v35 = vpop.f32.mrf.mxu1  ;;  %v3100_v36 = vpop.f32.mrf.mxu0 }
  0xe2   : > { %v699_v33 = vpop.f32.mrf.mxu2  ;;  %v451_v37 = vadd.f32 %v450_v35, %v349_v15  ;;  %v3104_v44 = vpop.f32.mrf.mxu3 }
  0xe4   : > { %v707_v38 = vadd.f32 %v691_v17, %v451_v37  ;;  %v843_v17 = vadd.f32 %v3092_v16, %v706_v32 }
  0xe6   : > { %v980_v20 = vadd.f32 %v963_v30, %v843_v17  ;;  %v844_v29 = vadd.f32 %v3094_v21, %v707_v38 }
  0xe8   : > { %v981_v32 = vadd.f32 %v3100_v36, %v844_v29 }
  0xe9   : > { %v453_v41 = vpop.f32.mrf.mxu1  ;;  %v3102_v42 = vpop.f32.mrf.mxu0 }
  0xea   : > { %v701_v40 = vpop.f32.mrf.mxu2  ;;  %v454_v43 = vadd.f32 %v453_v41, %v352_v54  ;;  %v3112_v51 = vpop.f32.mrf.mxu3 }
  0xec   : > { %v3106_v45 = vadd.f32 %v694_v22, %v454_v43 }
  0xf1   : > { %v455_v47 = vpop.f32.mrf.mxu1  ;;  %v3108_v48 = vpop.f32.mrf.mxu0 }
  0xf2   : > { %v1342_v46 = vpop.f32.mrf.mxu2  ;;  %v456_v49 = vadd.f32 %v455_v47, %v354_v1  ;;  %v1479_v57 = vpop.f32.mrf.mxu3 }
  0xf4   : > { %v3110_v50 = vadd.f32 %v696_v28, %v456_v49  ;;  %v845_v49 = vadd.f32 %v3096_v27, %v3106_v45 }
  0xf9   : > { %v458_v53 = vpop.f32.mrf.mxu1  ;;  %v3114_v55 = vpop.f32.mrf.mxu0 }
  0xfa   : > { %v1344_v52 = vpop.f32.mrf.mxu2  ;;  %v459_v56 = vadd.f32 %v458_v53, %v357_v10  ;;  %v1481_v1 = vpop.f32.mrf.mxu3 }
  0xfc   : > { %v3116_v54 = vadd.f32 %v699_v33, %v459_v56  ;;  %v982_v56 = vadd.f32 %v3102_v42, %v845_v49 }
 0x101   : > { %v460_v59 = vpop.f32.mrf.mxu1  ;;  %v3118_v60 = vpop.f32.mrf.mxu0 }
 0x102   : > { %v1347_v58 = vpop.f32.mrf.mxu2  ;;  %v461_v61 = vadd.f32 %v460_v59, %v359_v14  ;;  %v1484_v15 = vpop.f32.mrf.mxu3 }
 0x104   : > { %v3121_v63 = vadd.f32 %v701_v40, %v461_v61 }
 0x109   : > { %v1204_v2 = vpop.f32.mrf.mxu1  ;;  %v1725_v3 = vpop.f32.mrf.mxu0 }
 0x10a   : > { %v1224_v4 = vadd.f32 %v1204_v2, %v978_v0  ;;  %v1349_v6 = vpop.f32.mrf.mxu2  ;;  %v1486_v35 = vpop.f32.mrf.mxu3 }
 0x10c   : > { %v1362_v8 = vadd.f32 %v1342_v46, %v1224_v4 }
 0x10e   : > { %v1499_v9 = vadd.f32 %v1479_v57, %v1362_v8 }
 0x110   : > { %v1745_v10 = vadd.f32 %v1725_v3, %v1499_v9 }
 0x111   : > { %v1206_v11 = vpop.f32.mrf.mxu1  ;;  %v1727_v13 = vpop.f32.mrf.mxu0 }
 0x112   : > { %1753 = vst [vmem:[%s3126_s12] sm:$0xff] %v1745_v10  ;;  %v1225_v14 = vadd.f32 %v1206_v11, %v979_v5  ;;  %v1352_v18 = vpop.f32.mrf.mxu2  ;;  %v1775_v25 = vmul.f32 %v1745_v10, %v1745_v10  ;;  %v1489_v53 = vpop.f32.mrf.mxu3 }
 0x114   : > { %v1363_v12 = vadd.f32 %v1344_v52, %v1225_v14 }
 0x116   : > { %v1500_v19 = vadd.f32 %v1481_v1, %v1363_v12  ;;  %v846_v1 = vadd.f32 %v3098_v34, %v3110_v50 }
 0x118   : > { %v1746_v39 = vadd.f32 %v1727_v13, %v1500_v19  ;;  %v983_v3 = vadd.f32 %v3108_v48, %v846_v1 }
 0x119   : > { %v1209_v22 = vpop.f32.mrf.mxu1  ;;  %v1730_v23 = vpop.f32.mrf.mxu0 }
 0x11a   : > { %1754 = vst [vmem:[%s3126_s12 + $0x8] sm:$0xff] %v1746_v39  ;;  %v1761_v24 = vadd.f32 %v1746_v39, %v1745_v10  ;;  %v1776_v26 = vmul.f32 %v1746_v39, %v1746_v39  ;;  %v1226_v28 = vadd.f32 %v1209_v22, %v980_v20  ;;  %v1354_v16 = vpop.f32.mrf.mxu2  ;;  %v1491_v42 = vpop.f32.mrf.mxu3  ;;  %v847_v10 = vadd.f32 %v3104_v44, %v3116_v54 }
 0x11b   : > { %v848_v20 = vadd.f32 %v3112_v51, %v3121_v63 }
 0x11c   : > { %v1783_v31 = vadd.f32 %v1776_v26, %v1775_v25  ;;  %v1364_v33 = vadd.f32 %v1347_v58, %v1226_v28  ;;  %v984_v14 = vadd.f32 %v3114_v55, %v847_v10 }
 0x11e   : > { %v1501_v37 = vadd.f32 %v1484_v15, %v1364_v33 }
 0x120   : > { %v1747_v40 = vadd.f32 %v1730_v23, %v1501_v37  ;;  %v985_v23 = vadd.f32 %v3118_v60, %v848_v20 }
 0x121   : > { %v1211_v30 = vpop.f32.mrf.mxu1  ;;  %v1732_v41 = vpop.f32.mrf.mxu0 }
 0x122   : > { %1755 = vst [vmem:[%s3126_s12 + $0x10] sm:$0xff] %v1747_v40  ;;  %v1762_v43 = vadd.f32 %v1761_v24, %v1747_v40  ;;  %v1777_v46 = vmul.f32 %v1747_v40, %v1747_v40  ;;  %v1227_v47 = vadd.f32 %v1211_v30, %v981_v32  ;;  %v1357_v36 = vpop.f32.mrf.mxu2  ;;  %v1494_v19 = vpop.f32.mrf.mxu3 }
 0x124   : > { %v1784_v52 = vadd.f32 %v1783_v31, %v1777_v46  ;;  %v1365_v21 = vadd.f32 %v1349_v6, %v1227_v47 }
 0x126   : > { %v1502_v38 = vadd.f32 %v1486_v35, %v1365_v21 }
 0x128   : > { %v1748_v57 = vadd.f32 %v1732_v41, %v1502_v38 }
 0x129   : > { %v1214_v58 = vpop.f32.mrf.mxu1  ;;  %v1735_v0 = vpop.f32.mrf.mxu0 }
 0x12a   : > { %1756 = vst [vmem:[%s3126_s12 + $0x18] sm:$0xff] %v1748_v57  ;;  %v1763_v59 = vadd.f32 %v1762_v43, %v1748_v57  ;;  %v1778_v61 = vmul.f32 %v1748_v57, %v1748_v57  ;;  %v1228_v62 = vadd.f32 %v1214_v58, %v982_v56  ;;  %v1359_v5 = vpop.f32.mrf.mxu2  ;;  %v1496_v33 = vpop.f32.mrf.mxu3 }
 0x12c   : > { %v1785_v2 = vadd.f32 %v1784_v52, %v1778_v61  ;;  %v1366_v27 = vadd.f32 %v1352_v18, %v1228_v62 }
 0x12e   : > { %v1503_v45 = vadd.f32 %v1489_v53, %v1366_v27 }
 0x130   : > { %v1749_v4 = vadd.f32 %v1735_v0, %v1503_v45 }
 0x131   : > { %v1216_v6 = vpop.f32.mrf.mxu1  ;;  %v1737_v34 = vpop.f32.mrf.mxu0 }
 0x132   : > { %1757 = vst [vmem:[%s3126_s12 + $0x20] sm:$0xff] %v1749_v4  ;;  %v1764_v7 = vadd.f32 %v1763_v59, %v1749_v4  ;;  %v1779_v8 = vmul.f32 %v1749_v4, %v1749_v4  ;;  %v1229_v9 = vadd.f32 %v1216_v6, %v983_v3  ;;  %v1740_v44 = vpop.f32.mrf.mxu2 }
 0x134   : > { %v1786_v11 = vadd.f32 %v1785_v2, %v1779_v8  ;;  %v1367_v13 = vadd.f32 %v1354_v16, %v1229_v9 }
 0x136   : > { %v1504_v50 = vadd.f32 %v1491_v42, %v1367_v13 }
 0x138   : > { %v1750_v48 = vadd.f32 %v1737_v34, %v1504_v50 }
 0x139   : > { %v1219_v15 = vpop.f32.mrf.mxu1 }
 0x13a   : > { %1758 = vst [vmem:[%s3126_s12 + $0x28] sm:$0xff] %v1750_v48  ;;  %v1765_v17 = vadd.f32 %v1764_v7, %v1750_v48  ;;  %v1780_v12 = vmul.f32 %v1750_v48, %v1750_v48  ;;  %v1230_v18 = vadd.f32 %v1219_v15, %v984_v14  ;;  %v1742_v37 = vpop.f32.mrf.mxu2 }
 0x13c   : > { %v1787_v39 = vadd.f32 %v1786_v11, %v1780_v12  ;;  %v1368_v22 = vadd.f32 %v1357_v36, %v1230_v18 }
 0x13e   : > { %v1505_v54 = vadd.f32 %v1494_v19, %v1368_v22 }
 0x140   : > { %v1751_v25 = vadd.f32 %v1740_v44, %v1505_v54 }
 0x141   : > { %v1221_v55 = vpop.f32.mrf.mxu1 }
 0x142   : > { %1759 = vst [vmem:[%s3126_s12 + $0x30] sm:$0xff] %v1751_v25  ;;  %v1766_v24 = vadd.f32 %v1765_v17, %v1751_v25  ;;  %v1781_v26 = vmul.f32 %v1751_v25, %v1751_v25  ;;  %v1231_v28 = vadd.f32 %v1221_v55, %v985_v23 }
 0x144   : > { %v1788_v29 = vadd.f32 %v1787_v39, %v1781_v26  ;;  %v1369_v31 = vadd.f32 %v1359_v5, %v1231_v28 }
 0x146   : > { %v1506_v35 = vadd.f32 %v1496_v33, %v1369_v31 }
 0x148   : > { %v1752_v51 = vadd.f32 %v1742_v37, %v1506_v35 }
 0x14a   : > { %1760 = vst [vmem:[%s3126_s12 + $0x38] sm:$0xff] %v1752_v51  ;;  %v1767_v63 = vadd.f32 %v1766_v24, %v1752_v51  ;;  %v1782_v16 = vmul.f32 %v1752_v51, %v1752_v51 }
 0x14c   : > { %v1768_v32 = vrot.slane %v1767_v63, 4  ;;  %v1789_v40 = vadd.f32 %v1788_v29, %v1782_v16 }
 0x14e   : > { %v1769_v30 = vadd.f32 %v1768_v32, %v1767_v63  ;;  %v1790_v60 = vrot.slane %v1789_v40, 4 }
 0x150   : > { %v1770_v41 = vrot.slane %v1769_v30, 2  ;;  %v1791_v43 = vadd.f32 %v1790_v60, %v1789_v40 }
 0x152   : > { %v1771_v46 = vadd.f32 %v1770_v41, %v1769_v30  ;;  %v1792_v47 = vrot.slane %v1791_v43, 2 }
 0x154   : > { %v1772_v49 = vrot.slane %v1771_v46, 1  ;;  %v1793_v52 = vadd.f32 %v1792_v47, %v1791_v43 }
 0x156   : > { %v1773_v21 = vadd.f32 %v1772_v49, %v1771_v46  ;;  %v1794_v38 = vrot.slane %v1793_v52, 1 }
 0x158   : > { %1774 = vst [vmem:[%s203_s23] sm:$0x1] %v1773_v21  ;;  %v1795_v53 = vadd.f32 %v1794_v38, %v1793_v52 }
 0x15a   : > { %1796 = vst [vmem:[%s203_s23 + $0x1] sm:$0x1] %v1795_v53 }
 0x15b PF: > { %s14_s14 = sadd.s32 1, %s2676_s14   ;;  %s3170_s12 = smov %s2672_s13 }
 0x15c   : > { %p11_p6 = scmp.ge.s32.totalorder %s14_s14, 4   ;;  %s3171_s13 = smov %s3173_s15 }
 0x15e   :  { %13 = sbr.rel (!%p11_p6) target bundleno = 2 (0x2), region = 84 }

// kernel: special_block.8
= control target key start
LH: loop header
LB: loop body
LE: loop exit
PB: predicated region body
PF: predicated region fallthrough
CT: control target
= control target key end

     0   :  { %s2748_s12 = smov 0   ;;  %s2750_s13 = smov 0   ;;  %s3394_s0 = inlined_call_operand.vmem [shape: bf16[2,1,10,10,128], index: 0, kind: input, shape index: {}]   ;;  %s3395_s1 = inlined_call_operand.vmem [shape: bf16[9,128,128], index: 1, kind: input, shape index: {}]   ;;  %s3396_s2 = inlined_call_operand.vmem [shape: f32[128,128], index: 2, kind: output, shape index: {0}]   ;;  %s3397_s3 = inlined_call_operand.vmem [shape: f32[2,2,128], index: 3, kind: output, shape index: {1}]  }
   0x1   :  { %s2752_s14 = smov 0  }
   0x2 LB: > { %s26_s15 = sadd.s32 1, %s2722_s13  ;;  %p2020_p0 = scmp.ge.s32.totalorder %s2726_s14, 1  ;;  %s2726_s14 = sphi %s2752_s14, %s14_s14   ;;  %s2722_s13 = sphi %s2750_s13, %s3403_s13   ;;  %s2718_s12 = sphi %s2748_s12, %s3402_s12  }
   0x3   : > { %p28_p1 = scmp.ge.s32.totalorder %s26_s15, 2  ;;  %p156_p2 = scmp.lt.s32.totalorder %s2726_s14, 3 }
   0x5   : > { %s3405_s15 = smov (%p28_p1, %s26_s15), 0  ;;  %p157_p3 = pnand %p2020_p0, %p156_p2 }
   0x6   : > { %p186_p4 = scmp.lt.s32.totalorder (!%p157_p3), %s2718_s12, 1 }
   0x7   : > { %160 = sbr.rel (%p157_p3) target bundleno = 347 (0x15b), region = 28 }
   0xc   : > { %v2598_v0 = vld [vmem:[%s3395_s1 + $0x78] sm:$0xff]  ;;  %v2597_v2 = vld [vmem:[%s3395_s1 + $0x70] sm:$0xff]  ;;  %s2779_s22 = scalar_select %p186_p4, %s2718_s12, 1  ;;  %v2596_v6 = vld [vmem:[%s3395_s1 + $0x68] sm:$0xff]  ;;  %vm241_vm0 = vsmask.f32 3328 }
   0xd   : > { %v2606_v1 = vld [vmem:[%s3395_s1 + $0xb8] sm:$0xff]  ;;  %2663 = vmatpush.bf16.msra.mxu1 %v2598_v0  ;;  %437 = vmatpush.bf16.msra.mxu0 %v2598_v0  ;;  %v2605_v3 = vld [vmem:[%s3395_s1 + $0xb0] sm:$0xff]  ;;  %v2604_v7 = vld [vmem:[%s3395_s1 + $0xa8] sm:$0xff]  ;;  %vm242_vm1 = vsmask.f32 7440  ;;  %vm591_vm2 = vcmask 1042432  }
   0xe   : > { %707 = vmatpush.bf16.msra.mxu2 %v2606_v1  ;;  %v2618_v4 = vld [vmem:[%s3395_s1 + $0xf8] sm:$0xff]  ;;  %s2679_s27 = smul.u32 80, %s2779_s22  ;;  %v2617_v5 = vld [vmem:[%s3395_s1 + $0xf0] sm:$0xff]  ;;  %v2595_v11 = vld [vmem:[%s3395_s1 + $0x60] sm:$0xff]  ;;  %vm592_vm3 = vcmask 1046532   ;;  %s2024_s19 = sshll.u32 %s2779_s22, 1 }
   0xf   : > { %845 = vmatpush.bf16.msra.mxu3 %v2618_v4  ;;  %v2603_v16 = vld [vmem:[%s3395_s1 + $0xa0] sm:$0xff]  ;;  %v2616_v17 = vld [vmem:[%s3395_s1 + $0xe8] sm:$0xff]  ;;  %v2594_v29 = vld [vmem:[%s3395_s1 + $0x58] sm:$0xff]  ;;  %s203_s23 = scalar_lea.vmem %s3397_s3, %s2024_s19 }
  0x10   : > { %s2800_s9 = scalar_lea.vmem %s3394_s0, %s2679_s27  ;;  %v2615_v34 = vld [vmem:[%s3395_s1 + $0xe0] sm:$0xff]  ;;  %v2602_v44 = vld [vmem:[%s3395_s1 + $0x98] sm:$0xff]  ;;  %vm2838_vm4 = vmor %vm241_vm0, %vm242_vm1 }
  0x11   : > { %2664 = vmatpush.bf16.msra.mxu1 %v2597_v2  ;;  %438 = vmatpush.bf16.msra.mxu0 %v2597_v2  ;;  %v213_v8 = vld [vmem:[%s2800_s9 + $0x20] sm:$0xf]  ;;  %v214_v9 = vld [vmem:[%s2800_s9 + $0x28] sm:$0xf]  ;;  %v2805_v10 = vld [vmem:[%s2800_s9 + $0x24] sm:$0x1] }
  0x12   : > { %708 = vmatpush.bf16.msra.mxu2 %v2605_v3  ;;  %v2811_v12 = vld [vmem:[%s2800_s9 + $0x2c] sm:$0x1]  ;;  %v301_v13 = vshrl.u32 %v213_v8, 16  ;;  %v304_v14 = vshll.u32 %v213_v8, 16  ;;  %v315_v15 = vshrl.u32 %v214_v9, 16  ;;  %v318_v18 = vshll.u32 %v214_v9, 16  ;;  %vm2847_vm5 = vmor %vm591_vm2, %vm592_vm3 }
  0x13   : > { %846 = vmatpush.bf16.msra.mxu3 %v2617_v5  ;;  %v209_v19 = vld [vmem:[%s2800_s9] sm:$0xf]  ;;  %v310_v22 = vshll.u32 %v2805_v10, 16  ;;  %v210_v24 = vld [vmem:[%s2800_s9 + $0x8] sm:$0xf]  ;;  %v324_v26 = vshll.u32 %v2811_v12, 16 }
  0x14   : > { %v303_v20 = vrot.slane %v301_v13, 4  ;;  %v306_v21 = vrot.slane %v304_v14, 5  ;;  %v317_v23 = vrot.slane %v315_v15, 4  ;;  %v320_v25 = vrot.slane %v318_v18, 5  ;;  %v233_v27 = vld [vmem:[%s2800_s9 + $0x4] sm:$0x1] }
  0x15   : > { %2665 = vmatpush.bf16.msra.mxu1 %v2596_v6  ;;  %439 = vmatpush.bf16.msra.mxu0 %v2596_v6  ;;  %v234_v28 = vld [vmem:[%s2800_s9 + $0xc] sm:$0x1]  ;;  %v245_v31 = vshrl.u32 %v209_v19, 16  ;;  %v248_v32 = vshll.u32 %v209_v19, 16  ;;  %v254_v35 = vshll.u32 %v233_v27, 16  ;;  %v259_v36 = vshrl.u32 %v210_v24, 16 }
  0x16   : > { %709 = vmatpush.bf16.msra.mxu2 %v2604_v7  ;;  %v307_v30 = vor.u32 %v306_v21, %v303_v20  ;;  %v321_v33 = vor.u32 %v320_v25, %v317_v23  ;;  %v262_v37 = vshll.u32 %v210_v24, 16  ;;  %v567_v38 = vld [vmem:[%s2800_s9] sm:$0xe]  ;;  %v312_v39 = vrot.slane %v310_v22, 5  ;;  %v568_v43 = vld [vmem:[%s2800_s9 + $0x8] sm:$0xe] }
  0x17   : > { %847 = vmatpush.bf16.msra.mxu3 %v2616_v17  ;;  %v247_v40 = vrot.slane %v245_v31, 4  ;;  %v250_v41 = vrot.slane %v248_v32, 5  ;;  %v268_v42 = vshll.u32 %v234_v28, 16  ;;  %v326_v46 = vrot.slane %v324_v26, 5  ;;  %v2614_v56 = vld [vmem:[%s3395_s1 + $0xd8] sm:$0xff]  ;;  %v2593_v60 = vld [vmem:[%s3395_s1 + $0x50] sm:$0xff] }
  0x18   : > { %v308_v45 = vrot.slane %v307_v30, 4  ;;  %v261_v47 = vrot.slane %v259_v36, 4  ;;  %v264_v48 = vrot.slane %v262_v37, 5  ;;  %v322_v50 = vrot.slane %v321_v33, 4  ;;  %v215_v59 = vld [vmem:[%s2800_s9 + $0x30] sm:$0xf] }
  0x19   : > { %2666 = vmatpush.bf16.msra.mxu1 %v2595_v11  ;;  %440 = vmatpush.bf16.msra.mxu0 %v2595_v11  ;;  %v251_v51 = vor.u32 %v250_v41, %v247_v40  ;;  %v2121_v52 = vrot.slane %v567_v38, 9  ;;  %v596_v53 = vrot.slane %v233_v27, 5  ;;  %v256_v54 = vrot.slane %v254_v35, 5  ;;  %v2601_v0 = vld [vmem:[%s3395_s1 + $0x90] sm:$0xff]  ;;  %v216_v3 = vld [vmem:[%s2800_s9 + $0x38] sm:$0xf] }
  0x1a   : > { %710 = vmatpush.bf16.msra.mxu2 %v2603_v16  ;;  %v265_v55 = vor.u32 %v264_v48, %v261_v47  ;;  %v2122_v58 = vrot.slane %v568_v43, 9  ;;  %v270_v62 = vrot.slane %v268_v42, 5  ;;  %v600_v63 = vrot.slane %v234_v28, 5  ;;  %v211_v7 = vld [vmem:[%s2800_s9 + $0x10] sm:$0xf]  ;;  %v2592_v14 = vld [vmem:[%s3395_s1 + $0x48] sm:$0xff] }
  0x1b   : > { %848 = vmatpush.bf16.msra.mxu3 %v2615_v34  ;;  %v252_v61 = vrot.slane %v251_v51, 4  ;;  %v313_v1 = vsel %vm2838_vm4, %v308_v45, %v312_v39  ;;  %v327_v4 = vsel %vm2838_vm4, %v322_v50, %v326_v46  ;;  %v597_v5 = vsel %vm2847_vm5, %v2121_v52, %v596_v53  ;;  %v2613_v11 = vld [vmem:[%s3395_s1 + $0xd0] sm:$0xff]  ;;  %v2600_v19 = vld [vmem:[%s3395_s1 + $0x88] sm:$0xff]  ;;  %v212_v22 = vld [vmem:[%s2800_s9 + $0x18] sm:$0xf] }
  0x1c   : > { %v266_v2 = vrot.slane %v265_v55, 4  ;;  %v329_v6 = vshrl.u32 %v215_v59, 16  ;;  %v601_v9 = vsel %vm2847_vm5, %v2122_v58, %v600_v63  ;;  %v332_v13 = vshll.u32 %v215_v59, 16  ;;  %v2591_v24 = vld [vmem:[%s3395_s1 + $0x40] sm:$0xff]  ;;  %v2612_v31 = vld [vmem:[%s3395_s1 + $0xc8] sm:$0xff]  ;;  %v2626_v45 = vld [vmem:[%s3395_s1 + $0x138] sm:$0xff] }
  0x1d   : > { %2667 = vmatpush.bf16.msra.mxu1 %v2594_v29  ;;  %441 = vmatpush.bf16.msra.mxu0 %v2594_v29  ;;  %v257_v8 = vsel %vm2838_vm4, %v252_v61, %v256_v54  ;;  %v2876_v15 = vunpack.c.l.b16 %v313_v1  ;;  %v343_v17 = vshrl.u32 %v216_v3, 16  ;;  %v378_v18 = vunpack.c.l.b16 %v327_v4  ;;  %v2590_v29 = vld [vmem:[%s3395_s1 + $0x38] sm:$0xff]  ;;  %v2894_v32 = vld [vmem:[%s2800_s9 + $0x34] sm:$0x1]  ;;  %v2599_v42 = vld [vmem:[%s3395_s1 + $0x80] sm:$0xff] }
  0x1e   : > { %711 = vmatpush.bf16.msra.mxu2 %v2602_v44  ;;  %v271_v16 = vsel %vm2838_vm4, %v266_v2, %v270_v62  ;;  %v643_v20 = vunpack.c.l.b16 %v597_v5  ;;  %v346_v21 = vshll.u32 %v216_v3, 16  ;;  %v273_v23 = vshrl.u32 %v211_v7, 16  ;;  %v2897_v36 = vld [vmem:[%s2800_s9 + $0x3c] sm:$0x1]  ;;  %v2904_v43 = vld [vmem:[%s2800_s9 + $0x14] sm:$0x1] }
  0x1f   : > { %849 = vmatpush.bf16.msra.mxu3 %v2614_v56  ;;  %v373_v25 = vunpack.c.l.b16 %v257_v8  ;;  %v644_v26 = vunpack.c.l.b16 %v601_v9  ;;  %v331_v27 = vrot.slane %v329_v6, 4  ;;  %v276_v28 = vshll.u32 %v211_v7, 16  ;;  %v2907_v44 = vld [vmem:[%s2800_s9 + $0x1c] sm:$0x1]  ;;  %v2611_v56 = vld [vmem:[%s3395_s1 + $0xc0] sm:$0xff]  ;;  %v2625_v1 = vld [vmem:[%s3395_s1 + $0x130] sm:$0xff] }
  0x20   : > { %v374_v30 = vunpack.c.l.b16 %v271_v16  ;;  %v334_v33 = vrot.slane %v332_v13, 5  ;;  %v345_v34 = vrot.slane %v343_v17, 4  ;;  %v348_v35 = vrot.slane %v346_v21, 5  ;;  %v2646_v48 = vld [vmem:[%s3395_s1 + $0x1b8] sm:$0xff]  ;;  %v2203_v62 = vld [vmem:[%s2800_s9 + $0x8] sm:$0xf] }
  0x21   : > { %2668 = vmatpush.bf16.msra.mxu1 %v2593_v60  ;;  %442 = vmatpush.bf16.msra.mxu0 %v2593_v60  ;;  %v275_v37 = vrot.slane %v273_v23, 4  ;;  %v278_v38 = vrot.slane %v276_v28, 5  ;;  %v287_v39 = vshrl.u32 %v212_v22, 16  ;;  %v290_v40 = vshll.u32 %v212_v22, 16  ;;  %v2607_v63 = vld [vmem:[%s2800_s9 + $0xc] sm:$0xf0] }
  0x22   : > { %712 = vmatpush.bf16.msra.mxu2 %v2601_v0  ;;  %v383_v41 = vpack.c.b16 %v378_v18, %v2876_v15  ;;  %v651_v46 = vpack.c.b16 %v644_v26, %v643_v20  ;;  %v338_v47 = vshll.u32 %v2894_v32, 16  ;;  %v381_v52 = vpack.c.b16 %v374_v30, %v373_v25  ;;  %v2589_v0 = vld [vmem:[%s3395_s1 + $0x30] sm:$0xff]  ;;  %v2654_v2 = vld [vmem:[%s3395_s1 + $0x1f8] sm:$0xff]  ;;  %v2249_v13 = vld [vmem:[%s2800_s9 + $0x8] sm:$0xf] }
  0x23   : > { %850 = vmatpush.bf16.msra.mxu3 %v2613_v11  ;;  %v289_v50 = vrot.slane %v287_v39, 4  ;;  %v292_v51 = vrot.slane %v290_v40, 5  ;;  %v335_v53 = vor.u32 %v334_v33, %v331_v27  ;;  %v349_v54 = vor.u32 %v348_v35, %v345_v34  ;;  %v569_v4 = vld [vmem:[%s2800_s9 + $0x10] sm:$0xe]  ;;  %v570_v5 = vld [vmem:[%s2800_s9 + $0x18] sm:$0xe] }
  0x24   : > { %v352_v55 = vshll.u32 %v2897_v36, 16  ;;  %v279_v58 = vor.u32 %v278_v38, %v275_v37  ;;  %v282_v59 = vshll.u32 %v2904_v43, 16  ;;  %v296_v61 = vshll.u32 %v2907_v44, 16  ;;  %v2645_v6 = vld [vmem:[%s3395_s1 + $0x1b0] sm:$0xff]  ;;  %v2624_v25 = vld [vmem:[%s3395_s1 + $0x128] sm:$0xff]  ;;  %v2587_v37 = vld [vmem:[%s3395_s1 + $0x20] sm:$0xff] }
  0x25   : > { %2669 = vmatpush.bf16.msra.mxu1 %v2592_v14  ;;  %443 = vmatpush.bf16.msra.mxu0 %v2592_v14  ;;  %v293_v60 = vor.u32 %v292_v51, %v289_v50  ;;  %v340_v3 = vrot.slane %v338_v47, 5  ;;  %v336_v7 = vrot.slane %v335_v53, 4  ;;  %v350_v8 = vrot.slane %v349_v54, 4  ;;  %v2251_v18 = vld [vmem:[%s2800_s9 + $0x10] sm:$0xf]  ;;  %v2644_v26 = vld [vmem:[%s3395_s1 + $0x1a8] sm:$0xff] }
  0x26   : > { %713 = vmatpush.bf16.msra.mxu2 %v2600_v19  ;;  %v354_v9 = vrot.slane %v352_v55, 5  ;;  %v2204_v11 = vor.u32 %v2607_v63, %v2203_v62  ;;  %v280_v14 = vrot.slane %v279_v58, 4  ;;  %v284_v15 = vrot.slane %v282_v59, 5  ;;  %v2588_v19 = vld [vmem:[%s3395_s1 + $0x28] sm:$0xff]  ;;  %v2586_v55 = vld [vmem:[%s3395_s1 + $0x18] sm:$0xff] }
  0x27   : > { %851 = vmatpush.bf16.msra.mxu3 %v2612_v31  ;;  %v294_v16 = vrot.slane %v293_v60, 4  ;;  %v298_v17 = vrot.slane %v296_v61, 5  ;;  %v2123_v20 = vrot.slane %v569_v4, 9  ;;  %v604_v21 = vrot.slane %v2904_v43, 5  ;;  %v2652_v40 = vld [vmem:[%s3395_s1 + $0x1e8] sm:$0xff]  ;;  %v2623_v43 = vld [vmem:[%s3395_s1 + $0x120] sm:$0xff] }
  0x28   : > { %v2124_v22 = vrot.slane %v570_v5, 9  ;;  %v608_v23 = vrot.slane %v2907_v44, 5  ;;  %v341_v27 = vsel %vm2838_vm4, %v336_v7, %v340_v3  ;;  %v355_v28 = vsel %vm2838_vm4, %v350_v8, %v354_v9  ;;  %v2643_v44 = vld [vmem:[%s3395_s1 + $0x1a0] sm:$0xff]  ;;  %v2979_v47 = vld [vmem:[%s2800_s9 + $0xc] sm:$0x1]  ;;  %v2622_v58 = vld [vmem:[%s3395_s1 + $0x118] sm:$0xff] }
  0x29   : > { %2670 = vmatpush.bf16.msra.mxu1 %v2591_v24  ;;  %444 = vmatpush.bf16.msra.mxu0 %v2591_v24  ;;  %v2653_v24 = vld [vmem:[%s3395_s1 + $0x1f0] sm:$0xff]  ;;  %v902_v30 = vshll.u32 %v2249_v13, 16  ;;  %v285_v31 = vsel %vm2838_vm4, %v280_v14, %v284_v15  ;;  %v299_v33 = vsel %vm2838_vm4, %v294_v16, %v298_v17  ;;  %v913_v34 = vshrl.u32 %v2251_v18, 16  ;;  %v2207_v62 = vld [vmem:[%s2800_s9 + $0x18] sm:$0xf] }
  0x2a   : > { %714 = vmatpush.bf16.msra.mxu2 %v2599_v42  ;;  %v916_v35 = vshll.u32 %v2251_v18, 16  ;;  %v605_v38 = vsel %vm2847_vm5, %v2123_v20, %v604_v21  ;;  %v609_v39 = vsel %vm2847_vm5, %v2124_v22, %v608_v23  ;;  %v380_v42 = vunpack.c.l.b16 %v355_v28  ;;  %v2608_v63 = vld [vmem:[%s2800_s9 + $0x1c] sm:$0xf0]  ;;  %v572_v5 = vld [vmem:[%s2800_s9 + $0x28] sm:$0xe]  ;;  %v2621_v7 = vld [vmem:[%s3395_s1 + $0x110] sm:$0xff] }
  0x2b   : > { %852 = vmatpush.bf16.msra.mxu3 %v2611_v56  ;;  %v904_v50 = vrot.slane %v902_v30, 5  ;;  %v645_v51 = vunpack.c.l.b16 %v605_v38  ;;  %v915_v53 = vrot.slane %v913_v34, 4  ;;  %v2985_v56 = vld [vmem:[%s2800_s9 + $0x14] sm:$0x1]  ;;  %v908_v59 = vshll.u32 %v2979_v47, 16  ;;  %v2642_v17 = vld [vmem:[%s3395_s1 + $0x198] sm:$0xff] }
  0x2c   : > { %455 = vmatmul.bf16.vlgmr.msra.gmra.mxu1 %v383_v41  ;;  %445 = vmatmul.bf16.vlgmr.msra.gmra.mxu0 %v381_v52  ;;  %v379_v41 = vunpack.c.l.b16 %v341_v27  ;;  %v646_v52 = vunpack.c.l.b16 %v609_v39  ;;  %v918_v54 = vrot.slane %v916_v35, 5  ;;  %v922_v4 = vshll.u32 %v2985_v56, 16  ;;  %v2253_v20 = vld [vmem:[%s2800_s9 + $0x18] sm:$0xf]  ;;  %v2651_v21 = vld [vmem:[%s3395_s1 + $0x1e0] sm:$0xff]  ;;  %v2641_v23 = vld [vmem:[%s3395_s1 + $0x190] sm:$0xff] }
  0x2d   : > { %538 = vmatpush.bf16.msrb.mxu1 %v2590_v29  ;;  %1091 = vmatpush.bf16.msrb.mxu0 %v2626_v45  ;;  %v899_v29 = vshrl.u32 %v2249_v13, 16  ;;  %v375_v45 = vunpack.c.l.b16 %v285_v31  ;;  %v2208_v8 = vor.u32 %v2608_v63, %v2207_v62  ;;  %v910_v9 = vrot.slane %v908_v59, 5  ;;  %v2255_v22 = vld [vmem:[%s2800_s9 + $0x20] sm:$0xf]  ;;  %v2579_v39 = vld [vmem:[%s2800_s9 + $0x4] sm:$0xf0] }
  0x2e   : > { %1403 = vmatpush.bf16.msrb.mxu2 %v2646_v48  ;;  %853 = vmatmul.bf16.vlgmr.msra.gmra.mxu3 %v2204_v11  ;;  %v384_v60 = vpack.c.b16 %v380_v42, %v379_v41  ;;  %v919_v3 = vor.u32 %v918_v54, %v915_v53  ;;  %v612_v14 = vrot.slane %v2805_v10, 5  ;;  %v2126_v15 = vrot.slane %v572_v5, 9  ;;  %v2584_v10 = vld [vmem:[%s3395_s1 + $0x8] sm:$0xff]  ;;  %v2583_v34 = vld [vmem:[%s3395_s1] sm:$0xff]  ;;  %v2633_v53 = vld [vmem:[%s3395_s1 + $0x170] sm:$0xff] }
  0x2f   : > { %715 = vmatmul.bf16.vlgmr.msra.gmra.mxu2 %v651_v46  ;;  %1649 = vmatpush.bf16.msrb.mxu3 %v2654_v2  ;;  %v376_v46 = vunpack.c.l.b16 %v299_v33  ;;  %v901_v48 = vrot.slane %v899_v29, 4  ;;  %v652_v2 = vpack.c.b16 %v646_v52, %v645_v51  ;;  %v616_v16 = vrot.slane %v2811_v12, 5  ;;  %v2620_v12 = vld [vmem:[%s3395_s1 + $0x108] sm:$0xff]  ;;  %v2075_v35 = vld [vmem:[%s2800_s9] sm:$0xf] }
  0x30   : > { %v920_v18 = vrot.slane %v919_v3, 4  ;;  %v927_v28 = vshrl.u32 %v2253_v20, 16  ;;  %v930_v30 = vshll.u32 %v2253_v20, 16  ;;  %v941_v31 = vshrl.u32 %v2255_v22, 16  ;;  %v2619_v38 = vld [vmem:[%s3395_s1 + $0x100] sm:$0xff] }
  0x31   : > { %539 = vmatpush.bf16.msrb.mxu1 %v2589_v0  ;;  %1092 = vmatpush.bf16.msrb.mxu0 %v2625_v1  ;;  %v382_v61 = vpack.c.b16 %v376_v46, %v375_v45  ;;  %v905_v0 = vor.u32 %v904_v50, %v901_v48  ;;  %v571_v1 = vld [vmem:[%s2800_s9 + $0x20] sm:$0xe]  ;;  %v617_v27 = vsel %vm2847_vm5, %v2126_v15, %v616_v16  ;;  %v944_v33 = vshll.u32 %v2255_v22, 16  ;;  %v3049_v45 = vld [vmem:[%s2800_s9 + $0x1c] sm:$0x1]  ;;  %v3081_v15 = vld [vmem:[%s3395_s1 + $0x228] sm:$0xff] }
  0x32   : > { %1404 = vmatpush.bf16.msrb.mxu2 %v2645_v6  ;;  %v2585_v6 = vld [vmem:[%s3395_s1 + $0x10] sm:$0xff]  ;;  %v2125_v11 = vrot.slane %v571_v1, 9  ;;  %v3052_v46 = vld [vmem:[%s2800_s9 + $0x24] sm:$0x1]  ;;  %v929_v48 = vrot.slane %v927_v28, 4  ;;  %v932_v50 = vrot.slane %v930_v30, 5  ;;  %v2076_v54 = vor.u32 %v2579_v39, %v2075_v35 }
  0x33   : > { %1650 = vmatpush.bf16.msrb.mxu3 %v2653_v24  ;;  %v906_v13 = vrot.slane %v905_v0, 4  ;;  %v2650_v24 = vld [vmem:[%s3395_s1 + $0x1d8] sm:$0xff]  ;;  %v943_v51 = vrot.slane %v941_v31, 4  ;;  %v946_v52 = vrot.slane %v944_v33, 5  ;;  %v950_v59 = vshll.u32 %v3052_v46, 16  ;;  %v3065_v1 = vld [vmem:[%s3395_s1 + $0x230] sm:$0xff] }
  0x34   : > { %v2609_v62 = vld [vmem:[%s2800_s9 + $0x2c] sm:$0xf0]  ;;  %v933_v63 = vor.u32 %v932_v50, %v929_v48  ;;  %v2257_v3 = vld [vmem:[%s2800_s9 + $0x28] sm:$0xf]  ;;  %v574_v5 = vld [vmem:[%s2800_s9 + $0x38] sm:$0xe] }
  0x35   : > { %540 = vmatpush.bf16.msrb.mxu1 %v2588_v19  ;;  %1093 = vmatpush.bf16.msrb.mxu0 %v2624_v25  ;;  %v924_v19 = vrot.slane %v922_v4, 5  ;;  %v911_v25 = vsel %vm2838_vm4, %v906_v13, %v910_v9  ;;  %v947_v0 = vor.u32 %v946_v52, %v943_v51  ;;  %v573_v4 = vld [vmem:[%s2800_s9 + $0x30] sm:$0xe]  ;;  %v952_v9 = vrot.slane %v950_v59, 5  ;;  %v2639_v22 = vld [vmem:[%s3395_s1 + $0x180] sm:$0xff]  ;;  %v2630_v31 = vld [vmem:[%s3395_s1 + $0x158] sm:$0xff] }
  0x36   : > { %1405 = vmatpush.bf16.msrb.mxu2 %v2644_v26  ;;  %v613_v26 = vsel %vm2847_vm5, %v2125_v11, %v612_v14  ;;  %v2259_v11 = vld [vmem:[%s2800_s9 + $0x30] sm:$0xf]  ;;  %v934_v13 = vrot.slane %v933_v63, 4  ;;  %v955_v16 = vshrl.u32 %v2257_v3, 16  ;;  %v620_v20 = vrot.slane %v2894_v32, 5  ;;  %v2648_v32 = vld [vmem:[%s3395_s1 + $0x1c8] sm:$0xff] }
  0x37   : > { %1651 = vmatpush.bf16.msrb.mxu3 %v2652_v40  ;;  %v925_v29 = vsel %vm2838_vm4, %v920_v18, %v924_v19  ;;  %v1027_v40 = vunpack.c.l.b16 %v911_v25  ;;  %v647_v42 = vunpack.c.l.b16 %v613_v26  ;;  %v948_v14 = vrot.slane %v947_v0, 4  ;;  %v2649_v18 = vld [vmem:[%s3395_s1 + $0x1d0] sm:$0xff]  ;;  %v3105_v28 = vld [vmem:[%s3395_s1 + $0x220] sm:$0xff]  ;;  %v3115_v33 = vld [vmem:[%s2800_s9 + $0x2c] sm:$0x1] }
  0x38   : > { %v1028_v41 = vunpack.c.l.b16 %v925_v29  ;;  %v2127_v19 = vrot.slane %v573_v4, 9  ;;  %v957_v26 = vrot.slane %v955_v16, 4  ;;  %v3118_v39 = vld [vmem:[%s2800_s9 + $0x34] sm:$0x1]  ;;  %v2451_v51 = vld [vmem:[%s2800_s9 + $0x18] sm:$0xf] }
  0x39   : > { %541 = vmatpush.bf16.msrb.mxu1 %v2587_v37  ;;  %1094 = vmatpush.bf16.msrb.mxu0 %v2623_v43  ;;  %v2634_v37 = vld [vmem:[%s3395_s1 + $0x178] sm:$0xff]  ;;  %v648_v43 = vunpack.c.l.b16 %v617_v27  ;;  %v953_v25 = vsel %vm2838_vm4, %v948_v14, %v952_v9  ;;  %v964_v52 = vshll.u32 %v3115_v33, 16  ;;  %v978_v59 = vshll.u32 %v3118_v39, 16  ;;  %v2610_v63 = vld [vmem:[%s2800_s9 + $0x3c] sm:$0xf0] }
  0x3a   : > { %1406 = vmatpush.bf16.msrb.mxu2 %v2643_v44  ;;  %v3046_v44 = vld [vmem:[%s3395_s1 + $0x238] sm:$0xff]  ;;  %v621_v29 = vsel %vm2847_vm5, %v2127_v19, %v620_v20  ;;  %v2647_v20 = vld [vmem:[%s3395_s1 + $0x1c0] sm:$0xff] }
  0x3b   : > { %1652 = vmatpush.bf16.msrb.mxu3 %v2651_v21  ;;  %v2128_v21 = vrot.slane %v574_v5, 9  ;;  %v2261_v0 = vld [vmem:[%s2800_s9 + $0x38] sm:$0xf]  ;;  %v3136_v5 = vld [vmem:[%s2800_s9 + $0x14] sm:$0x1]  ;;  %v980_v16 = vrot.slane %v978_v59, 5 }
  0x3c   : > { %460 = vmatmul.bf16.gmra.mxu1 %v384_v60  ;;  %450 = vmatmul.bf16.gmra.mxu0 %v382_v61  ;;  %v653_v60 = vpack.c.b16 %v648_v43, %v647_v42  ;;  %v2211_v61 = vld [vmem:[%s2800_s9 + $0x28] sm:$0xf]  ;;  %v2580_v42 = vld [vmem:[%s2800_s9 + $0x14] sm:$0xf0]  ;;  %v649_v43 = vunpack.c.l.b16 %v621_v29 }
  0x3d   : > { %542 = vmatpush.bf16.msrb.mxu1 %v2586_v55  ;;  %1095 = vmatpush.bf16.msrb.mxu0 %v2622_v58  ;;  %v1035_v55 = vpack.c.b16 %v1028_v41, %v1027_v40  ;;  %v936_v58 = vshll.u32 %v3049_v45, 16  ;;  %v2449_v40 = vld [vmem:[%s2800_s9 + $0x10] sm:$0xf]  ;;  %v3148_v19 = vld [vmem:[%s3395_s1 + $0x218] sm:$0xff]  ;;  %v2313_v29 = vld [vmem:[%s2800_s9 + $0x8] sm:$0xe] }
  0x3e   : > { %1407 = vmatpush.bf16.msrb.mxu2 %v2642_v17  ;;  %858 = vmatmul.bf16.gmra.mxu3 %v2208_v8  ;;  %v958_v17 = vshll.u32 %v2257_v3, 16  ;;  %v2079_v41 = vld [vmem:[%s2800_s9 + $0x10] sm:$0xf] }
  0x3f   : > { %720 = vmatmul.bf16.gmra.mxu2 %v652_v2  ;;  %1653 = vmatpush.bf16.msrb.mxu3 %v2650_v24  ;;  %v2632_v2 = vld [vmem:[%s3395_s1 + $0x168] sm:$0xff]  ;;  %v938_v8 = vrot.slane %v936_v58, 5  ;;  %v972_v24 = vshll.u32 %v2259_v11, 16 }
  0x40   : > { %v960_v27 = vrot.slane %v958_v17, 5  ;;  %v2263_v17 = vld [vmem:[%s2800_s9 + $0x40] sm:$0xf] }
  0x41   : > { %543 = vmatpush.bf16.msrb.mxu1 %v2585_v6  ;;  %1096 = vmatpush.bf16.msrb.mxu0 %v2621_v7  ;;  %v2640_v6 = vld [vmem:[%s3395_s1 + $0x188] sm:$0xff]  ;;  %v2212_v7 = vor.u32 %v2609_v62, %v2211_v61  ;;  %v974_v35 = vrot.slane %v972_v24, 5  ;;  %v2080_v61 = vor.u32 %v2580_v42, %v2079_v41  ;;  %v3174_v42 = vld [vmem:[%s2800_s9 + $0x3c] sm:$0x1] }
  0x42   : > { %1408 = vmatpush.bf16.msrb.mxu2 %v2641_v23  ;;  %v969_v23 = vshrl.u32 %v2259_v11, 16  ;;  %v961_v50 = vor.u32 %v960_v27, %v957_v26  ;;  %v3161_v27 = vld [vmem:[%s3395_s1 + $0x210] sm:$0xff] }
  0x43   : > { %1654 = vmatpush.bf16.msrb.mxu3 %v2649_v18  ;;  %v983_v18 = vshrl.u32 %v2261_v0, 16 }
  0x44   : > { %v962_v4 = vrot.slane %v961_v50, 4 }
  0x45   : > { %544 = vmatpush.bf16.msrb.mxu1 %v2584_v10  ;;  %1097 = vmatpush.bf16.msrb.mxu0 %v2620_v12  ;;  %v624_v10 = vrot.slane %v2897_v36, 5  ;;  %v2631_v12 = vld [vmem:[%s3395_s1 + $0x160] sm:$0xff]  ;;  %v939_v36 = vsel %vm2838_vm4, %v934_v13, %v938_v8 }
  0x46   : > { %1409 = vmatpush.bf16.msrb.mxu2 %v2640_v6  ;;  %v966_v6 = vrot.slane %v964_v52, 5 }
  0x47   : > { %v625_v30 = vsel %vm2847_vm5, %v2128_v21, %v624_v10  ;;  %1655 = vmatpush.bf16.msrb.mxu3 %v2648_v32  ;;  %v986_v21 = vshll.u32 %v2261_v0, 16  ;;  %v1158_v32 = vrot.slane %v2985_v56, 5  ;;  %v985_v56 = vrot.slane %v983_v18, 4 }
  0x48   : > { %v650_v48 = vunpack.c.l.b16 %v625_v30 }
  0x49   : > { %545 = vmatpush.bf16.msrb.mxu1 %v2583_v34  ;;  %1098 = vmatpush.bf16.msrb.mxu0 %v2619_v38  ;;  %v971_v34 = vrot.slane %v969_v23, 4  ;;  %v1030_v38 = vunpack.c.l.b16 %v953_v25  ;;  %v1154_v23 = vrot.slane %v2979_v47, 5  ;;  %v1000_v25 = vshll.u32 %v2263_v17, 16 }
  0x4a   : > { %1410 = vmatpush.bf16.msrb.mxu2 %v2639_v22  ;;  %v654_v3 = vpack.c.b16 %v650_v48, %v649_v43  ;;  %v1466_v22 = vshll.u32 %v3136_v5, 16  ;;  %v967_v47 = vsel %vm2838_vm4, %v962_v4, %v966_v6  ;;  %v2403_v4 = vld [vmem:[%s2800_s9 + $0x10] sm:$0xf] }
  0x4b   : > { %v975_v58 = vor.u32 %v974_v35, %v971_v34  ;;  %1656 = vmatpush.bf16.msrb.mxu3 %v2647_v20  ;;  %v2314_v34 = vld [vmem:[%s2800_s9 + $0x10] sm:$0xe]  ;;  %v2321_v35 = vrot.slane %v2313_v29, 9  ;;  %v1002_v52 = vrot.slane %v1000_v25, 5 }
  0x4c   : > { %546 = vmatmul.bf16.vlgmr.msrb.gmra.mxu1 %v2076_v54  ;;  %1099 = vmatmul.bf16.vlgmr.msrb.gmra.mxu0 %v1035_v55  ;;  %v1460_v54 = vshll.u32 %v2449_v40, 16  ;;  %v1471_v55 = vshrl.u32 %v2451_v51, 16  ;;  %v2322_v41 = vrot.slane %v2314_v34, 9  ;;  %v2655_v34 = vld [vmem:[%s3395_s1 + $0x200] sm:$0xff] }
  0x4d   : > { %1265 = vmatpush.bf16.msra.mxu1 %v2634_v37  ;;  %1823 = vmatpush.bf16.msra.mxu0 %v3046_v44  ;;  %v1029_v37 = vunpack.c.l.b16 %v939_v36  ;;  %v976_v14 = vrot.slane %v975_v58, 4  ;;  %v997_v36 = vshrl.u32 %v2263_v17, 16  ;;  %v1155_v50 = vsel %vm2847_vm5, %v2321_v35, %v1154_v23  ;;  %v3207_v23 = vld [vmem:[%s2800_s9 + $0x2c] sm:$0x1] }
  0x4e   : > { %863 = vmatmul.bf16.gmra.mxu3 %v2212_v7  ;;  %2671 = vmatpush.bf16.msra.mxu2 %v3046_v44  ;;  %v2215_v44 = vld [vmem:[%s2800_s9 + $0x38] sm:$0xf]  ;;  %v3139_v7 = vld [vmem:[%s2800_s9 + $0x1c] sm:$0x1]  ;;  %v1462_v9 = vrot.slane %v1460_v54, 5  ;;  %v1473_v11 = vrot.slane %v1471_v55, 4  ;;  %v1201_v54 = vunpack.c.l.b16 %v1155_v50  ;;  %v1031_v58 = vunpack.c.l.b16 %v967_v47 }
  0x4f   : > { %725 = vmatmul.bf16.gmra.mxu2 %v653_v60  ;;  %v2629_v60 = vld [vmem:[%s3395_s1 + $0x150] sm:$0xff]  ;;  %v1036_v62 = vpack.c.b16 %v1030_v38, %v1029_v37  ;;  %v2216_v13 = vor.u32 %v2610_v63, %v2215_v44  ;;  %v1480_v24 = vshll.u32 %v3139_v7, 16  ;;  %v981_v30 = vsel %vm2838_vm4, %v976_v14, %v980_v16  ;;  %v2083_v55 = vld [vmem:[%s2800_s9 + $0x20] sm:$0xf]  ;;  %v2581_v44 = vld [vmem:[%s2800_s9 + $0x24] sm:$0xf0] }
  0x50   : > { %v988_v37 = vrot.slane %v986_v21, 5  ;;  %v1032_v59 = vunpack.c.l.b16 %v981_v30  ;;  %v992_v63 = vshll.u32 %v3174_v42, 16  ;;  %v2084_v18 = vor.u32 %v2581_v44, %v2083_v55  ;;  %v2087_v55 = vld [vmem:[%s2800_s9 + $0x30] sm:$0xf] }
  0x51   : > { %1266 = vmatpush.bf16.msra.mxu1 %v2633_v53  ;;  %1824 = vmatpush.bf16.msra.mxu0 %v3065_v1  ;;  %v1457_v53 = vshrl.u32 %v2449_v40, 16  ;;  %v1468_v40 = vrot.slane %v1466_v22, 5  ;;  %v1482_v48 = vrot.slane %v1480_v24, 5 }
  0x52   : > { %2672 = vmatpush.bf16.msra.mxu2 %v3065_v1  ;;  %v2628_v1 = vld [vmem:[%s3395_s1 + $0x148] sm:$0xff] }
  0x53   : > { %v1459_v8 = vrot.slane %v1457_v53, 4  ;;  %v1159_v53 = vsel %vm2847_vm5, %v2322_v41, %v1158_v32 }
  0x55   : > { %1267 = vmatpush.bf16.msra.mxu1 %v2632_v2  ;;  %1825 = vmatpush.bf16.msra.mxu0 %v3081_v15  ;;  %v1474_v2 = vshll.u32 %v2451_v51, 16  ;;  %v1463_v10 = vor.u32 %v1462_v9, %v1459_v8  ;;  %v999_v51 = vrot.slane %v997_v36, 4 }
  0x56   : > { %2673 = vmatpush.bf16.msra.mxu2 %v3081_v15  ;;  %v2656_v15 = vld [vmem:[%s3395_s1 + $0x208] sm:$0xff] }
  0x57   : > { %v1464_v38 = vrot.slane %v1463_v10, 4 }
  0x59   : > { %1268 = vmatpush.bf16.msra.mxu1 %v2631_v12  ;;  %1826 = vmatpush.bf16.msra.mxu0 %v3105_v28  ;;  %v1476_v12 = vrot.slane %v1474_v2, 5  ;;  %v1469_v0 = vsel %vm2838_vm4, %v1464_v38, %v1468_v40  ;;  %v2453_v2 = vld [vmem:[%s2800_s9 + $0x20] sm:$0xf] }
  0x5a   : > { %2674 = vmatpush.bf16.msra.mxu2 %v3105_v28  ;;  %v1485_v9 = vshrl.u32 %v2453_v2, 16  ;;  %v1003_v28 = vor.u32 %v1002_v52, %v999_v51  ;;  %v1585_v10 = vunpack.c.l.b16 %v1469_v0  ;;  %v2316_v38 = vld [vmem:[%s2800_s9 + $0x20] sm:$0xe]  ;;  %v1162_v52 = vrot.slane %v3049_v45, 5 }
  0x5b   : > { %v1477_v26 = vor.u32 %v1476_v12, %v1473_v11  ;;  %v1488_v11 = vshll.u32 %v2453_v2, 16  ;;  %v3204_v12 = vld [vmem:[%s2800_s9 + $0x24] sm:$0x1] }
  0x5c   : > { %551 = vmatmul.bf16.gmra.mxu1 %v2080_v61  ;;  %1104 = vmatmul.bf16.gmra.mxu0 %v1036_v62  ;;  %v1202_v61 = vunpack.c.l.b16 %v1159_v53  ;;  %v989_v62 = vor.u32 %v988_v37, %v985_v56  ;;  %v1487_v20 = vrot.slane %v1485_v9, 4  ;;  %v1004_v29 = vrot.slane %v1003_v28, 4  ;;  %v2315_v37 = vld [vmem:[%s2800_s9 + $0x18] sm:$0xe] }
  0x5d   : > { %1269 = vmatpush.bf16.msra.mxu1 %v2630_v31  ;;  %1827 = vmatpush.bf16.msra.mxu0 %v3148_v19  ;;  %v2627_v31 = vld [vmem:[%s3395_s1 + $0x140] sm:$0xff]  ;;  %v1478_v43 = vrot.slane %v1477_v26, 4  ;;  %v1490_v21 = vrot.slane %v1488_v11, 5  ;;  %v994_v26 = vrot.slane %v992_v63, 5  ;;  %v1494_v56 = vshll.u32 %v3204_v12, 16 }
  0x5e   : > { %868 = vmatmul.bf16.gmra.mxu3 %v2216_v13  ;;  %v3198_v8 = vpack.c.b16 %v1202_v61, %v1201_v54  ;;  %v2635_v13 = vld [vmem:[%s2800_s9 + $0x14] sm:$0xf0]  ;;  %2675 = vmatpush.bf16.msra.mxu2 %v3148_v19  ;;  %v990_v25 = vrot.slane %v989_v62, 4  ;;  %v1508_v19 = vshll.u32 %v3207_v23, 16  ;;  %v2323_v50 = vrot.slane %v2315_v37, 9 }
  0x5f   : > { %730 = vmatmul.bf16.gmra.mxu2 %v654_v3  ;;  %v2455_v3 = vld [vmem:[%s2800_s9 + $0x28] sm:$0xf]  ;;  %v1483_v6 = vsel %vm2838_vm4, %v1478_v43, %v1482_v48  ;;  %v2404_v36 = vor.u32 %v2635_v13, %v2403_v4  ;;  %v1491_v30 = vor.u32 %v1490_v21, %v1487_v20  ;;  %v1496_v43 = vrot.slane %v1494_v56, 5  ;;  %v2513_v63 = vld [vmem:[%s2800_s9 + $0x10] sm:$0xe] }
  0x60   : > { %v1499_v16 = vshrl.u32 %v2455_v3, 16  ;;  %v1502_v17 = vshll.u32 %v2455_v3, 16  ;;  %v1586_v22 = vunpack.c.l.b16 %v1483_v6  ;;  %v995_v40 = vsel %vm2838_vm4, %v990_v25, %v994_v26  ;;  %v2514_v3 = vld [vmem:[%s2800_s9 + $0x18] sm:$0xe]  ;;  %v2457_v4 = vld [vmem:[%s2800_s9 + $0x30] sm:$0xf] }
  0x61   : > { %1270 = vmatpush.bf16.msra.mxu1 %v2629_v60  ;;  %1828 = vmatpush.bf16.msra.mxu0 %v3161_v27  ;;  %v3187_v60 = vld [vmem:[%s2800_s9 + $0x44] sm:$0x1]  ;;  %v1510_v48 = vrot.slane %v1508_v19, 5  ;;  %v2324_v53 = vrot.slane %v2316_v38, 9  ;;  %v1166_v54 = vrot.slane %v3052_v46, 5  ;;  %v1033_v44 = vunpack.c.l.b16 %v995_v40 }
  0x62   : > { %v1006_v14 = vshll.u32 %v3187_v60, 16  ;;  %v1501_v24 = vrot.slane %v1499_v16, 4  ;;  %v1504_v32 = vrot.slane %v1502_v17, 5  ;;  %2676 = vmatpush.bf16.msra.mxu2 %v3161_v27  ;;  %v1492_v27 = vrot.slane %v1491_v30, 4  ;;  %v2459_v6 = vld [vmem:[%s2800_s9 + $0x38] sm:$0xf] }
  0x63   : > { %v1167_v61 = vsel %vm2847_vm5, %v2324_v53, %v1166_v54  ;;  %v1712_v62 = vrot.slane %v3136_v5, 5  ;;  %v1513_v11 = vshrl.u32 %v2457_v4, 16  ;;  %v1516_v13 = vshll.u32 %v2457_v4, 16  ;;  %v2407_v17 = vld [vmem:[%s2800_s9 + $0x20] sm:$0xf] }
  0x64   : > { %v1008_v47 = vrot.slane %v1006_v14, 5  ;;  %v1505_v35 = vor.u32 %v1504_v32, %v1501_v24  ;;  %v1204_v0 = vunpack.c.l.b16 %v1167_v61  ;;  %v1497_v46 = vsel %vm2838_vm4, %v1492_v27, %v1496_v43  ;;  %v2317_v53 = vld [vmem:[%s2800_s9 + $0x28] sm:$0xe]  ;;  %v2318_v54 = vld [vmem:[%s2800_s9 + $0x30] sm:$0xe] }
  0x65   : > { %1271 = vmatpush.bf16.msra.mxu1 %v2628_v1  ;;  %1829 = vmatpush.bf16.msra.mxu0 %v2656_v15  ;;  %v1037_v1 = vpack.c.b16 %v1032_v59, %v1031_v58  ;;  %v1163_v59 = vsel %vm2847_vm5, %v2323_v50, %v1162_v52  ;;  %v1527_v5 = vshrl.u32 %v2459_v6, 16  ;;  %v1716_v16 = vrot.slane %v3139_v7, 5  ;;  %v2411_v50 = vld [vmem:[%s2800_s9 + $0x30] sm:$0xf]  ;;  %v2515_v4 = vld [vmem:[%s2800_s9 + $0x20] sm:$0xe] }
  0x66   : > { %v1009_v41 = vsel %vm2838_vm4, %v1004_v29, %v1008_v47  ;;  %2677 = vmatpush.bf16.msra.mxu2 %v2656_v15  ;;  %v1506_v51 = vrot.slane %v1505_v35, 4  ;;  %v2582_v15 = vld [vmem:[%s2800_s9 + $0x34] sm:$0xf0]  ;;  %v1203_v45 = vunpack.c.l.b16 %v1163_v59  ;;  %v1587_v20 = vunpack.c.l.b16 %v1497_v46  ;;  %v3244_v29 = vld [vmem:[%s2800_s9 + $0x34] sm:$0x1] }
  0x67   : > { %v1034_v58 = vunpack.c.l.b16 %v1009_v41  ;;  %v2088_v28 = vor.u32 %v2582_v15, %v2087_v55  ;;  %v1515_v24 = vrot.slane %v1513_v11, 4  ;;  %v1518_v32 = vrot.slane %v1516_v13, 5  ;;  %v3247_v47 = vld [vmem:[%s2800_s9 + $0x3c] sm:$0x1]  ;;  %v2461_v55 = vld [vmem:[%s2800_s9 + $0x40] sm:$0xf] }
  0x68   : > { %v1511_v2 = vsel %vm2838_vm4, %v1506_v51, %v1510_v48  ;;  %v3238_v9 = vpack.c.b16 %v1204_v0, %v1203_v45  ;;  %v1536_v35 = vshll.u32 %v3247_v47, 16  ;;  %v2326_v59 = vrot.slane %v2318_v54, 9  ;;  %v2463_v15 = vld [vmem:[%s2800_s9 + $0x48] sm:$0xf] }
  0x69   : > { %1272 = vmatpush.bf16.msra.mxu1 %v2627_v31  ;;  %v1593_v31 = vpack.c.b16 %v1586_v22, %v1585_v10  ;;  %1830 = vmatpush.bf16.msra.mxu0 %v2655_v34  ;;  %v1038_v14 = vpack.c.b16 %v1034_v58, %v1033_v44  ;;  %v1588_v21 = vunpack.c.l.b16 %v1511_v2  ;;  %v2521_v10 = vrot.slane %v2513_v63, 9  ;;  %v2516_v11 = vld [vmem:[%s2800_s9 + $0x28] sm:$0xe] }
  0x6a   : > { %2678 = vmatpush.bf16.msra.mxu2 %v2655_v34  ;;  %v2522_v22 = vrot.slane %v2514_v3, 9  ;;  %v1519_v19 = vor.u32 %v1518_v32, %v1515_v24  ;;  %v1538_v43 = vrot.slane %v1536_v35, 5  ;;  %v2325_v44 = vrot.slane %v2317_v53, 9 }
  0x6b   : > { %v1594_v30 = vpack.c.b16 %v1588_v21, %v1587_v20  ;;  %v1713_v7 = vsel %vm2847_vm5, %v2521_v10, %v1712_v62  ;;  %v1170_v58 = vrot.slane %v3115_v33, 5  ;;  %v1174_v61 = vrot.slane %v3118_v39, 5  ;;  %v2637_v62 = vld [vmem:[%s2800_s9 + $0x34] sm:$0xf0] }
  0x6c   : > { %556 = vmatmul.bf16.gmra.mxu1 %v2084_v18  ;;  %1109 = vmatmul.bf16.gmra.mxu0 %v1037_v1  ;;  %v2636_v18 = vld [vmem:[%s2800_s9 + $0x24] sm:$0xf0]  ;;  %v1530_v1 = vshll.u32 %v2459_v6, 16  ;;  %v1717_v56 = vsel %vm2847_vm5, %v2522_v22, %v1716_v16  ;;  %v1759_v37 = vunpack.c.l.b16 %v1713_v7  ;;  %v1520_v40 = vrot.slane %v1519_v19, 4  ;;  %v3274_v16 = vld [vmem:[%s2800_s9 + $0x44] sm:$0x1] }
  0x6d   : > { %v2408_v26 = vor.u32 %v2636_v18, %v2407_v17  ;;  %v1760_v38 = vunpack.c.l.b16 %v1717_v56  ;;  %v1541_v63 = vshrl.u32 %v2461_v55, 16  ;;  %v1544_v45 = vshll.u32 %v2461_v55, 16  ;;  %v3277_v17 = vld [vmem:[%s2800_s9 + $0x4c] sm:$0x1] }
  0x6e   : > { %1657 = vmatmul.bf16.vlgmr.msrb.gmra.mxu3 %v1593_v31  ;;  %v1532_v25 = vrot.slane %v1530_v1, 5  ;;  %v1522_v31 = vshll.u32 %v3244_v29, 16  ;;  %v1555_v0 = vshrl.u32 %v2463_v15, 16  ;;  %v1558_v46 = vshll.u32 %v2463_v15, 16 }
  0x6f   : > { %1411 = vmatmul.bf16.vlgmr.msrb.gmra.mxu2 %v2404_v36  ;;  %v1529_v36 = vrot.slane %v1527_v5, 4  ;;  %v1767_v48 = vpack.c.b16 %v1760_v38, %v1759_v37  ;;  %v1171_v6 = vsel %vm2847_vm5, %v2325_v44, %v1170_v58  ;;  %v1175_v33 = vsel %vm2847_vm5, %v2326_v59, %v1174_v61  ;;  %v2319_v38 = vld [vmem:[%s2800_s9 + $0x38] sm:$0xe] }
  0x70   : > { %v1524_v41 = vrot.slane %v1522_v31, 5  ;;  %v1205_v13 = vunpack.c.l.b16 %v1171_v6  ;;  %v1206_v39 = vunpack.c.l.b16 %v1175_v33  ;;  %v1543_v5 = vrot.slane %v1541_v63, 4  ;;  %v2518_v61 = vld [vmem:[%s2800_s9 + $0x38] sm:$0xe]  ;;  %v2520_v63 = vld [vmem:[%s2800_s9 + $0x48] sm:$0xe] }
  0x71   : > { %v1533_v34 = vor.u32 %v1532_v25, %v1529_v36  ;;  %v1557_v18 = vrot.slane %v1555_v0, 4  ;;  %v1560_v1 = vrot.slane %v1558_v46, 5  ;;  %v2523_v20 = vrot.slane %v2515_v4, 9 }
  0x72   : > { %v1525_v51 = vsel %vm2838_vm4, %v1520_v40, %v1524_v41  ;;  %v3279_v21 = vpack.c.b16 %v1206_v39, %v1205_v13  ;;  %v1720_v22 = vrot.slane %v3204_v12, 5  ;;  %v2524_v24 = vrot.slane %v2516_v11, 9  ;;  %v2320_v40 = vld [vmem:[%s2800_s9 + $0x40] sm:$0xe] }
  0x73   : > { %v1534_v27 = vrot.slane %v1533_v34, 4  ;;  %v1589_v2 = vunpack.c.l.b16 %v1525_v51  ;;  %v1724_v32 = vrot.slane %v3207_v23, 5  ;;  %v1550_v25 = vshll.u32 %v3274_v16, 16  ;;  %v2638_v51 = vld [vmem:[%s2800_s9 + $0x44] sm:$0xf0] }
  0x74   : > { %v1721_v7 = vsel %vm2847_vm5, %v2523_v20, %v1720_v22  ;;  %v2327_v41 = vrot.slane %v2319_v38, 9  ;;  %v1728_v0 = vrot.slane %v3244_v29, 5  ;;  %v2526_v46 = vrot.slane %v2518_v61, 9 }
  0x75   : > { %v1539_v52 = vsel %vm2838_vm4, %v1534_v27, %v1538_v43  ;;  %v1725_v12 = vsel %vm2847_vm5, %v2524_v24, %v1724_v32  ;;  %v1552_v23 = vrot.slane %v1550_v25, 5  ;;  %v1761_v31 = vunpack.c.l.b16 %v1721_v7 }
  0x76   : > { %v1590_v3 = vunpack.c.l.b16 %v1539_v52  ;;  %v1762_v34 = vunpack.c.l.b16 %v1725_v12  ;;  %v1178_v27 = vrot.slane %v3174_v42, 5  ;;  %v2328_v43 = vrot.slane %v2320_v40, 9  ;;  %v2517_v42 = vld [vmem:[%s2800_s9 + $0x30] sm:$0xe] }
  0x77   : > { %v1740_v4 = vrot.slane %v3277_v17, 5  ;;  %v2528_v33 = vrot.slane %v2520_v63, 9 }
  0x78   : > { %v1595_v10 = vpack.c.b16 %v1590_v3, %v1589_v2  ;;  %v1768_v52 = vpack.c.b16 %v1762_v34, %v1761_v31  ;;  %v1179_v53 = vsel %vm2847_vm5, %v2327_v41, %v1178_v27  ;;  %v1732_v2 = vrot.slane %v3247_v47, 5 }
  0x79   : > { %v1207_v44 = vunpack.c.l.b16 %v1179_v53  ;;  %v1736_v3 = vrot.slane %v3274_v16, 5  ;;  %v1741_v29 = vsel %vm2847_vm5, %v2528_v33, %v1740_v4 }
  0x7c   : > { %561 = vmatmul.bf16.gmra.mxu1 %v2088_v28  ;;  %1114 = vmatmul.bf16.gmra.mxu0 %v1038_v14  ;;  %v1546_v28 = vrot.slane %v1544_v45, 5  ;;  %v2412_v14 = vor.u32 %v2637_v62, %v2411_v50  ;;  %v2415_v50 = vld [vmem:[%s2800_s9 + $0x40] sm:$0xf]  ;;  %v2525_v45 = vrot.slane %v2517_v42, 9 }
  0x7d   : > { %v2416_v59 = vor.u32 %v2638_v51, %v2415_v50  ;;  %v2519_v62 = vld [vmem:[%s2800_s9 + $0x40] sm:$0xe]  ;;  %s2022_s9 = sshll.u32 %s2718_s12, 3 }
  0x7e   : > { %1662 = vmatmul.bf16.gmra.mxu3 %v1594_v30  ;;  %v1547_v36 = vor.u32 %v1546_v28, %v1543_v5  ;;  %v1564_v30 = vshll.u32 %v3277_v17, 16  ;;  %v2527_v6 = vrot.slane %v2519_v62, 9  ;;  %v1729_v11 = vsel %vm2847_vm5, %v2525_v45, %v1728_v0  ;;  %p193_p5 = scmp.lt.s32.totalorder %s2022_s9, 15 }
  0x7f   : > { %1416 = vmatmul.bf16.gmra.mxu2 %v2408_v26  ;;  %v1561_v26 = vor.u32 %v1560_v1, %v1557_v18  ;;  %v1763_v47 = vunpack.c.l.b16 %v1729_v11  ;;  %v1766_v28 = vunpack.c.l.b16 %v1741_v29 }
  0x80   : > { %v1566_v19 = vrot.slane %v1564_v30, 5  ;;  %v1737_v13 = vsel %vm2847_vm5, %v2527_v6, %v1736_v3  ;;  %s3407_s9 = smov (!%p193_p5, %s2022_s9), 15 }
  0x81   : > { %v1562_v56 = vrot.slane %v1561_v26, 4  ;;  %v1765_v5 = vunpack.c.l.b16 %v1737_v13  ;;  %s2023_s16 = sshll.u32 %s3407_s9, 3 }
  0x82   : > { %s3356_s12 = scalar_lea.vmem %s3396_s2, %s2023_s16 }
  0x83   : > { %v1567_v37 = vsel %vm2838_vm4, %v1562_v56, %v1566_v19  ;;  %v1770_v18 = vpack.c.b16 %v1766_v28, %v1765_v5 }
  0x84   : > { %v1592_v55 = vunpack.c.l.b16 %v1567_v37 }
  0x8c   : > { %1273 = vmatmul.bf16.vlgmr.msra.gmra.mxu1 %v3198_v8  ;;  %1831 = vmatmul.bf16.vlgmr.msra.gmra.mxu0 %v1767_v48  ;;  %v1548_v8 = vrot.slane %v1547_v36, 4  ;;  %v1182_v48 = vrot.slane %v3187_v60, 5 }
  0x8e   : > { %1667 = vmatmul.bf16.gmra.mxu3 %v1595_v10  ;;  %v1553_v35 = vsel %vm2838_vm4, %v1548_v8, %v1552_v23  ;;  %v1183_v49 = vsel %vm2847_vm5, %v2328_v43, %v1182_v48 }
  0x8f   : > { %1421 = vmatmul.bf16.gmra.mxu2 %v2412_v14  ;;  %v1591_v54 = vunpack.c.l.b16 %v1553_v35  ;;  %v1208_v58 = vunpack.c.l.b16 %v1183_v49 }
  0x91   : > { %v1212_v15 = vpack.c.b16 %v1208_v58, %v1207_v44  ;;  %v1596_v60 = vpack.c.b16 %v1592_v55, %v1591_v54 }
  0x9c   : > { %1278 = vmatmul.bf16.gmra.mxu1 %v3238_v9  ;;  %1836 = vmatmul.bf16.gmra.mxu0 %v1768_v52  ;;  %v1733_v9 = vsel %vm2847_vm5, %v2526_v46, %v1732_v2 }
  0x9d   : > { %v1764_v39 = vunpack.c.l.b16 %v1733_v9 }
  0x9e   : > { %1672 = vmatmul.bf16.gmra.mxu3 %v1596_v60 }
  0x9f   : > { %1426 = vmatmul.bf16.gmra.mxu2 %v2416_v59  ;;  %v1769_v14 = vpack.c.b16 %v1764_v39, %v1763_v47 }
  0xa9   : > { %v456_v16 = vpop.f32.mrf.mxu1  ;;  %v446_v17 = vpop.f32.mrf.mxu0 }
  0xac   : > { %1283 = vmatmul.bf16.gmra.mxu1 %v3279_v21  ;;  %1841 = vmatmul.bf16.gmra.mxu0 %v1769_v14 }
  0xaf   : > { %1846 = vmatmul.bf16.vlgmr.msra.gmra.mxu2 %v1770_v18 }
  0xb1   : > { %v458_v20 = vpop.f32.mrf.mxu1  ;;  %v448_v10 = vpop.f32.mrf.mxu0 }
  0xb2   : > { %v716_v1 = vpop.f32.mrf.mxu2  ;;  %v854_v22 = vpop.f32.mrf.mxu3 }
  0xb9   : > { %v461_v32 = vpop.f32.mrf.mxu1  ;;  %v451_v57 = vpop.f32.mrf.mxu0 }
  0xba   : > { %v718_v24 = vpop.f32.mrf.mxu2  ;;  %v856_v36 = vpop.f32.mrf.mxu3 }
  0xbc   : > { %1288 = vmatmul.bf16.gmra.mxu1 %v1212_v15 }
  0xc1   : > { %v463_v26 = vpop.f32.mrf.mxu1  ;;  %v453_v30 = vpop.f32.mrf.mxu0 }
  0xc2   : > { %v721_v25 = vpop.f32.mrf.mxu2  ;;  %v3322_v7 = vpop.f32.mrf.mxu3 }
  0xc9   : > { %v547_v8 = vpop.f32.mrf.mxu1  ;;  %v1100_v23 = vpop.f32.mrf.mxu0 }
  0xca   : > { %v723_v12 = vpop.f32.mrf.mxu2  ;;  %v548_v21 = vadd.f32 %v547_v8, %v446_v17  ;;  %v3324_v19 = vpop.f32.mrf.mxu3 }
  0xcc   : > { %v736_v56 = vadd.f32 %v716_v1, %v548_v21 }
  0xce   : > { %v874_v39 = vadd.f32 %v854_v22, %v736_v56 }
  0xd0   : > { %v1120_v28 = vadd.f32 %v1100_v23, %v874_v39 }
  0xd1   : > { %v549_v34 = vpop.f32.mrf.mxu1  ;;  %v1102_v35 = vpop.f32.mrf.mxu0 }
  0xd2   : > { %v726_v31 = vpop.f32.mrf.mxu2  ;;  %v550_v37 = vadd.f32 %v549_v34, %v448_v10  ;;  %v3326_v40 = vpop.f32.mrf.mxu3 }
  0xd4   : > { %v737_v38 = vadd.f32 %v718_v24, %v550_v37 }
  0xd9   : > { %v552_v27 = vpop.f32.mrf.mxu1  ;;  %v1105_v43 = vpop.f32.mrf.mxu0 }
  0xda   : > { %v728_v41 = vpop.f32.mrf.mxu2  ;;  %v553_v48 = vadd.f32 %v552_v27, %v451_v57  ;;  %v3328_v52 = vpop.f32.mrf.mxu3 }
  0xdc   : > { %v738_v50 = vadd.f32 %v721_v25, %v553_v48 }
  0xe1   : > { %v554_v53 = vpop.f32.mrf.mxu1  ;;  %v3330_v49 = vpop.f32.mrf.mxu0 }
  0xe2   : > { %v731_v51 = vpop.f32.mrf.mxu2  ;;  %v555_v54 = vadd.f32 %v554_v53, %v453_v30  ;;  %v3334_v61 = vpop.f32.mrf.mxu3 }
  0xe4   : > { %v739_v55 = vadd.f32 %v723_v12, %v555_v54  ;;  %v876_v12 = vadd.f32 %v3322_v7, %v738_v50 }
  0xe6   : > { %v1122_v21 = vadd.f32 %v1105_v43, %v876_v12  ;;  %v877_v27 = vadd.f32 %v3324_v19, %v739_v55 }
  0xe8   : > { %v1123_v50 = vadd.f32 %v3330_v49, %v877_v27 }
  0xe9   : > { %v557_v58 = vpop.f32.mrf.mxu1  ;;  %v3332_v59 = vpop.f32.mrf.mxu0 }
  0xea   : > { %v733_v44 = vpop.f32.mrf.mxu2  ;;  %v558_v42 = vadd.f32 %v557_v58, %v456_v16  ;;  %v3342_v46 = vpop.f32.mrf.mxu3 }
  0xec   : > { %v3336_v15 = vadd.f32 %v726_v31, %v558_v42 }
  0xf1   : > { %v559_v63 = vpop.f32.mrf.mxu1  ;;  %v3338_v60 = vpop.f32.mrf.mxu0 }
  0xf2   : > { %v1412_v62 = vpop.f32.mrf.mxu2  ;;  %v560_v45 = vadd.f32 %v559_v63, %v458_v20  ;;  %v1658_v11 = vpop.f32.mrf.mxu3  ;;  %v875_v20 = vadd.f32 %v856_v36, %v737_v38 }
  0xf4   : > { %v3340_v0 = vadd.f32 %v728_v41, %v560_v45  ;;  %v1121_v22 = vadd.f32 %v1102_v35, %v875_v20  ;;  %v878_v45 = vadd.f32 %v3326_v40, %v3336_v15 }
  0xf9   : > { %v562_v3 = vpop.f32.mrf.mxu1  ;;  %v3344_v4 = vpop.f32.mrf.mxu0 }
  0xfa   : > { %v1414_v2 = vpop.f32.mrf.mxu2  ;;  %v563_v6 = vadd.f32 %v562_v3, %v461_v32  ;;  %v1660_v14 = vpop.f32.mrf.mxu3 }
  0xfc   : > { %v3346_v33 = vadd.f32 %v731_v51, %v563_v6  ;;  %v1124_v6 = vadd.f32 %v3332_v59, %v878_v45 }
 0x101   : > { %v564_v13 = vpop.f32.mrf.mxu1  ;;  %v3348_v29 = vpop.f32.mrf.mxu0 }
 0x102   : > { %v1417_v9 = vpop.f32.mrf.mxu2  ;;  %v565_v47 = vadd.f32 %v564_v13, %v463_v26  ;;  %v1663_v30 = vpop.f32.mrf.mxu3 }
 0x104   : > { %v3351_v5 = vadd.f32 %v733_v44, %v565_v47 }
 0x109   : > { %v1274_v16 = vpop.f32.mrf.mxu1  ;;  %v1832_v17 = vpop.f32.mrf.mxu0 }
 0x10a   : > { %v1294_v18 = vadd.f32 %v1274_v16, %v1120_v28  ;;  %v1419_v1 = vpop.f32.mrf.mxu2  ;;  %v1665_v53 = vpop.f32.mrf.mxu3 }
 0x10c   : > { %v1432_v10 = vadd.f32 %v1412_v62, %v1294_v18 }
 0x10e   : > { %v1678_v24 = vadd.f32 %v1658_v11, %v1432_v10 }
 0x110   : > { %v1852_v32 = vadd.f32 %v1832_v17, %v1678_v24 }
 0x111   : > { %v1276_v57 = vpop.f32.mrf.mxu1  ;;  %v1834_v25 = vpop.f32.mrf.mxu0 }
 0x112   : > { %1860 = vst [vmem:[%s3356_s12] sm:$0xff] %v1852_v32  ;;  %v1295_v26 = vadd.f32 %v1276_v57, %v1121_v22  ;;  %v1422_v8 = vpop.f32.mrf.mxu2  ;;  %v1882_v37 = vmul.f32 %v1852_v32, %v1852_v32  ;;  %v1668_v3 = vpop.f32.mrf.mxu3 }
 0x114   : > { %v1433_v36 = vadd.f32 %v1414_v2, %v1295_v26 }
 0x116   : > { %v1679_v23 = vadd.f32 %v1660_v14, %v1433_v36  ;;  %v879_v14 = vadd.f32 %v3328_v52, %v3340_v0 }
 0x118   : > { %v1853_v56 = vadd.f32 %v1834_v25, %v1679_v23  ;;  %v1125_v17 = vadd.f32 %v3338_v60, %v879_v14 }
 0x119   : > { %v1279_v31 = vpop.f32.mrf.mxu1  ;;  %v1837_v34 = vpop.f32.mrf.mxu0 }
 0x11a   : > { %1861 = vst [vmem:[%s3356_s12 + $0x8] sm:$0xff] %v1853_v56  ;;  %v1868_v35 = vadd.f32 %v1853_v56, %v1852_v32  ;;  %v1883_v38 = vmul.f32 %v1853_v56, %v1853_v56  ;;  %v1296_v41 = vadd.f32 %v1279_v31, %v1122_v21  ;;  %v1424_v7 = vpop.f32.mrf.mxu2  ;;  %v1670_v59 = vpop.f32.mrf.mxu3  ;;  %v880_v32 = vadd.f32 %v3334_v61, %v3346_v33 }
 0x11b   : > { %v881_v21 = vadd.f32 %v3342_v46, %v3351_v5 }
 0x11c   : > { %v1890_v48 = vadd.f32 %v1883_v38, %v1882_v37  ;;  %v1434_v51 = vadd.f32 %v1417_v9, %v1296_v41  ;;  %v1126_v26 = vadd.f32 %v3344_v4, %v880_v32 }
 0x11e   : > { %v1680_v54 = vadd.f32 %v1663_v30, %v1434_v51 }
 0x120   : > { %v1854_v44 = vadd.f32 %v1837_v34, %v1680_v54  ;;  %v1127_v34 = vadd.f32 %v3348_v29, %v881_v21 }
 0x121   : > { %v1281_v43 = vpop.f32.mrf.mxu1  ;;  %v1839_v58 = vpop.f32.mrf.mxu0 }
 0x122   : > { %1862 = vst [vmem:[%s3356_s12 + $0x10] sm:$0xff] %v1854_v44  ;;  %v1869_v42 = vadd.f32 %v1868_v35, %v1854_v44  ;;  %v1884_v62 = vmul.f32 %v1854_v44, %v1854_v44  ;;  %v1297_v63 = vadd.f32 %v1281_v43, %v1123_v50  ;;  %v1427_v49 = vpop.f32.mrf.mxu2  ;;  %v1673_v23 = vpop.f32.mrf.mxu3 }
 0x124   : > { %v1891_v2 = vadd.f32 %v1890_v48, %v1884_v62  ;;  %v1435_v19 = vadd.f32 %v1419_v1, %v1297_v63 }
 0x126   : > { %v1681_v55 = vadd.f32 %v1665_v53, %v1435_v19 }
 0x128   : > { %v1855_v11 = vadd.f32 %v1839_v58, %v1681_v55 }
 0x129   : > { %v1284_v9 = vpop.f32.mrf.mxu1  ;;  %v1842_v28 = vpop.f32.mrf.mxu0 }
 0x12a   : > { %1863 = vst [vmem:[%s3356_s12 + $0x18] sm:$0xff] %v1855_v11  ;;  %v1870_v13 = vadd.f32 %v1869_v42, %v1855_v11  ;;  %v1885_v47 = vmul.f32 %v1855_v11, %v1855_v11  ;;  %v1298_v39 = vadd.f32 %v1284_v9, %v1124_v6  ;;  %v1429_v22 = vpop.f32.mrf.mxu2  ;;  %v1675_v51 = vpop.f32.mrf.mxu3 }
 0x12c   : > { %v1892_v16 = vadd.f32 %v1891_v2, %v1885_v47  ;;  %v1436_v40 = vadd.f32 %v1422_v8, %v1298_v39 }
 0x12e   : > { %v1682_v15 = vadd.f32 %v1668_v3, %v1436_v40 }
 0x130   : > { %v1856_v18 = vadd.f32 %v1842_v28, %v1682_v15 }
 0x131   : > { %v1286_v1 = vpop.f32.mrf.mxu1  ;;  %v1844_v52 = vpop.f32.mrf.mxu0 }
 0x132   : > { %1864 = vst [vmem:[%s3356_s12 + $0x20] sm:$0xff] %v1856_v18  ;;  %v1871_v20 = vadd.f32 %v1870_v13, %v1856_v18  ;;  %v1886_v10 = vmul.f32 %v1856_v18, %v1856_v18  ;;  %v1299_v24 = vadd.f32 %v1286_v1, %v1125_v17  ;;  %v1847_v61 = vpop.f32.mrf.mxu2 }
 0x134   : > { %v1893_v57 = vadd.f32 %v1892_v16, %v1886_v10  ;;  %v1437_v25 = vadd.f32 %v1424_v7, %v1299_v24 }
 0x136   : > { %v1683_v0 = vadd.f32 %v1670_v59, %v1437_v25 }
 0x138   : > { %v1857_v60 = vadd.f32 %v1844_v52, %v1683_v0 }
 0x139   : > { %v1289_v30 = vpop.f32.mrf.mxu1 }
 0x13a   : > { %1865 = vst [vmem:[%s3356_s12 + $0x28] sm:$0xff] %v1857_v60  ;;  %v1872_v12 = vadd.f32 %v1871_v20, %v1857_v60  ;;  %v1887_v36 = vmul.f32 %v1857_v60, %v1857_v60  ;;  %v1300_v8 = vadd.f32 %v1289_v30, %v1126_v26  ;;  %v1849_v54 = vpop.f32.mrf.mxu2 }
 0x13c   : > { %v1894_v56 = vadd.f32 %v1893_v57, %v1887_v36  ;;  %v1438_v31 = vadd.f32 %v1427_v49, %v1300_v8 }
 0x13e   : > { %v1684_v33 = vadd.f32 %v1673_v23, %v1438_v31 }
 0x140   : > { %v1858_v37 = vadd.f32 %v1847_v61, %v1684_v33 }
 0x141   : > { %v1291_v4 = vpop.f32.mrf.mxu1 }
 0x142   : > { %1866 = vst [vmem:[%s3356_s12 + $0x30] sm:$0xff] %v1858_v37  ;;  %v1873_v35 = vadd.f32 %v1872_v12, %v1858_v37  ;;  %v1888_v38 = vmul.f32 %v1858_v37, %v1858_v37  ;;  %v1301_v41 = vadd.f32 %v1291_v4, %v1127_v34 }
 0x144   : > { %v1895_v27 = vadd.f32 %v1894_v56, %v1888_v38  ;;  %v1439_v48 = vadd.f32 %v1429_v22, %v1301_v41 }
 0x146   : > { %v1685_v53 = vadd.f32 %v1675_v51, %v1439_v48 }
 0x148   : > { %v1859_v46 = vadd.f32 %v1849_v54, %v1685_v53 }
 0x14a   : > { %1867 = vst [vmem:[%s3356_s12 + $0x38] sm:$0xff] %v1859_v46  ;;  %v1874_v5 = vadd.f32 %v1873_v35, %v1859_v46  ;;  %v1889_v7 = vmul.f32 %v1859_v46, %v1859_v46 }
 0x14c   : > { %v1875_v50 = vrot.slane %v1874_v5, 4  ;;  %v1896_v44 = vadd.f32 %v1895_v27, %v1889_v7 }
 0x14e   : > { %v1876_v43 = vadd.f32 %v1875_v50, %v1874_v5  ;;  %v1897_v29 = vrot.slane %v1896_v44, 4 }
 0x150   : > { %v1877_v58 = vrot.slane %v1876_v43, 2  ;;  %v1898_v42 = vadd.f32 %v1897_v29, %v1896_v44 }
 0x152   : > { %v1878_v62 = vadd.f32 %v1877_v58, %v1876_v43  ;;  %v1899_v63 = vrot.slane %v1898_v42, 2 }
 0x154   : > { %v1879_v45 = vrot.slane %v1878_v62, 1  ;;  %v1900_v2 = vadd.f32 %v1899_v63, %v1898_v42 }
 0x156   : > { %v1880_v19 = vadd.f32 %v1879_v45, %v1878_v62  ;;  %v1901_v55 = vrot.slane %v1900_v2, 1 }
 0x158   : > { %1881 = vst [vmem:[%s203_s23] sm:$0x1] %v1880_v19  ;;  %v1902_v3 = vadd.f32 %v1901_v55, %v1900_v2 }
 0x15a   : > { %1903 = vst [vmem:[%s203_s23 + $0x1] sm:$0x1] %v1902_v3 }
 0x15b PF: > { %s14_s14 = sadd.s32 1, %s2726_s14   ;;  %s3402_s12 = smov %s2722_s13 }
 0x15c   : > { %p11_p6 = scmp.ge.s32.totalorder %s14_s14, 4   ;;  %s3403_s13 = smov %s3405_s15 }
 0x15e   :  { %13 = sbr.rel (!%p11_p6) target bundleno = 2 (0x2), region = 81 }

// kernel: special_block.5
= control target key start
LH: loop header
LB: loop body
LE: loop exit
PB: predicated region body
PF: predicated region fallthrough
CT: control target
= control target key end

     0   :  { %s500_s1 = inlined_call_operand.vmem [shape: bf16[128,128], index: 1, kind: input, shape index: {}]   ;;  %s501_s0 = inlined_call_operand.vmem [shape: bf16[128,128], index: 0, kind: input, shape index: {}]   ;;  %s502_s2 = inlined_call_operand.vmem [shape: f32[128,128], index: 2, kind: output, shape index: {0}]   ;;  %s503_s3 = inlined_call_operand.vmem [shape: f32[1,2,128], index: 3, kind: output, shape index: {1}]  }
   0x1   :  { %v353_v0 = vld [vmem:[%s500_s1 + $0x38] sm:$0xff]  ;;  %v352_v1 = vld [vmem:[%s500_s1 + $0x30] sm:$0xff]  ;;  %v351_v2 = vld [vmem:[%s500_s1 + $0x28] sm:$0xff] }
   0x2   :  { %141 = vmatpush.bf16.msra.mxu0 %v353_v0  ;;  %354 = vmatpush.bf16.msra.mxu1 %v353_v0  ;;  %v350_v3 = vld [vmem:[%s500_s1 + $0x20] sm:$0xff]  ;;  %v349_v4 = vld [vmem:[%s500_s1 + $0x18] sm:$0xff]  ;;  %v348_v5 = vld [vmem:[%s500_s1 + $0x10] sm:$0xff] }
   0x3   :  { %355 = vmatpush.bf16.msra.mxu2 %v353_v0  ;;  %356 = vmatpush.bf16.msra.mxu3 %v353_v0  ;;  %v347_v6 = vld [vmem:[%s500_s1 + $0x8] sm:$0xff]  ;;  %v346_v7 = vld [vmem:[%s500_s1] sm:$0xff]  ;;  %v340_v9 = vld [vmem:[%s501_s0 + $0x10] sm:$0xff] }
   0x4   :  { %v338_v8 = vld [vmem:[%s501_s0] sm:$0xff]  ;;  %v344_v11 = vld [vmem:[%s501_s0 + $0x30] sm:$0xff]  ;;  %v339_v12 = vld [vmem:[%s501_s0 + $0x8] sm:$0xff] }
   0x5   :  { %v342_v10 = vld [vmem:[%s501_s0 + $0x20] sm:$0xff]  ;;  %v341_v13 = vld [vmem:[%s501_s0 + $0x18] sm:$0xff]  ;;  %v343_v14 = vld [vmem:[%s501_s0 + $0x28] sm:$0xff] }
   0x6   :  { %142 = vmatpush.bf16.msra.mxu0 %v352_v1  ;;  %357 = vmatpush.bf16.msra.mxu1 %v352_v1  ;;  %v345_v15 = vld [vmem:[%s501_s0 + $0x38] sm:$0xff] }
   0x7   :  { %358 = vmatpush.bf16.msra.mxu2 %v352_v1  ;;  %359 = vmatpush.bf16.msra.mxu3 %v352_v1 }
   0xa   :  { %143 = vmatpush.bf16.msra.mxu0 %v351_v2  ;;  %360 = vmatpush.bf16.msra.mxu1 %v351_v2 }
   0xb   :  { %361 = vmatpush.bf16.msra.mxu2 %v351_v2  ;;  %362 = vmatpush.bf16.msra.mxu3 %v351_v2 }
   0xe   :  { %144 = vmatpush.bf16.msra.mxu0 %v350_v3  ;;  %363 = vmatpush.bf16.msra.mxu1 %v350_v3 }
   0xf   :  { %364 = vmatpush.bf16.msra.mxu2 %v350_v3  ;;  %365 = vmatpush.bf16.msra.mxu3 %v350_v3 }
  0x12   :  { %145 = vmatpush.bf16.msra.mxu0 %v349_v4  ;;  %366 = vmatpush.bf16.msra.mxu1 %v349_v4 }
  0x13   :  { %367 = vmatpush.bf16.msra.mxu2 %v349_v4  ;;  %368 = vmatpush.bf16.msra.mxu3 %v349_v4 }
  0x16   :  { %146 = vmatpush.bf16.msra.mxu0 %v348_v5  ;;  %369 = vmatpush.bf16.msra.mxu1 %v348_v5 }
  0x17   :  { %370 = vmatpush.bf16.msra.mxu2 %v348_v5  ;;  %371 = vmatpush.bf16.msra.mxu3 %v348_v5 }
  0x1a   :  { %147 = vmatpush.bf16.msra.mxu0 %v347_v6  ;;  %372 = vmatpush.bf16.msra.mxu1 %v347_v6 }
  0x1b   :  { %373 = vmatpush.bf16.msra.mxu2 %v347_v6  ;;  %374 = vmatpush.bf16.msra.mxu3 %v347_v6 }
  0x1e   :  { %148 = vmatpush.bf16.msra.mxu0 %v346_v7  ;;  %375 = vmatpush.bf16.msra.mxu1 %v346_v7 }
  0x1f   :  { %376 = vmatpush.bf16.msra.mxu2 %v346_v7  ;;  %377 = vmatpush.bf16.msra.mxu3 %v346_v7 }
  0x21   :  { %149 = vmatmul.bf16.vlgmr.msra.gmra.mxu0 %v338_v8  ;;  %159 = vmatmul.bf16.vlgmr.msra.gmra.mxu1 %v340_v9 }
  0x22   :  { %169 = vmatmul.bf16.vlgmr.msra.gmra.mxu2 %v342_v10  ;;  %179 = vmatmul.bf16.vlgmr.msra.gmra.mxu3 %v344_v11 }
  0x31   :  { %154 = vmatmul.bf16.gmra.mxu0 %v339_v12  ;;  %164 = vmatmul.bf16.gmra.mxu1 %v341_v13 }
  0x32   :  { %174 = vmatmul.bf16.gmra.mxu2 %v343_v14  ;;  %184 = vmatmul.bf16.gmra.mxu3 %v345_v15 }
  0x9e   :  { %v150_v16 = vpop.f32.mrf.mxu0  ;;  %v160_v17 = vpop.f32.mrf.mxu1 }
  0x9f   :  { %190 = vst [vmem:[%s502_s2] sm:$0xff] %v150_v16  ;;  %v228_v27 = vmul.f32 %v150_v16, %v150_v16  ;;  %v232_v39 = vmul.f32 %v160_v17, %v160_v17 }
  0xa0   :  { %194 = vst [vmem:[%s502_s2 + $0x20] sm:$0xff] %v160_v17 }
  0xa5   :  { %v170_v18 = vpop.f32.mrf.mxu2  ;;  %v180_v19 = vpop.f32.mrf.mxu3 }
  0xa6   :  { %v152_v20 = vpop.f32.mrf.mxu0  ;;  %v162_v21 = vpop.f32.mrf.mxu1  ;;  %198 = vst [vmem:[%s502_s2 + $0x40] sm:$0xff] %v170_v18  ;;  %v236_v53 = vmul.f32 %v170_v18, %v170_v18  ;;  %v240_v1 = vmul.f32 %v180_v19, %v180_v19 }
  0xa7   :  { %191 = vst [vmem:[%s502_s2 + $0x8] sm:$0xff] %v152_v20  ;;  %v229_v26 = vmul.f32 %v152_v20, %v152_v20  ;;  %v206_v28 = vadd.f32 %v152_v20, %v150_v16  ;;  %v233_v42 = vmul.f32 %v162_v21, %v162_v21 }
  0xa8   :  { %195 = vst [vmem:[%s502_s2 + $0x28] sm:$0xff] %v162_v21 }
  0xa9   :  { %202 = vst [vmem:[%s502_s2 + $0x60] sm:$0xff] %v180_v19  ;;  %v244_v30 = vadd.f32 %v229_v26, %v228_v27 }
  0xad   :  { %v172_v22 = vpop.f32.mrf.mxu2  ;;  %v182_v23 = vpop.f32.mrf.mxu3 }
  0xae   :  { %v155_v24 = vpop.f32.mrf.mxu0  ;;  %v165_v25 = vpop.f32.mrf.mxu1  ;;  %199 = vst [vmem:[%s502_s2 + $0x48] sm:$0xff] %v172_v22  ;;  %v237_v56 = vmul.f32 %v172_v22, %v172_v22  ;;  %v241_v4 = vmul.f32 %v182_v23, %v182_v23 }
  0xaf   :  { %192 = vst [vmem:[%s502_s2 + $0x10] sm:$0xff] %v155_v24  ;;  %v230_v29 = vmul.f32 %v155_v24, %v155_v24  ;;  %v207_v31 = vadd.f32 %v206_v28, %v155_v24  ;;  %v234_v45 = vmul.f32 %v165_v25, %v165_v25 }
  0xb0   :  { %196 = vst [vmem:[%s502_s2 + $0x30] sm:$0xff] %v165_v25 }
  0xb1   :  { %203 = vst [vmem:[%s502_s2 + $0x68] sm:$0xff] %v182_v23  ;;  %v245_v36 = vadd.f32 %v244_v30, %v230_v29 }
  0xb5   :  { %v175_v32 = vpop.f32.mrf.mxu2  ;;  %v185_v33 = vpop.f32.mrf.mxu3 }
  0xb6   :  { %v157_v34 = vpop.f32.mrf.mxu0  ;;  %v167_v35 = vpop.f32.mrf.mxu1  ;;  %200 = vst [vmem:[%s502_s2 + $0x50] sm:$0xff] %v175_v32  ;;  %v238_v60 = vmul.f32 %v175_v32, %v175_v32  ;;  %v242_v8 = vmul.f32 %v185_v33, %v185_v33 }
  0xb7   :  { %193 = vst [vmem:[%s502_s2 + $0x18] sm:$0xff] %v157_v34  ;;  %v208_v37 = vadd.f32 %v207_v31, %v157_v34  ;;  %v231_v38 = vmul.f32 %v157_v34, %v157_v34  ;;  %v235_v51 = vmul.f32 %v167_v35, %v167_v35 }
  0xb8   :  { %197 = vst [vmem:[%s502_s2 + $0x38] sm:$0xff] %v167_v35 }
  0xb9   :  { %v209_v40 = vadd.f32 %v208_v37, %v160_v17  ;;  %v246_v41 = vadd.f32 %v245_v36, %v231_v38  ;;  %204 = vst [vmem:[%s502_s2 + $0x70] sm:$0xff] %v185_v33 }
  0xbb   :  { %v247_v43 = vadd.f32 %v246_v41, %v232_v39  ;;  %v210_v44 = vadd.f32 %v209_v40, %v162_v21 }
  0xbd   :  { %v211_v46 = vadd.f32 %v210_v44, %v165_v25  ;;  %v248_v47 = vadd.f32 %v247_v43, %v233_v42  ;;  %v177_v48 = vpop.f32.mrf.mxu2  ;;  %v187_v49 = vpop.f32.mrf.mxu3 }
  0xbe   :  { %201 = vst [vmem:[%s502_s2 + $0x58] sm:$0xff] %v177_v48  ;;  %v239_v0 = vmul.f32 %v177_v48, %v177_v48  ;;  %v243_v12 = vmul.f32 %v187_v49, %v187_v49 }
  0xbf   :  { %v212_v50 = vadd.f32 %v211_v46, %v167_v35  ;;  %v249_v52 = vadd.f32 %v248_v47, %v234_v45  ;;  %205 = vst [vmem:[%s502_s2 + $0x78] sm:$0xff] %v187_v49 }
  0xc1   :  { %v213_v54 = vadd.f32 %v212_v50, %v170_v18  ;;  %v250_v55 = vadd.f32 %v249_v52, %v235_v51 }
  0xc3   :  { %v251_v57 = vadd.f32 %v250_v55, %v236_v53  ;;  %v214_v58 = vadd.f32 %v213_v54, %v172_v22 }
  0xc5   :  { %v215_v59 = vadd.f32 %v214_v58, %v175_v32  ;;  %v252_v61 = vadd.f32 %v251_v57, %v237_v56 }
  0xc7   :  { %v253_v62 = vadd.f32 %v252_v61, %v238_v60  ;;  %v216_v63 = vadd.f32 %v215_v59, %v177_v48 }
  0xc9   :  { %v217_v2 = vadd.f32 %v216_v63, %v180_v19  ;;  %v254_v3 = vadd.f32 %v253_v62, %v239_v0 }
  0xcb   :  { %v255_v5 = vadd.f32 %v254_v3, %v240_v1  ;;  %v218_v6 = vadd.f32 %v217_v2, %v182_v23 }
  0xcd   :  { %v219_v7 = vadd.f32 %v218_v6, %v185_v33  ;;  %v256_v9 = vadd.f32 %v255_v5, %v241_v4 }
  0xcf   :  { %v257_v10 = vadd.f32 %v256_v9, %v242_v8  ;;  %v220_v11 = vadd.f32 %v219_v7, %v187_v49 }
  0xd1   :  { %v221_v13 = vrot.slane %v220_v11, 4  ;;  %v258_v14 = vadd.f32 %v257_v10, %v243_v12 }
  0xd3   :  { %v222_v15 = vadd.f32 %v221_v13, %v220_v11  ;;  %v259_v16 = vrot.slane %v258_v14, 4 }
  0xd5   :  { %v223_v17 = vrot.slane %v222_v15, 2  ;;  %v260_v18 = vadd.f32 %v259_v16, %v258_v14 }
  0xd7   :  { %v224_v20 = vadd.f32 %v223_v17, %v222_v15  ;;  %v261_v21 = vrot.slane %v260_v18, 2 }
  0xd9   :  { %v225_v22 = vrot.slane %v224_v20, 1  ;;  %v262_v19 = vadd.f32 %v261_v21, %v260_v18 }
  0xdb   :  { %v226_v24 = vadd.f32 %v225_v22, %v224_v20  ;;  %v263_v25 = vrot.slane %v262_v19, 1 }
  0xdd   :  { %227 = vst [vmem:[%s503_s3] sm:$0x1] %v226_v24  ;;  %v264_v23 = vadd.f32 %v263_v25, %v262_v19 }
  0xdf   :  { %265 = vst [vmem:[%s503_s3 + $0x1] sm:$0x1] %v264_v23 }

// kernel: special_block.9
= control target key start
LH: loop header
LB: loop body
LE: loop exit
PB: predicated region body
PF: predicated region fallthrough
CT: control target
= control target key end

     0   :  { %s454_s0 = inlined_call_operand.vmem [shape: f32[128,128], index: 0, kind: input, shape index: {}]   ;;  %s455_s1 = inlined_call_operand.vmem [shape: f32[1,128], index: 1, kind: input, shape index: {}]   ;;  %s456_s2 = inlined_call_operand.vmem [shape: f32[1,128], index: 2, kind: input, shape index: {}]   ;;  %s457_s3 = inlined_call_operand.vmem [shape: f32[128,128], index: 3, kind: input, shape index: {}]   ;;  %s458_s4 = inlined_call_operand.vmem [shape: f32[1,128], index: 4, kind: input, shape index: {}]   ;;  %s459_s5 = inlined_call_operand.vmem [shape: f32[1,128], index: 5, kind: input, shape index: {}]   ;;  %s460_s6 = inlined_call_operand.vmem [shape: f32[128,128], index: 6, kind: output, shape index: {}]  }
   0x1   :  { %v23_v0 = vld [vmem:[%s454_s0] sm:$0xff]  ;;  %v24_v7 = vld [vmem:[%s454_s0 + $0x8] sm:$0xff]  ;;  %v25_v13 = vld [vmem:[%s454_s0 + $0x10] sm:$0xff] }
   0x2   :  { %v232_v1 = vld [vmem:[%s455_s1] ss:$0 sm:$0xff]  ;;  %v80_v8 = vld [vmem:[%s457_s3 + $0x8] sm:$0xff]  ;;  %v81_v14 = vld [vmem:[%s457_s3 + $0x10] sm:$0xff] }
   0x3   :  { %v237_v2 = vld [vmem:[%s456_s2] ss:$0 sm:$0xff]  ;;  %v43_v4 = vmul.f32 %v232_v1, %v23_v0  ;;  %v44_v11 = vmul.f32 %v232_v1, %v24_v7  ;;  %v26_v15 = vld [vmem:[%s454_s0 + $0x18] sm:$0xff]  ;;  %v45_v16 = vmul.f32 %v232_v1, %v25_v13  ;;  %v28_v26 = vld [vmem:[%s454_s0 + $0x28] sm:$0xff] }
   0x4   :  { %v79_v3 = vld [vmem:[%s457_s3] sm:$0xff]  ;;  %v46_v18 = vmul.f32 %v232_v1, %v26_v15  ;;  %v82_v19 = vld [vmem:[%s457_s3 + $0x18] sm:$0xff]  ;;  %v84_v27 = vld [vmem:[%s457_s3 + $0x28] sm:$0xff]  ;;  %v48_v32 = vmul.f32 %v232_v1, %v28_v26 }
   0x5   :  { %v246_v5 = vld [vmem:[%s458_s4] ss:$0 sm:$0xff]  ;;  %v63_v9 = vadd.f32 %v237_v2, %v43_v4  ;;  %v64_v23 = vadd.f32 %v237_v2, %v44_v11  ;;  %v29_v28 = vld [vmem:[%s454_s0 + $0x30] sm:$0xff]  ;;  %v65_v29 = vadd.f32 %v237_v2, %v45_v16  ;;  %v30_v42 = vld [vmem:[%s454_s0 + $0x38] sm:$0xff] }
   0x6   :  { %v251_v6 = vld [vmem:[%s459_s5] ss:$0 sm:$0xff]  ;;  %v99_v10 = vmul.f32 %v246_v5, %v79_v3  ;;  %v100_v12 = vmul.f32 %v246_v5, %v80_v8  ;;  %v101_v17 = vmul.f32 %v246_v5, %v81_v14  ;;  %v102_v24 = vmul.f32 %v246_v5, %v82_v19  ;;  %v85_v33 = vld [vmem:[%s457_s3 + $0x30] sm:$0xff]  ;;  %v86_v43 = vld [vmem:[%s457_s3 + $0x38] sm:$0xff] }
   0x7   :  { %v27_v20 = vld [vmem:[%s454_s0 + $0x20] sm:$0xff]  ;;  %v66_v30 = vadd.f32 %v237_v2, %v46_v18  ;;  %v104_v37 = vmul.f32 %v246_v5, %v84_v27  ;;  %v68_v40 = vadd.f32 %v237_v2, %v48_v32  ;;  %v49_v41 = vmul.f32 %v232_v1, %v29_v28  ;;  %v32_v58 = vld [vmem:[%s454_s0 + $0x48] sm:$0xff]  ;;  %v33_v0 = vld [vmem:[%s454_s0 + $0x50] sm:$0xff] }
   0x8   :  { %v83_v21 = vld [vmem:[%s457_s3 + $0x20] sm:$0xff]  ;;  %v115_v22 = vadd.f32 %v99_v10, %v63_v9  ;;  %v47_v25 = vmul.f32 %v232_v1, %v27_v20  ;;  %v116_v35 = vadd.f32 %v100_v12, %v64_v23  ;;  %v117_v38 = vadd.f32 %v101_v17, %v65_v29  ;;  %v88_v59 = vld [vmem:[%s457_s3 + $0x48] sm:$0xff]  ;;  %v89_v3 = vld [vmem:[%s457_s3 + $0x50] sm:$0xff] }
   0x9   :  { %v103_v31 = vmul.f32 %v246_v5, %v83_v21  ;;  %v118_v39 = vadd.f32 %v102_v24, %v66_v30  ;;  %v105_v47 = vmul.f32 %v246_v5, %v85_v33  ;;  %v120_v50 = vadd.f32 %v104_v37, %v68_v40  ;;  %v31_v52 = vld [vmem:[%s454_s0 + $0x40] sm:$0xff]  ;;  %v34_v10 = vld [vmem:[%s454_s0 + $0x58] sm:$0xff] }
   0xa   :  { %v135_v34 = vadd.f32 %v251_v6, %v115_v22  ;;  %v67_v36 = vadd.f32 %v237_v2, %v47_v25  ;;  %v136_v45 = vadd.f32 %v251_v6, %v116_v35  ;;  %v137_v48 = vadd.f32 %v251_v6, %v117_v38  ;;  %v87_v53 = vld [vmem:[%s457_s3 + $0x40] sm:$0xff]  ;;  %v90_v11 = vld [vmem:[%s457_s3 + $0x58] sm:$0xff]  ;;  %v36_v22 = vld [vmem:[%s454_s0 + $0x68] sm:$0xff] }
   0xb   :  { %v138_v49 = vadd.f32 %v251_v6, %v118_v39  ;;  %v69_v51 = vadd.f32 %v237_v2, %v49_v41  ;;  %v50_v56 = vmul.f32 %v232_v1, %v30_v42  ;;  %v106_v57 = vmul.f32 %v246_v5, %v86_v43  ;;  %v35_v16 = vld [vmem:[%s454_s0 + $0x60] sm:$0xff]  ;;  %v93_v41 = vld [vmem:[%s457_s3 + $0x70] sm:$0xff] }
   0xc   :  { %v151_v44 = vmax.f32 %v135_v34, 0.0  ;;  %v119_v46 = vadd.f32 %v103_v31, %v67_v36  ;;  %v152_v54 = vmax.f32 %v136_v45, 0.0  ;;  %v153_v60 = vmax.f32 %v137_v48, 0.0  ;;  %v91_v21 = vld [vmem:[%s457_s3 + $0x60] sm:$0xff]  ;;  %v92_v31 = vld [vmem:[%s457_s3 + $0x68] sm:$0xff]  ;;  %v37_v36 = vld [vmem:[%s454_s0 + $0x70] sm:$0xff] }
   0xd   :  { %v154_v61 = vmax.f32 %v138_v49, 0.0  ;;  %v140_v62 = vadd.f32 %v251_v6, %v120_v50  ;;  %v121_v63 = vadd.f32 %v105_v47, %v69_v51  ;;  %v70_v7 = vadd.f32 %v237_v2, %v50_v56  ;;  %v94_v51 = vld [vmem:[%s457_s3 + $0x78] sm:$0xff] }
   0xe   :  { %167 = vst [vmem:[%s460_s6] sm:$0xff] %v151_v44  ;;  %v139_v55 = vadd.f32 %v251_v6, %v119_v46  ;;  %v51_v8 = vmul.f32 %v232_v1, %v31_v52  ;;  %v107_v9 = vmul.f32 %v246_v5, %v87_v53  ;;  %v52_v14 = vmul.f32 %v232_v1, %v32_v58  ;;  %v38_v46 = vld [vmem:[%s454_s0 + $0x78] sm:$0xff] }
   0xf   :  { %168 = vst [vmem:[%s460_s6 + $0x8] sm:$0xff] %v152_v54  ;;  %v156_v12 = vmax.f32 %v140_v62, 0.0  ;;  %v141_v13 = vadd.f32 %v251_v6, %v121_v63  ;;  %v108_v15 = vmul.f32 %v246_v5, %v88_v59  ;;  %v122_v17 = vadd.f32 %v106_v57, %v70_v7 }
  0x10   :  { %v155_v4 = vmax.f32 %v139_v55, 0.0  ;;  %169 = vst [vmem:[%s460_s6 + $0x10] sm:$0xff] %v153_v60  ;;  %v71_v18 = vadd.f32 %v237_v2, %v51_v8  ;;  %v53_v19 = vmul.f32 %v232_v1, %v33_v0  ;;  %v109_v20 = vmul.f32 %v246_v5, %v89_v3 }
  0x11   :  { %170 = vst [vmem:[%s460_s6 + $0x18] sm:$0xff] %v154_v61  ;;  %v157_v23 = vmax.f32 %v141_v13, 0.0  ;;  %v72_v24 = vadd.f32 %v237_v2, %v52_v14  ;;  %v54_v25 = vmul.f32 %v232_v1, %v34_v10  ;;  %v110_v26 = vmul.f32 %v246_v5, %v90_v11 }
  0x12   :  { %171 = vst [vmem:[%s460_s6 + $0x20] sm:$0xff] %v155_v4  ;;  %v142_v27 = vadd.f32 %v251_v6, %v122_v17  ;;  %v123_v28 = vadd.f32 %v107_v9, %v71_v18  ;;  %v73_v29 = vadd.f32 %v237_v2, %v53_v19  ;;  %v55_v30 = vmul.f32 %v232_v1, %v35_v16 }
  0x13   :  { %172 = vst [vmem:[%s460_s6 + $0x28] sm:$0xff] %v156_v12  ;;  %v124_v32 = vadd.f32 %v108_v15, %v72_v24  ;;  %v74_v33 = vadd.f32 %v237_v2, %v54_v25  ;;  %v111_v34 = vmul.f32 %v246_v5, %v91_v21  ;;  %v56_v35 = vmul.f32 %v232_v1, %v36_v22 }
  0x14   :  { %173 = vst [vmem:[%s460_s6 + $0x30] sm:$0xff] %v157_v23  ;;  %v158_v37 = vmax.f32 %v142_v27, 0.0  ;;  %v143_v38 = vadd.f32 %v251_v6, %v123_v28  ;;  %v125_v39 = vadd.f32 %v109_v20, %v73_v29  ;;  %v75_v40 = vadd.f32 %v237_v2, %v55_v30 }
  0x15   :  { %v144_v42 = vadd.f32 %v251_v6, %v124_v32  ;;  %v126_v43 = vadd.f32 %v110_v26, %v74_v33  ;;  %v76_v44 = vadd.f32 %v237_v2, %v56_v35  ;;  %v112_v45 = vmul.f32 %v246_v5, %v92_v31 }
  0x16   :  { %174 = vst [vmem:[%s460_s6 + $0x38] sm:$0xff] %v158_v37  ;;  %v159_v47 = vmax.f32 %v143_v38, 0.0  ;;  %v145_v48 = vadd.f32 %v251_v6, %v125_v39  ;;  %v127_v49 = vadd.f32 %v111_v34, %v75_v40  ;;  %v57_v50 = vmul.f32 %v232_v1, %v37_v36 }
  0x17   :  { %v160_v52 = vmax.f32 %v144_v42, 0.0  ;;  %v146_v53 = vadd.f32 %v251_v6, %v126_v43  ;;  %v128_v54 = vadd.f32 %v112_v45, %v76_v44  ;;  %v113_v55 = vmul.f32 %v246_v5, %v93_v41 }
  0x18   :  { %175 = vst [vmem:[%s460_s6 + $0x40] sm:$0xff] %v159_v47  ;;  %v161_v56 = vmax.f32 %v145_v48, 0.0  ;;  %v147_v57 = vadd.f32 %v251_v6, %v127_v49  ;;  %v77_v58 = vadd.f32 %v237_v2, %v57_v50  ;;  %v58_v59 = vmul.f32 %v232_v1, %v38_v46 }
  0x19   :  { %176 = vst [vmem:[%s460_s6 + $0x48] sm:$0xff] %v160_v52  ;;  %v162_v60 = vmax.f32 %v146_v53, 0.0  ;;  %v148_v61 = vadd.f32 %v251_v6, %v128_v54  ;;  %v114_v62 = vmul.f32 %v246_v5, %v94_v51 }
  0x1a   :  { %177 = vst [vmem:[%s460_s6 + $0x50] sm:$0xff] %v161_v56  ;;  %v163_v63 = vmax.f32 %v147_v57, 0.0  ;;  %v129_v0 = vadd.f32 %v113_v55, %v77_v58  ;;  %v78_v3 = vadd.f32 %v237_v2, %v58_v59 }
  0x1b   :  { %178 = vst [vmem:[%s460_s6 + $0x58] sm:$0xff] %v162_v60  ;;  %v164_v1 = vmax.f32 %v148_v61, 0.0 }
  0x1c   :  { %179 = vst [vmem:[%s460_s6 + $0x60] sm:$0xff] %v163_v63  ;;  %v149_v4 = vadd.f32 %v251_v6, %v129_v0  ;;  %v130_v5 = vadd.f32 %v114_v62, %v78_v3 }
  0x1d   :  { %180 = vst [vmem:[%s460_s6 + $0x68] sm:$0xff] %v164_v1 }
  0x1e   :  { %v165_v7 = vmax.f32 %v149_v4, 0.0  ;;  %v150_v8 = vadd.f32 %v251_v6, %v130_v5 }
  0x20   :  { %181 = vst [vmem:[%s460_s6 + $0x70] sm:$0xff] %v165_v7  ;;  %v166_v2 = vmax.f32 %v150_v8, 0.0 }
  0x22   :  { %182 = vst [vmem:[%s460_s6 + $0x78] sm:$0xff] %v166_v2 }

</bundles_post_ra>
